<compile_context>
chip_gen: v7x
topology: tpu7x:2x2x1
jax: 0.10.0
libtpu: 0.0.40
codegen_flags: <defaults>
</compile_context>

<pallas_src>
import functools

import jax
import jax.numpy as jnp
import numpy as np
from jax.experimental import pallas as pl
from jax.experimental.pallas import tpu as pltpu

COMPUTE_DTYPE = jnp.bfloat16   # MXU operand dtype; accumulation stays float32
LANE = 128


# ------------------------------ fused kernel --------------------------------

def _dilated_blocks_kernel(x_ref, w1_ref, b1_ref, w2_ref, b2_ref, w3_ref,
                           b3_ref, o_ref, pad_ref, acc_ref, *,
                           H, W, Mp, P, dilations):
    """Full forward pass (all bottleneck blocks) for one image.

    x_ref   : (H*W, C)          f32   flat, lane-dense activations (batch squeezed)
    w1_ref  : (nblk, C, Mp)     bf16  1x1 conv, BN folded, zero-padded to Mp
    w2_ref  : (nblk, 9*Mp, Mp)  bf16  3x3 dilated conv taps, BN folded, padded
    w3_ref  : (nblk, Mp, C)     bf16  1x1 conv, BN folded, padded rows
    b*_ref  : (nblk, 1, *)      f32   folded BN bias (padded entries are 0)
    o_ref   : (H*W, C)          f32   output block; doubles as residual carry
    pad_ref : (P + H*W + P, Mp) bf16  scratch — flat mid activation + zero halos
    acc_ref : (H*W, Mp)         f32   scratch — conv2 accumulator
    """
    HW = H * W

    # Zero the two halo regions ONCE; interior [P:P+HW) is overwritten every
    # block and the halos are never written, so no per-block zero-fill and no
    # stale-data hazard when the dilation changes between blocks.
    halo = jnp.zeros((P, Mp), pad_ref.dtype)
    pad_ref[0:P, :] = halo
    pad_ref[P + HW:2 * P + HW, :] = halo

    # Residual carry lives in the (VMEM-resident) output block, not in vregs.
    o_ref[...] = x_ref[...]

    # Column index of every flat pixel (x = p mod W), for the conv2 edge masks.
    pcol = jax.lax.broadcasted_iota(jnp.int32, (HW, Mp), 0) % W

    tap_offsets = [(ky, kx) for ky in range(3) for kx in range(3)]

    for blk, d in enumerate(dilations):              # static unroll over blocks
        # ---- conv1: 1x1 channel matmul + folded BN bias + ReLU --------------
        h = jnp.dot(o_ref[...].astype(COMPUTE_DTYPE), w1_ref[blk],
                    preferred_element_type=jnp.float32)
        h = jnp.maximum(h + b1_ref[blk], 0.0)                    # (HW, Mp) f32
        # Single contiguous, lane-dense, aligned store of the interior.
        pad_ref[P:P + HW, :] = h.astype(COMPUTE_DTYPE)

        # ---- conv2: 3x3 dilated conv = 9 shifted-slice taps ------------------
        # Rows out of range read the zero halo; columns out of range wrap to a
        # neighbouring row in the flat layout and are zeroed by a column mask.
        mask_l = pcol >= d                 # valid when dx = -d
        mask_r = pcol < (W - d)            # valid when dx = +d
        for j, (ky, kx) in enumerate(tap_offsets):
            dy, dx = (ky - 1) * d, (kx - 1) * d
            start = P + dy * W + dx                        # static Python int
            tap = pad_ref[start:start + HW, :]             # (HW, Mp) bf16
            if dx < 0:
                tap = jnp.where(mask_l, tap, jnp.zeros_like(tap))
            elif dx > 0:
                tap = jnp.where(mask_r, tap, jnp.zeros_like(tap))
            contrib = jnp.dot(tap, w2_ref[blk, j * Mp:(j + 1) * Mp, :],
                              preferred_element_type=jnp.float32)
            if j == 0:
                acc_ref[...] = contrib
            else:
                acc_ref[...] += contrib
        h = jnp.maximum(acc_ref[...] + b2_ref[blk], 0.0)         # (HW, Mp)

        # ---- conv3: 1x1 + BN + ReLU, residual add in f32 ---------------------
        h = jnp.dot(h.astype(COMPUTE_DTYPE), w3_ref[blk],
                    preferred_element_type=jnp.float32)
        o_ref[...] = jnp.maximum(h + b3_ref[blk], 0.0) + o_ref[...]


# ------------------------------ kernel wrapper -------------------------------

def dilated_blocks_forward(x_nchw, kparams, dilations):
    """x: (B, C, H, W) float32 -> (B, C, H, W), matching the PyTorch module."""
    B, C, H, W = x_nchw.shape
    nblk = len(dilations)
    Mp = kparams["w1"].shape[-1]
    dmax = max(dilations)
    HW = H * W
    # Flat-pixel halo length: >= dmax*(W+1); rounded up so the interior store
    # starts on a packed-bf16 sublane boundary.
    P = -(-(dmax * (W + 1)) // 16) * 16

    x_flat = jnp.transpose(x_nchw, (0, 2, 3, 1)).reshape(B, HW, C)

    kernel = functools.partial(_dilated_blocks_kernel, H=H, W=W, Mp=Mp, P=P,
                               dilations=tuple(dilations))

    # Explicit VMEM budget: double-buffered x/out blocks + weights + scratch,
    # with 2x headroom (clamped to physical v7x VMEM).
    bytes_blocks = 2 * 2 * HW * C * 4
    bytes_weights = 2 * (nblk * (C * Mp + 9 * Mp * Mp + Mp * C) * 2
                         + nblk * (2 * Mp + C) * 4)
    bytes_scratch = (2 * P + HW) * Mp * 2 + HW * Mp * 4
    vmem_limit = min(64 << 20,
                     max(16 << 20,
                         2 * (bytes_blocks + bytes_weights + bytes_scratch)))

    # TODO(synk): for production feature-map sizes, add a row-tile grid axis
    # (with a dmax-row halo on the pad stage) so per-step VMEM stays bounded
    # and v7x has a parallel axis even at B == 1.
    out_flat = pl.pallas_call(
        kernel,
        out_shape=jax.ShapeDtypeStruct((B, HW, C), jnp.float32),
        grid=(B,),
        in_specs=[
            pl.BlockSpec((pl.Squeezed(), HW, C), lambda b: (b, 0, 0)),
            pl.BlockSpec((nblk, C, Mp), lambda b: (0, 0, 0)),
            pl.BlockSpec((nblk, 1, Mp), lambda b: (0, 0, 0)),
            pl.BlockSpec((nblk, 9 * Mp, Mp), lambda b: (0, 0, 0)),
            pl.BlockSpec((nblk, 1, Mp), lambda b: (0, 0, 0)),
            pl.BlockSpec((nblk, Mp, C), lambda b: (0, 0, 0)),
            pl.BlockSpec((nblk, 1, C), lambda b: (0, 0, 0)),
        ],
        out_specs=pl.BlockSpec((pl.Squeezed(), HW, C), lambda b: (b, 0, 0)),
        scratch_shapes=[
            pltpu.VMEM((2 * P + HW, Mp), COMPUTE_DTYPE),  # flat padded mid act
            pltpu.VMEM((HW, Mp), jnp.float32),            # conv2 accumulator
        ],
        compiler_params=pltpu.CompilerParams(
            dimension_semantics=("parallel",),
            vmem_limit_bytes=int(vmem_limit)),
    )(x_flat, kparams["w1"], kparams["b1"], kparams["w2"], kparams["b2"],
      kparams["w3"], kparams["b3"])

    return jnp.transpose(out_flat.reshape(B, H, W, C), (0, 3, 1, 2))


# --------------------------- deterministic params ----------------------------

def _make_conv_params(key, cin, cout, k):
    kw, kb, kg, kbe, km, kv = jax.random.split(key, 6)
    fan_in = cin * k * k
    w_hwio = jax.random.normal(kw, (k, k, cin, cout), jnp.float32) / np.sqrt(fan_in)
    conv_b = 0.1 * jax.random.normal(kb, (cout,), jnp.float32)
    gamma = 1.0 + 0.1 * jax.random.normal(kg, (cout,), jnp.float32)
    beta = 0.1 * jax.random.normal(kbe, (cout,), jnp.float32)
    mean = 0.1 * jax.random.normal(km, (cout,), jnp.float32)
    var = jnp.abs(jax.random.normal(kv, (cout,), jnp.float32)) + 0.5
    scale = gamma / jnp.sqrt(var + 1e-5)             # inference-mode BN fold
    bias = (conv_b - mean) * scale + beta
    return w_hwio, scale, bias


def make_ref_params(key, cin, cmid, dilations):
    params = []
    for _ in dilations:
        key, k1, k2, k3 = jax.random.split(key, 4)
        w1, s1, b1 = _make_conv_params(k1, cin, cmid, 1)
        w2, s2, b2 = _make_conv_params(k2, cmid, cmid, 3)
        w3, s3, b3 = _make_conv_params(k3, cmid, cin, 1)
        params.append(dict(w1=w1, s1=s1, b1=b1, w2=w2, s2=s2, b2=b2,
                           w3=w3, s3=s3, b3=b3))
    return params


def fold_params_for_kernel(ref_params, cin, cmid):
    """Fold BN into the conv weights, zero-pad mid channels to a lane multiple,
    flatten the 3x3 taps and stack per-block weights for the kernel.

    Padded weight rows/cols and bias entries are exactly 0, so the padded
    channels stay 0 through ReLU and contribute nothing downstream.
    """
    mp = -(-cmid // LANE) * LANE
    w1s, b1s, w2s, b2s, w3s, b3s = [], [], [], [], [], []
    for p in ref_params:
        w1 = p["w1"].reshape(cin, cmid) * p["s1"][None, :]
        w1s.append(jnp.zeros((cin, mp), jnp.float32).at[:, :cmid].set(w1))
        b1s.append(jnp.zeros((1, mp), jnp.float32).at[:, :cmid].set(p["b1"][None, :]))

        w2 = p["w2"] * p["s2"][None, None, None, :]              # (3,3,cmid,cmid)
        w2p = jnp.zeros((3, 3, mp, mp), jnp.float32).at[:, :, :cmid, :cmid].set(w2)
        w2s.append(w2p.reshape(9 * mp, mp))
        b2s.append(jnp.zeros((1, mp), jnp.float32).at[:, :cmid].set(p["b2"][None, :]))

        w3 = p["w3"].reshape(cmid, cin) * p["s3"][None, :]
        w3s.append(jnp.zeros((mp, cin), jnp.float32).at[:cmid, :].set(w3))
        b3s.append(p["b3"].reshape(1, cin))
    return dict(w1=jnp.stack(w1s).astype(COMPUTE_DTYPE), b1=jnp.stack(b1s),
                w2=jnp.stack(w2s).astype(COMPUTE_DTYPE), b2=jnp.stack(b2s),
                w3=jnp.stack(w3s).astype(COMPUTE_DTYPE), b3=jnp.stack(b3s))


# ------------------------------ JAX reference ---------------------------------

def _ref_conv(x, w_hwio, s, b, dil, pad):
    y = jax.lax.conv_general_dilated(
        x, w_hwio, window_strides=(1, 1),
        padding=((pad, pad), (pad, pad)), rhs_dilation=(dil, dil),
        dimension_numbers=("NHWC", "HWIO", "NHWC"),
        precision=jax.lax.Precision.HIGHEST)
    y = y * s.reshape(1, 1, 1, -1) + b.reshape(1, 1, 1, -1)
    return jnp.maximum(y, 0.0)


def ref_forward(x_nchw, ref_params, dilations):
    y = jnp.transpose(x_nchw, (0, 2, 3, 1))
    for p, d in zip(ref_params, dilations):
        idn = y
        h = _ref_conv(y, p["w1"], p["s1"], p["b1"], 1, 0)
        h = _ref_conv(h, p["w2"], p["s2"], p["b2"], d, d)
        h = _ref_conv(h, p["w3"], p["s3"], p["b3"], 1, 0)
        y = h + idn
    return jnp.transpose(y, (0, 3, 1, 2))


# ----------------------------------- main -------------------------------------

if __name__ == "__main__":
    B, CIN, CMID, H, W = 2, 128, 32, 16, 16
    DILATIONS = [4, 8]

    key = jax.random.PRNGKey(0)
    kx, kp = jax.random.split(key)
    x = jax.random.normal(kx, (B, CIN, H, W), jnp.float32)   # NCHW, like PyTorch
    ref_params = make_ref_params(kp, CIN, CMID, DILATIONS)
    kparams = fold_params_for_kernel(ref_params, CIN, CMID)

    out = dilated_blocks_forward(x, kparams, DILATIONS)
    out = jax.block_until_ready(out)
    assert out.shape == (B, CIN, H, W)

    ref = jax.block_until_ready(ref_forward(x, ref_params, DILATIONS))
    np.testing.assert_allclose(np.asarray(out), np.asarray(ref),
                               rtol=2e-2, atol=2e-2)   # bf16 matmul operands

    print("KERNEL_OK")
</pallas_src>

<mosaic_0001>
module attributes {stable_mosaic.version = 11 : i64} {
  func.func @_dilated_blocks_kernel(%arg0: i32, %arg1: memref<1x256x128xf32, #tpu.memory_space<vmem>>, %arg2: memref<2x128x128xbf16, #tpu.memory_space<vmem>>, %arg3: memref<2x1x128xf32, #tpu.memory_space<vmem>>, %arg4: memref<2x1152x128xbf16, #tpu.memory_space<vmem>>, %arg5: memref<2x1x128xf32, #tpu.memory_space<vmem>>, %arg6: memref<2x128x128xbf16, #tpu.memory_space<vmem>>, %arg7: memref<2x1x128xf32, #tpu.memory_space<vmem>>, %arg8: memref<1x256x128xf32, #tpu.memory_space<vmem>>, %arg9: memref<544x128xbf16, #tpu.memory_space<vmem>>, %arg10: memref<256x128xf32, #tpu.memory_space<vmem>>) attributes {dimension_semantics = [#tpu.dimension_semantics<parallel>], iteration_bounds = array<i64: 2>, scalar_prefetch = 0 : i64, scratch_operands = 2 : i64, tpu.core_type = #tpu.core_type<tc>, window_params = [{transform_indices = @transform_0, window_bounds = array<i64: 1, 256, 128>}, {pipeline_mode = #tpu.pipeline_mode<synchronous>, transform_indices = @transform_1, window_bounds = array<i64: 2, 128, 128>}, {pipeline_mode = #tpu.pipeline_mode<synchronous>, transform_indices = @transform_2, window_bounds = array<i64: 2, 1, 128>}, {pipeline_mode = #tpu.pipeline_mode<synchronous>, transform_indices = @transform_3, window_bounds = array<i64: 2, 1152, 128>}, {pipeline_mode = #tpu.pipeline_mode<synchronous>, transform_indices = @transform_4, window_bounds = array<i64: 2, 1, 128>}, {pipeline_mode = #tpu.pipeline_mode<synchronous>, transform_indices = @transform_5, window_bounds = array<i64: 2, 128, 128>}, {pipeline_mode = #tpu.pipeline_mode<synchronous>, transform_indices = @transform_6, window_bounds = array<i64: 2, 1, 128>}, {transform_indices = @transform_7, window_bounds = array<i64: 1, 256, 128>}]} {
    %cst = arith.constant 0.000000e+00 : bf16
    %0 = vector.broadcast %cst : bf16 to vector<144x128xbf16>
    %c0 = arith.constant 0 : index
    %c0_0 = arith.constant 0 : index
    %1 = vector.load %arg9[%c0, %c0_0] : memref<544x128xbf16, #tpu.memory_space<vmem>>, vector<144x128xbf16>
    tpu.vector_store %arg9[%c0, %c0_0], %0 {strides = array<i32>} : memref<544x128xbf16, #tpu.memory_space<vmem>>, vector<144x128xbf16>,
    %c400 = arith.constant 400 : index
    %c0_1 = arith.constant 0 : index
    %2 = vector.load %arg9[%c400, %c0_1] : memref<544x128xbf16, #tpu.memory_space<vmem>>, vector<144x128xbf16>
    tpu.vector_store %arg9[%c400, %c0_1], %0 {strides = array<i32>} : memref<544x128xbf16, #tpu.memory_space<vmem>>, vector<144x128xbf16>,
    %c0_2 = arith.constant 0 : index
    %c0_3 = arith.constant 0 : index
    %c0_4 = arith.constant 0 : index
    %3 = vector.load %arg1[%c0_2, %c0_3, %c0_4] : memref<1x256x128xf32, #tpu.memory_space<vmem>>, vector<1x256x128xf32>
    %4 = vector.shape_cast %3 : vector<1x256x128xf32> to vector<256x128xf32>
    %c0_5 = arith.constant 0 : index
    %c0_6 = arith.constant 0 : index
    %c0_7 = arith.constant 0 : index
    %5 = vector.load %arg8[%c0_5, %c0_6, %c0_7] : memref<1x256x128xf32, #tpu.memory_space<vmem>>, vector<1x256x128xf32>
    %6 = vector.shape_cast %5 : vector<1x256x128xf32> to vector<256x128xf32>
    %7 = vector.shape_cast %4 : vector<256x128xf32> to vector<1x256x128xf32>
    tpu.vector_store %arg8[%c0_5, %c0_6, %c0_7], %7 {strides = array<i32>} : memref<1x256x128xf32, #tpu.memory_space<vmem>>, vector<1x256x128xf32>,
    %8 = tpu.iota {dimensions = array<i32: 0>} : vector<256x128xi32>
    %c16_i32 = arith.constant 16 : i32
    %c0_i32 = arith.constant 0 : i32
    %9 = arith.cmpi eq, %c16_i32, %c0_i32 : i32
    %c1_i32 = arith.constant 1 : i32
    %10 = arith.select %9, %c1_i32, %c16_i32 : i32
    %11 = vector.broadcast %10 : i32 to vector<256x128xi32>
    %12 = arith.remsi %8, %11 : vector<256x128xi32>
    %c0_i32_8 = arith.constant 0 : i32
    %13 = vector.broadcast %c0_i32_8 : i32 to vector<256x128xi32>
    %14 = arith.cmpi ne, %12, %13 : vector<256x128xi32>
    %c0_i32_9 = arith.constant 0 : i32
    %15 = vector.broadcast %c0_i32_9 : i32 to vector<256x128xi32>
    %16 = arith.cmpi slt, %12, %15 : vector<256x128xi32>
    %c0_i32_10 = arith.constant 0 : i32
    %17 = arith.cmpi slt, %10, %c0_i32_10 : i32
    %18 = vector.broadcast %17 : i1 to vector<256x128xi1>
    %19 = vector.broadcast %18 : vector<256x128xi1> to vector<256x128xi1>
    %20 = arith.xori %16, %19 : vector<256x128xi1>
    %21 = arith.andi %20, %14 : vector<256x128xi1>
    %22 = vector.broadcast %10 : i32 to vector<256x128xi32>
    %23 = arith.addi %12, %22 : vector<256x128xi32>
    %24 = arith.select %21, %23, %12 : vector<256x128xi1>, vector<256x128xi32>
    %c0_11 = arith.constant 0 : index
    %c0_12 = arith.constant 0 : index
    %c0_13 = arith.constant 0 : index
    %25 = vector.load %arg8[%c0_11, %c0_12, %c0_13] : memref<1x256x128xf32, #tpu.memory_space<vmem>>, vector<1x256x128xf32>
    %26 = vector.shape_cast %25 : vector<1x256x128xf32> to vector<256x128xf32>
    %27 = arith.truncf %26 : vector<256x128xf32> to vector<256x128xbf16>
    %c0_14 = arith.constant 0 : index
    %c0_15 = arith.constant 0 : index
    %c0_16 = arith.constant 0 : index
    %28 = vector.load %arg2[%c0_14, %c0_15, %c0_16] : memref<2x128x128xbf16, #tpu.memory_space<vmem>>, vector<1x128x128xbf16>
    %29 = vector.shape_cast %28 : vector<1x128x128xbf16> to vector<128x128xbf16>
    %cst_17 = arith.constant dense<0.000000e+00> : vector<256x128xf32>
    %30 = tpu.matmul %27, %29, %cst_17 {dimension_numbers = #tpu.dot_dimension_numbers<[1], [0], [0], [1], [0, 0, 1, 1], [], []>} : vector<256x128xbf16>, vector<128x128xbf16>, vector<256x128xf32> -> vector<256x128xf32>
    %c0_18 = arith.constant 0 : index
    %c0_19 = arith.constant 0 : index
    %c0_20 = arith.constant 0 : index
    %31 = vector.load %arg3[%c0_18, %c0_19, %c0_20] : memref<2x1x128xf32, #tpu.memory_space<vmem>>, vector<1x1x128xf32>
    %32 = vector.shape_cast %31 : vector<1x1x128xf32> to vector<1x128xf32>
    %33 = vector.broadcast %32 : vector<1x128xf32> to vector<256x128xf32>
    %34 = arith.addf %30, %33 : vector<256x128xf32>
    %cst_21 = arith.constant 0.000000e+00 : f32
    %35 = vector.broadcast %cst_21 : f32 to vector<256x128xf32>
    %36 = arith.maximumf %34, %35 : vector<256x128xf32>
    %37 = arith.truncf %36 : vector<256x128xf32> to vector<256x128xbf16>
    %c144 = arith.constant 144 : index
    %c0_22 = arith.constant 0 : index
    %38 = vector.load %arg9[%c144, %c0_22] : memref<544x128xbf16, #tpu.memory_space<vmem>>, vector<256x128xbf16>
    tpu.vector_store %arg9[%c144, %c0_22], %37 {strides = array<i32>} : memref<544x128xbf16, #tpu.memory_space<vmem>>, vector<256x128xbf16>,
    %c4_i32 = arith.constant 4 : i32
    %39 = vector.broadcast %c4_i32 : i32 to vector<256x128xi32>
    %40 = arith.cmpi sge, %24, %39 : vector<256x128xi32>
    %c12_i32 = arith.constant 12 : i32
    %41 = vector.broadcast %c12_i32 : i32 to vector<256x128xi32>
    %42 = arith.cmpi slt, %24, %41 : vector<256x128xi32>
    %c76 = arith.constant 76 : index
    %c0_23 = arith.constant 0 : index
    %43 = vector.load %arg9[%c76, %c0_23] : memref<544x128xbf16, #tpu.memory_space<vmem>>, vector<256x128xbf16>
    %cst_24 = arith.constant 0.000000e+00 : bf16
    %44 = vector.broadcast %cst_24 : bf16 to vector<256x128xbf16>
    %45 = arith.select %40, %43, %44 : vector<256x128xi1>, vector<256x128xbf16>
    %c0_25 = arith.constant 0 : index
    %c0_26 = arith.constant 0 : index
    %c0_27 = arith.constant 0 : index
    %46 = vector.load %arg4[%c0_25, %c0_26, %c0_27] : memref<2x1152x128xbf16, #tpu.memory_space<vmem>>, vector<1x128x128xbf16>
    %47 = vector.shape_cast %46 : vector<1x128x128xbf16> to vector<128x128xbf16>
    %cst_28 = arith.constant dense<0.000000e+00> : vector<256x128xf32>
    %48 = tpu.matmul %45, %47, %cst_28 {dimension_numbers = #tpu.dot_dimension_numbers<[1], [0], [0], [1], [0, 0, 1, 1], [], []>} : vector<256x128xbf16>, vector<128x128xbf16>, vector<256x128xf32> -> vector<256x128xf32>
    %c0_29 = arith.constant 0 : index
    %c0_30 = arith.constant 0 : index
    %49 = vector.load %arg10[%c0_29, %c0_30] : memref<256x128xf32, #tpu.memory_space<vmem>>, vector<256x128xf32>
    tpu.vector_store %arg10[%c0_29, %c0_30], %48 {strides = array<i32>} : memref<256x128xf32, #tpu.memory_space<vmem>>, vector<256x128xf32>,
    %c80 = arith.constant 80 : index
    %c0_31 = arith.constant 0 : index
    %50 = vector.load %arg9[%c80, %c0_31] : memref<544x128xbf16, #tpu.memory_space<vmem>>, vector<256x128xbf16>
    %c0_32 = arith.constant 0 : index
    %c128 = arith.constant 128 : index
    %c0_33 = arith.constant 0 : index
    %51 = vector.load %arg4[%c0_32, %c128, %c0_33] : memref<2x1152x128xbf16, #tpu.memory_space<vmem>>, vector<1x128x128xbf16>
    %52 = vector.shape_cast %51 : vector<1x128x128xbf16> to vector<128x128xbf16>
    %cst_34 = arith.constant dense<0.000000e+00> : vector<256x128xf32>
    %53 = tpu.matmul %50, %52, %cst_34 {dimension_numbers = #tpu.dot_dimension_numbers<[1], [0], [0], [1], [0, 0, 1, 1], [], []>} : vector<256x128xbf16>, vector<128x128xbf16>, vector<256x128xf32> -> vector<256x128xf32>
    %c0_35 = arith.constant 0 : index
    %c0_36 = arith.constant 0 : index
    %54 = vector.load %arg10[%c0_35, %c0_36] : memref<256x128xf32, #tpu.memory_space<vmem>>, vector<256x128xf32>
    %55 = arith.addf %54, %53 : vector<256x128xf32>
    %c0_37 = arith.constant 0 : index
    %c0_38 = arith.constant 0 : index
    %56 = vector.load %arg10[%c0_37, %c0_38] : memref<256x128xf32, #tpu.memory_space<vmem>>, vector<256x128xf32>
    tpu.vector_store %arg10[%c0_37, %c0_38], %55 {strides = array<i32>} : memref<256x128xf32, #tpu.memory_space<vmem>>, vector<256x128xf32>,
    %c84 = arith.constant 84 : index
    %c0_39 = arith.constant 0 : index
    %57 = vector.load %arg9[%c84, %c0_39] : memref<544x128xbf16, #tpu.memory_space<vmem>>, vector<256x128xbf16>
    %cst_40 = arith.constant 0.000000e+00 : bf16
    %58 = vector.broadcast %cst_40 : bf16 to vector<256x128xbf16>
    %59 = arith.select %42, %57, %58 : vector<256x128xi1>, vector<256x128xbf16>
    %c0_41 = arith.constant 0 : index
    %c256 = arith.constant 256 : index
    %c0_42 = arith.constant 0 : index
    %60 = vector.load %arg4[%c0_41, %c256, %c0_42] : memref<2x1152x128xbf16, #tpu.memory_space<vmem>>, vector<1x128x128xbf16>
    %61 = vector.shape_cast %60 : vector<1x128x128xbf16> to vector<128x128xbf16>
    %cst_43 = arith.constant dense<0.000000e+00> : vector<256x128xf32>
    %62 = tpu.matmul %59, %61, %cst_43 {dimension_numbers = #tpu.dot_dimension_numbers<[1], [0], [0], [1], [0, 0, 1, 1], [], []>} : vector<256x128xbf16>, vector<128x128xbf16>, vector<256x128xf32> -> vector<256x128xf32>
    %c0_44 = arith.constant 0 : index
    %c0_45 = arith.constant 0 : index
    %63 = vector.load %arg10[%c0_44, %c0_45] : memref<256x128xf32, #tpu.memory_space<vmem>>, vector<256x128xf32>
    %64 = arith.addf %63, %62 : vector<256x128xf32>
    %c0_46 = arith.constant 0 : index
    %c0_47 = arith.constant 0 : index
    %65 = vector.load %arg10[%c0_46, %c0_47] : memref<256x128xf32, #tpu.memory_space<vmem>>, vector<256x128xf32>
    tpu.vector_store %arg10[%c0_46, %c0_47], %64 {strides = array<i32>} : memref<256x128xf32, #tpu.memory_space<vmem>>, vector<256x128xf32>,
    %c140 = arith.constant 140 : index
    %c0_48 = arith.constant 0 : index
    %66 = vector.load %arg9[%c140, %c0_48] : memref<544x128xbf16, #tpu.memory_space<vmem>>, vector<256x128xbf16>
    %cst_49 = arith.constant 0.000000e+00 : bf16
    %67 = vector.broadcast %cst_49 : bf16 to vector<256x128xbf16>
    %68 = arith.select %40, %66, %67 : vector<256x128xi1>, vector<256x128xbf16>
    %c0_50 = arith.constant 0 : index
    %c384 = arith.constant 384 : index
    %c0_51 = arith.constant 0 : index
    %69 = vector.load %arg4[%c0_50, %c384, %c0_51] : memref<2x1152x128xbf16, #tpu.memory_space<vmem>>, vector<1x128x128xbf16>
    %70 = vector.shape_cast %69 : vector<1x128x128xbf16> to vector<128x128xbf16>
    %cst_52 = arith.constant dense<0.000000e+00> : vector<256x128xf32>
    %71 = tpu.matmul %68, %70, %cst_52 {dimension_numbers = #tpu.dot_dimension_numbers<[1], [0], [0], [1], [0, 0, 1, 1], [], []>} : vector<256x128xbf16>, vector<128x128xbf16>, vector<256x128xf32> -> vector<256x128xf32>
    %c0_53 = arith.constant 0 : index
    %c0_54 = arith.constant 0 : index
    %72 = vector.load %arg10[%c0_53, %c0_54] : memref<256x128xf32, #tpu.memory_space<vmem>>, vector<256x128xf32>
    %73 = arith.addf %72, %71 : vector<256x128xf32>
    %c0_55 = arith.constant 0 : index
    %c0_56 = arith.constant 0 : index
    %74 = vector.load %arg10[%c0_55, %c0_56] : memref<256x128xf32, #tpu.memory_space<vmem>>, vector<256x128xf32>
    tpu.vector_store %arg10[%c0_55, %c0_56], %73 {strides = array<i32>} : memref<256x128xf32, #tpu.memory_space<vmem>>, vector<256x128xf32>,
    %c144_57 = arith.constant 144 : index
    %c0_58 = arith.constant 0 : index
    %75 = vector.load %arg9[%c144_57, %c0_58] : memref<544x128xbf16, #tpu.memory_space<vmem>>, vector<256x128xbf16>
    %c0_59 = arith.constant 0 : index
    %c512 = arith.constant 512 : index
    %c0_60 = arith.constant 0 : index
    %76 = vector.load %arg4[%c0_59, %c512, %c0_60] : memref<2x1152x128xbf16, #tpu.memory_space<vmem>>, vector<1x128x128xbf16>
    %77 = vector.shape_cast %76 : vector<1x128x128xbf16> to vector<128x128xbf16>
    %cst_61 = arith.constant dense<0.000000e+00> : vector<256x128xf32>
    %78 = tpu.matmul %75, %77, %cst_61 {dimension_numbers = #tpu.dot_dimension_numbers<[1], [0], [0], [1], [0, 0, 1, 1], [], []>} : vector<256x128xbf16>, vector<128x128xbf16>, vector<256x128xf32> -> vector<256x128xf32>
    %c0_62 = arith.constant 0 : index
    %c0_63 = arith.constant 0 : index
    %79 = vector.load %arg10[%c0_62, %c0_63] : memref<256x128xf32, #tpu.memory_space<vmem>>, vector<256x128xf32>
    %80 = arith.addf %79, %78 : vector<256x128xf32>
    %c0_64 = arith.constant 0 : index
    %c0_65 = arith.constant 0 : index
    %81 = vector.load %arg10[%c0_64, %c0_65] : memref<256x128xf32, #tpu.memory_space<vmem>>, vector<256x128xf32>
    tpu.vector_store %arg10[%c0_64, %c0_65], %80 {strides = array<i32>} : memref<256x128xf32, #tpu.memory_space<vmem>>, vector<256x128xf32>,
    %c148 = arith.constant 148 : index
    %c0_66 = arith.constant 0 : index
    %82 = vector.load %arg9[%c148, %c0_66] : memref<544x128xbf16, #tpu.memory_space<vmem>>, vector<256x128xbf16>
    %cst_67 = arith.constant 0.000000e+00 : bf16
    %83 = vector.broadcast %cst_67 : bf16 to vector<256x128xbf16>
    %84 = arith.select %42, %82, %83 : vector<256x128xi1>, vector<256x128xbf16>
    %c0_68 = arith.constant 0 : index
    %c640 = arith.constant 640 : index
    %c0_69 = arith.constant 0 : index
    %85 = vector.load %arg4[%c0_68, %c640, %c0_69] : memref<2x1152x128xbf16, #tpu.memory_space<vmem>>, vector<1x128x128xbf16>
    %86 = vector.shape_cast %85 : vector<1x128x128xbf16> to vector<128x128xbf16>
    %cst_70 = arith.constant dense<0.000000e+00> : vector<256x128xf32>
    %87 = tpu.matmul %84, %86, %cst_70 {dimension_numbers = #tpu.dot_dimension_numbers<[1], [0], [0], [1], [0, 0, 1, 1], [], []>} : vector<256x128xbf16>, vector<128x128xbf16>, vector<256x128xf32> -> vector<256x128xf32>
    %c0_71 = arith.constant 0 : index
    %c0_72 = arith.constant 0 : index
    %88 = vector.load %arg10[%c0_71, %c0_72] : memref<256x128xf32, #tpu.memory_space<vmem>>, vector<256x128xf32>
    %89 = arith.addf %88, %87 : vector<256x128xf32>
    %c0_73 = arith.constant 0 : index
    %c0_74 = arith.constant 0 : index
    %90 = vector.load %arg10[%c0_73, %c0_74] : memref<256x128xf32, #tpu.memory_space<vmem>>, vector<256x128xf32>
    tpu.vector_store %arg10[%c0_73, %c0_74], %89 {strides = array<i32>} : memref<256x128xf32, #tpu.memory_space<vmem>>, vector<256x128xf32>,
    %c204 = arith.constant 204 : index
    %c0_75 = arith.constant 0 : index
    %91 = vector.load %arg9[%c204, %c0_75] : memref<544x128xbf16, #tpu.memory_space<vmem>>, vector<256x128xbf16>
    %cst_76 = arith.constant 0.000000e+00 : bf16
    %92 = vector.broadcast %cst_76 : bf16 to vector<256x128xbf16>
    %93 = arith.select %40, %91, %92 : vector<256x128xi1>, vector<256x128xbf16>
    %c0_77 = arith.constant 0 : index
    %c768 = arith.constant 768 : index
    %c0_78 = arith.constant 0 : index
    %94 = vector.load %arg4[%c0_77, %c768, %c0_78] : memref<2x1152x128xbf16, #tpu.memory_space<vmem>>, vector<1x128x128xbf16>
    %95 = vector.shape_cast %94 : vector<1x128x128xbf16> to vector<128x128xbf16>
    %cst_79 = arith.constant dense<0.000000e+00> : vector<256x128xf32>
    %96 = tpu.matmul %93, %95, %cst_79 {dimension_numbers = #tpu.dot_dimension_numbers<[1], [0], [0], [1], [0, 0, 1, 1], [], []>} : vector<256x128xbf16>, vector<128x128xbf16>, vector<256x128xf32> -> vector<256x128xf32>
    %c0_80 = arith.constant 0 : index
    %c0_81 = arith.constant 0 : index
    %97 = vector.load %arg10[%c0_80, %c0_81] : memref<256x128xf32, #tpu.memory_space<vmem>>, vector<256x128xf32>
    %98 = arith.addf %97, %96 : vector<256x128xf32>
    %c0_82 = arith.constant 0 : index
    %c0_83 = arith.constant 0 : index
    %99 = vector.load %arg10[%c0_82, %c0_83] : memref<256x128xf32, #tpu.memory_space<vmem>>, vector<256x128xf32>
    tpu.vector_store %arg10[%c0_82, %c0_83], %98 {strides = array<i32>} : memref<256x128xf32, #tpu.memory_space<vmem>>, vector<256x128xf32>,
    %c208 = arith.constant 208 : index
    %c0_84 = arith.constant 0 : index
    %100 = vector.load %arg9[%c208, %c0_84] : memref<544x128xbf16, #tpu.memory_space<vmem>>, vector<256x128xbf16>
    %c0_85 = arith.constant 0 : index
    %c896 = arith.constant 896 : index
    %c0_86 = arith.constant 0 : index
    %101 = vector.load %arg4[%c0_85, %c896, %c0_86] : memref<2x1152x128xbf16, #tpu.memory_space<vmem>>, vector<1x128x128xbf16>
    %102 = vector.shape_cast %101 : vector<1x128x128xbf16> to vector<128x128xbf16>
    %cst_87 = arith.constant dense<0.000000e+00> : vector<256x128xf32>
    %103 = tpu.matmul %100, %102, %cst_87 {dimension_numbers = #tpu.dot_dimension_numbers<[1], [0], [0], [1], [0, 0, 1, 1], [], []>} : vector<256x128xbf16>, vector<128x128xbf16>, vector<256x128xf32> -> vector<256x128xf32>
    %c0_88 = arith.constant 0 : index
    %c0_89 = arith.constant 0 : index
    %104 = vector.load %arg10[%c0_88, %c0_89] : memref<256x128xf32, #tpu.memory_space<vmem>>, vector<256x128xf32>
    %105 = arith.addf %104, %103 : vector<256x128xf32>
    %c0_90 = arith.constant 0 : index
    %c0_91 = arith.constant 0 : index
    %106 = vector.load %arg10[%c0_90, %c0_91] : memref<256x128xf32, #tpu.memory_space<vmem>>, vector<256x128xf32>
    tpu.vector_store %arg10[%c0_90, %c0_91], %105 {strides = array<i32>} : memref<256x128xf32, #tpu.memory_space<vmem>>, vector<256x128xf32>,
    %c212 = arith.constant 212 : index
    %c0_92 = arith.constant 0 : index
    %107 = vector.load %arg9[%c212, %c0_92] : memref<544x128xbf16, #tpu.memory_space<vmem>>, vector<256x128xbf16>
    %cst_93 = arith.constant 0.000000e+00 : bf16
    %108 = vector.broadcast %cst_93 : bf16 to vector<256x128xbf16>
    %109 = arith.select %42, %107, %108 : vector<256x128xi1>, vector<256x128xbf16>
    %c0_94 = arith.constant 0 : index
    %c1024 = arith.constant 1024 : index
    %c0_95 = arith.constant 0 : index
    %110 = vector.load %arg4[%c0_94, %c1024, %c0_95] : memref<2x1152x128xbf16, #tpu.memory_space<vmem>>, vector<1x128x128xbf16>
    %111 = vector.shape_cast %110 : vector<1x128x128xbf16> to vector<128x128xbf16>
    %cst_96 = arith.constant dense<0.000000e+00> : vector<256x128xf32>
    %112 = tpu.matmul %109, %111, %cst_96 {dimension_numbers = #tpu.dot_dimension_numbers<[1], [0], [0], [1], [0, 0, 1, 1], [], []>} : vector<256x128xbf16>, vector<128x128xbf16>, vector<256x128xf32> -> vector<256x128xf32>
    %c0_97 = arith.constant 0 : index
    %c0_98 = arith.constant 0 : index
    %113 = vector.load %arg10[%c0_97, %c0_98] : memref<256x128xf32, #tpu.memory_space<vmem>>, vector<256x128xf32>
    %114 = arith.addf %113, %112 : vector<256x128xf32>
    %c0_99 = arith.constant 0 : index
    %c0_100 = arith.constant 0 : index
    %115 = vector.load %arg10[%c0_99, %c0_100] : memref<256x128xf32, #tpu.memory_space<vmem>>, vector<256x128xf32>
    tpu.vector_store %arg10[%c0_99, %c0_100], %114 {strides = array<i32>} : memref<256x128xf32, #tpu.memory_space<vmem>>, vector<256x128xf32>,
    %c0_101 = arith.constant 0 : index
    %c0_102 = arith.constant 0 : index
    %116 = vector.load %arg10[%c0_101, %c0_102] : memref<256x128xf32, #tpu.memory_space<vmem>>, vector<256x128xf32>
    %c0_103 = arith.constant 0 : index
    %c0_104 = arith.constant 0 : index
    %c0_105 = arith.constant 0 : index
    %117 = vector.load %arg5[%c0_103, %c0_104, %c0_105] : memref<2x1x128xf32, #tpu.memory_space<vmem>>, vector<1x1x128xf32>
    %118 = vector.shape_cast %117 : vector<1x1x128xf32> to vector<1x128xf32>
    %119 = vector.broadcast %118 : vector<1x128xf32> to vector<256x128xf32>
    %120 = arith.addf %116, %119 : vector<256x128xf32>
    %cst_106 = arith.constant 0.000000e+00 : f32
    %121 = vector.broadcast %cst_106 : f32 to vector<256x128xf32>
    %122 = arith.maximumf %120, %121 : vector<256x128xf32>
    %123 = arith.truncf %122 : vector<256x128xf32> to vector<256x128xbf16>
    %c0_107 = arith.constant 0 : index
    %c0_108 = arith.constant 0 : index
    %c0_109 = arith.constant 0 : index
    %124 = vector.load %arg6[%c0_107, %c0_108, %c0_109] : memref<2x128x128xbf16, #tpu.memory_space<vmem>>, vector<1x128x128xbf16>
    %125 = vector.shape_cast %124 : vector<1x128x128xbf16> to vector<128x128xbf16>
    %cst_110 = arith.constant dense<0.000000e+00> : vector<256x128xf32>
    %126 = tpu.matmul %123, %125, %cst_110 {dimension_numbers = #tpu.dot_dimension_numbers<[1], [0], [0], [1], [0, 0, 1, 1], [], []>} : vector<256x128xbf16>, vector<128x128xbf16>, vector<256x128xf32> -> vector<256x128xf32>
    %c0_111 = arith.constant 0 : index
    %c0_112 = arith.constant 0 : index
    %c0_113 = arith.constant 0 : index
    %127 = vector.load %arg7[%c0_111, %c0_112, %c0_113] : memref<2x1x128xf32, #tpu.memory_space<vmem>>, vector<1x1x128xf32>
    %128 = vector.shape_cast %127 : vector<1x1x128xf32> to vector<1x128xf32>
    %129 = vector.broadcast %128 : vector<1x128xf32> to vector<256x128xf32>
    %130 = arith.addf %126, %129 : vector<256x128xf32>
    %cst_114 = arith.constant 0.000000e+00 : f32
    %131 = vector.broadcast %cst_114 : f32 to vector<256x128xf32>
    %132 = arith.maximumf %130, %131 : vector<256x128xf32>
    %c0_115 = arith.constant 0 : index
    %c0_116 = arith.constant 0 : index
    %c0_117 = arith.constant 0 : index
    %133 = vector.load %arg8[%c0_115, %c0_116, %c0_117] : memref<1x256x128xf32, #tpu.memory_space<vmem>>, vector<1x256x128xf32>
    %134 = vector.shape_cast %133 : vector<1x256x128xf32> to vector<256x128xf32>
    %135 = arith.addf %132, %134 : vector<256x128xf32>
    %c0_118 = arith.constant 0 : index
    %c0_119 = arith.constant 0 : index
    %c0_120 = arith.constant 0 : index
    %136 = vector.load %arg8[%c0_118, %c0_119, %c0_120] : memref<1x256x128xf32, #tpu.memory_space<vmem>>, vector<1x256x128xf32>
    %137 = vector.shape_cast %136 : vector<1x256x128xf32> to vector<256x128xf32>
    %138 = vector.shape_cast %135 : vector<256x128xf32> to vector<1x256x128xf32>
    tpu.vector_store %arg8[%c0_118, %c0_119, %c0_120], %138 {strides = array<i32>} : memref<1x256x128xf32, #tpu.memory_space<vmem>>, vector<1x256x128xf32>,
    %c0_121 = arith.constant 0 : index
    %c0_122 = arith.constant 0 : index
    %c0_123 = arith.constant 0 : index
    %139 = vector.load %arg8[%c0_121, %c0_122, %c0_123] : memref<1x256x128xf32, #tpu.memory_space<vmem>>, vector<1x256x128xf32>
    %140 = vector.shape_cast %139 : vector<1x256x128xf32> to vector<256x128xf32>
    %141 = arith.truncf %140 : vector<256x128xf32> to vector<256x128xbf16>
    %c1 = arith.constant 1 : index
    %c0_124 = arith.constant 0 : index
    %c0_125 = arith.constant 0 : index
    %142 = vector.load %arg2[%c1, %c0_124, %c0_125] : memref<2x128x128xbf16, #tpu.memory_space<vmem>>, vector<1x128x128xbf16>
    %143 = vector.shape_cast %142 : vector<1x128x128xbf16> to vector<128x128xbf16>
    %cst_126 = arith.constant dense<0.000000e+00> : vector<256x128xf32>
    %144 = tpu.matmul %141, %143, %cst_126 {dimension_numbers = #tpu.dot_dimension_numbers<[1], [0], [0], [1], [0, 0, 1, 1], [], []>} : vector<256x128xbf16>, vector<128x128xbf16>, vector<256x128xf32> -> vector<256x128xf32>
    %c1_127 = arith.constant 1 : index
    %c0_128 = arith.constant 0 : index
    %c0_129 = arith.constant 0 : index
    %145 = vector.load %arg3[%c1_127, %c0_128, %c0_129] : memref<2x1x128xf32, #tpu.memory_space<vmem>>, vector<1x1x128xf32>
    %146 = vector.shape_cast %145 : vector<1x1x128xf32> to vector<1x128xf32>
    %147 = vector.broadcast %146 : vector<1x128xf32> to vector<256x128xf32>
    %148 = arith.addf %144, %147 : vector<256x128xf32>
    %cst_130 = arith.constant 0.000000e+00 : f32
    %149 = vector.broadcast %cst_130 : f32 to vector<256x128xf32>
    %150 = arith.maximumf %148, %149 : vector<256x128xf32>
    %151 = arith.truncf %150 : vector<256x128xf32> to vector<256x128xbf16>
    %c144_131 = arith.constant 144 : index
    %c0_132 = arith.constant 0 : index
    %152 = vector.load %arg9[%c144_131, %c0_132] : memref<544x128xbf16, #tpu.memory_space<vmem>>, vector<256x128xbf16>
    tpu.vector_store %arg9[%c144_131, %c0_132], %151 {strides = array<i32>} : memref<544x128xbf16, #tpu.memory_space<vmem>>, vector<256x128xbf16>,
    %c8_i32 = arith.constant 8 : i32
    %153 = vector.broadcast %c8_i32 : i32 to vector<256x128xi32>
    %154 = arith.cmpi sge, %24, %153 : vector<256x128xi32>
    %c8_i32_133 = arith.constant 8 : i32
    %155 = vector.broadcast %c8_i32_133 : i32 to vector<256x128xi32>
    %156 = arith.cmpi slt, %24, %155 : vector<256x128xi32>
    %c8 = arith.constant 8 : index
    %c0_134 = arith.constant 0 : index
    %157 = vector.load %arg9[%c8, %c0_134] : memref<544x128xbf16, #tpu.memory_space<vmem>>, vector<256x128xbf16>
    %cst_135 = arith.constant 0.000000e+00 : bf16
    %158 = vector.broadcast %cst_135 : bf16 to vector<256x128xbf16>
    %159 = arith.select %154, %157, %158 : vector<256x128xi1>, vector<256x128xbf16>
    %c1_136 = arith.constant 1 : index
    %c0_137 = arith.constant 0 : index
    %c0_138 = arith.constant 0 : index
    %160 = vector.load %arg4[%c1_136, %c0_137, %c0_138] : memref<2x1152x128xbf16, #tpu.memory_space<vmem>>, vector<1x128x128xbf16>
    %161 = vector.shape_cast %160 : vector<1x128x128xbf16> to vector<128x128xbf16>
    %cst_139 = arith.constant dense<0.000000e+00> : vector<256x128xf32>
    %162 = tpu.matmul %159, %161, %cst_139 {dimension_numbers = #tpu.dot_dimension_numbers<[1], [0], [0], [1], [0, 0, 1, 1], [], []>} : vector<256x128xbf16>, vector<128x128xbf16>, vector<256x128xf32> -> vector<256x128xf32>
    %c0_140 = arith.constant 0 : index
    %c0_141 = arith.constant 0 : index
    %163 = vector.load %arg10[%c0_140, %c0_141] : memref<256x128xf32, #tpu.memory_space<vmem>>, vector<256x128xf32>
    tpu.vector_store %arg10[%c0_140, %c0_141], %162 {strides = array<i32>} : memref<256x128xf32, #tpu.memory_space<vmem>>, vector<256x128xf32>,
    %c16 = arith.constant 16 : index
    %c0_142 = arith.constant 0 : index
    %164 = vector.load %arg9[%c16, %c0_142] : memref<544x128xbf16, #tpu.memory_space<vmem>>, vector<256x128xbf16>
    %c1_143 = arith.constant 1 : index
    %c128_144 = arith.constant 128 : index
    %c0_145 = arith.constant 0 : index
    %165 = vector.load %arg4[%c1_143, %c128_144, %c0_145] : memref<2x1152x128xbf16, #tpu.memory_space<vmem>>, vector<1x128x128xbf16>
    %166 = vector.shape_cast %165 : vector<1x128x128xbf16> to vector<128x128xbf16>
    %cst_146 = arith.constant dense<0.000000e+00> : vector<256x128xf32>
    %167 = tpu.matmul %164, %166, %cst_146 {dimension_numbers = #tpu.dot_dimension_numbers<[1], [0], [0], [1], [0, 0, 1, 1], [], []>} : vector<256x128xbf16>, vector<128x128xbf16>, vector<256x128xf32> -> vector<256x128xf32>
    %c0_147 = arith.constant 0 : index
    %c0_148 = arith.constant 0 : index
    %168 = vector.load %arg10[%c0_147, %c0_148] : memref<256x128xf32, #tpu.memory_space<vmem>>, vector<256x128xf32>
    %169 = arith.addf %168, %167 : vector<256x128xf32>
    %c0_149 = arith.constant 0 : index
    %c0_150 = arith.constant 0 : index
    %170 = vector.load %arg10[%c0_149, %c0_150] : memref<256x128xf32, #tpu.memory_space<vmem>>, vector<256x128xf32>
    tpu.vector_store %arg10[%c0_149, %c0_150], %169 {strides = array<i32>} : memref<256x128xf32, #tpu.memory_space<vmem>>, vector<256x128xf32>,
    %c24 = arith.constant 24 : index
    %c0_151 = arith.constant 0 : index
    %171 = vector.load %arg9[%c24, %c0_151] : memref<544x128xbf16, #tpu.memory_space<vmem>>, vector<256x128xbf16>
    %cst_152 = arith.constant 0.000000e+00 : bf16
    %172 = vector.broadcast %cst_152 : bf16 to vector<256x128xbf16>
    %173 = arith.select %156, %171, %172 : vector<256x128xi1>, vector<256x128xbf16>
    %c1_153 = arith.constant 1 : index
    %c256_154 = arith.constant 256 : index
    %c0_155 = arith.constant 0 : index
    %174 = vector.load %arg4[%c1_153, %c256_154, %c0_155] : memref<2x1152x128xbf16, #tpu.memory_space<vmem>>, vector<1x128x128xbf16>
    %175 = vector.shape_cast %174 : vector<1x128x128xbf16> to vector<128x128xbf16>
    %cst_156 = arith.constant dense<0.000000e+00> : vector<256x128xf32>
    %176 = tpu.matmul %173, %175, %cst_156 {dimension_numbers = #tpu.dot_dimension_numbers<[1], [0], [0], [1], [0, 0, 1, 1], [], []>} : vector<256x128xbf16>, vector<128x128xbf16>, vector<256x128xf32> -> vector<256x128xf32>
    %c0_157 = arith.constant 0 : index
    %c0_158 = arith.constant 0 : index
    %177 = vector.load %arg10[%c0_157, %c0_158] : memref<256x128xf32, #tpu.memory_space<vmem>>, vector<256x128xf32>
    %178 = arith.addf %177, %176 : vector<256x128xf32>
    %c0_159 = arith.constant 0 : index
    %c0_160 = arith.constant 0 : index
    %179 = vector.load %arg10[%c0_159, %c0_160] : memref<256x128xf32, #tpu.memory_space<vmem>>, vector<256x128xf32>
    tpu.vector_store %arg10[%c0_159, %c0_160], %178 {strides = array<i32>} : memref<256x128xf32, #tpu.memory_space<vmem>>, vector<256x128xf32>,
    %c136 = arith.constant 136 : index
    %c0_161 = arith.constant 0 : index
    %180 = vector.load %arg9[%c136, %c0_161] : memref<544x128xbf16, #tpu.memory_space<vmem>>, vector<256x128xbf16>
    %cst_162 = arith.constant 0.000000e+00 : bf16
    %181 = vector.broadcast %cst_162 : bf16 to vector<256x128xbf16>
    %182 = arith.select %154, %180, %181 : vector<256x128xi1>, vector<256x128xbf16>
    %c1_163 = arith.constant 1 : index
    %c384_164 = arith.constant 384 : index
    %c0_165 = arith.constant 0 : index
    %183 = vector.load %arg4[%c1_163, %c384_164, %c0_165] : memref<2x1152x128xbf16, #tpu.memory_space<vmem>>, vector<1x128x128xbf16>
    %184 = vector.shape_cast %183 : vector<1x128x128xbf16> to vector<128x128xbf16>
    %cst_166 = arith.constant dense<0.000000e+00> : vector<256x128xf32>
    %185 = tpu.matmul %182, %184, %cst_166 {dimension_numbers = #tpu.dot_dimension_numbers<[1], [0], [0], [1], [0, 0, 1, 1], [], []>} : vector<256x128xbf16>, vector<128x128xbf16>, vector<256x128xf32> -> vector<256x128xf32>
    %c0_167 = arith.constant 0 : index
    %c0_168 = arith.constant 0 : index
    %186 = vector.load %arg10[%c0_167, %c0_168] : memref<256x128xf32, #tpu.memory_space<vmem>>, vector<256x128xf32>
    %187 = arith.addf %186, %185 : vector<256x128xf32>
    %c0_169 = arith.constant 0 : index
    %c0_170 = arith.constant 0 : index
    %188 = vector.load %arg10[%c0_169, %c0_170] : memref<256x128xf32, #tpu.memory_space<vmem>>, vector<256x128xf32>
    tpu.vector_store %arg10[%c0_169, %c0_170], %187 {strides = array<i32>} : memref<256x128xf32, #tpu.memory_space<vmem>>, vector<256x128xf32>,
    %c144_171 = arith.constant 144 : index
    %c0_172 = arith.constant 0 : index
    %189 = vector.load %arg9[%c144_171, %c0_172] : memref<544x128xbf16, #tpu.memory_space<vmem>>, vector<256x128xbf16>
    %c1_173 = arith.constant 1 : index
    %c512_174 = arith.constant 512 : index
    %c0_175 = arith.constant 0 : index
    %190 = vector.load %arg4[%c1_173, %c512_174, %c0_175] : memref<2x1152x128xbf16, #tpu.memory_space<vmem>>, vector<1x128x128xbf16>
    %191 = vector.shape_cast %190 : vector<1x128x128xbf16> to vector<128x128xbf16>
    %cst_176 = arith.constant dense<0.000000e+00> : vector<256x128xf32>
    %192 = tpu.matmul %189, %191, %cst_176 {dimension_numbers = #tpu.dot_dimension_numbers<[1], [0], [0], [1], [0, 0, 1, 1], [], []>} : vector<256x128xbf16>, vector<128x128xbf16>, vector<256x128xf32> -> vector<256x128xf32>
    %c0_177 = arith.constant 0 : index
    %c0_178 = arith.constant 0 : index
    %193 = vector.load %arg10[%c0_177, %c0_178] : memref<256x128xf32, #tpu.memory_space<vmem>>, vector<256x128xf32>
    %194 = arith.addf %193, %192 : vector<256x128xf32>
    %c0_179 = arith.constant 0 : index
    %c0_180 = arith.constant 0 : index
    %195 = vector.load %arg10[%c0_179, %c0_180] : memref<256x128xf32, #tpu.memory_space<vmem>>, vector<256x128xf32>
    tpu.vector_store %arg10[%c0_179, %c0_180], %194 {strides = array<i32>} : memref<256x128xf32, #tpu.memory_space<vmem>>, vector<256x128xf32>,
    %c152 = arith.constant 152 : index
    %c0_181 = arith.constant 0 : index
    %196 = vector.load %arg9[%c152, %c0_181] : memref<544x128xbf16, #tpu.memory_space<vmem>>, vector<256x128xbf16>
    %cst_182 = arith.constant 0.000000e+00 : bf16
    %197 = vector.broadcast %cst_182 : bf16 to vector<256x128xbf16>
    %198 = arith.select %156, %196, %197 : vector<256x128xi1>, vector<256x128xbf16>
    %c1_183 = arith.constant 1 : index
    %c640_184 = arith.constant 640 : index
    %c0_185 = arith.constant 0 : index
    %199 = vector.load %arg4[%c1_183, %c640_184, %c0_185] : memref<2x1152x128xbf16, #tpu.memory_space<vmem>>, vector<1x128x128xbf16>
    %200 = vector.shape_cast %199 : vector<1x128x128xbf16> to vector<128x128xbf16>
    %cst_186 = arith.constant dense<0.000000e+00> : vector<256x128xf32>
    %201 = tpu.matmul %198, %200, %cst_186 {dimension_numbers = #tpu.dot_dimension_numbers<[1], [0], [0], [1], [0, 0, 1, 1], [], []>} : vector<256x128xbf16>, vector<128x128xbf16>, vector<256x128xf32> -> vector<256x128xf32>
    %c0_187 = arith.constant 0 : index
    %c0_188 = arith.constant 0 : index
    %202 = vector.load %arg10[%c0_187, %c0_188] : memref<256x128xf32, #tpu.memory_space<vmem>>, vector<256x128xf32>
    %203 = arith.addf %202, %201 : vector<256x128xf32>
    %c0_189 = arith.constant 0 : index
    %c0_190 = arith.constant 0 : index
    %204 = vector.load %arg10[%c0_189, %c0_190] : memref<256x128xf32, #tpu.memory_space<vmem>>, vector<256x128xf32>
    tpu.vector_store %arg10[%c0_189, %c0_190], %203 {strides = array<i32>} : memref<256x128xf32, #tpu.memory_space<vmem>>, vector<256x128xf32>,
    %c264 = arith.constant 264 : index
    %c0_191 = arith.constant 0 : index
    %205 = vector.load %arg9[%c264, %c0_191] : memref<544x128xbf16, #tpu.memory_space<vmem>>, vector<256x128xbf16>
    %cst_192 = arith.constant 0.000000e+00 : bf16
    %206 = vector.broadcast %cst_192 : bf16 to vector<256x128xbf16>
    %207 = arith.select %154, %205, %206 : vector<256x128xi1>, vector<256x128xbf16>
    %c1_193 = arith.constant 1 : index
    %c768_194 = arith.constant 768 : index
    %c0_195 = arith.constant 0 : index
    %208 = vector.load %arg4[%c1_193, %c768_194, %c0_195] : memref<2x1152x128xbf16, #tpu.memory_space<vmem>>, vector<1x128x128xbf16>
    %209 = vector.shape_cast %208 : vector<1x128x128xbf16> to vector<128x128xbf16>
    %cst_196 = arith.constant dense<0.000000e+00> : vector<256x128xf32>
    %210 = tpu.matmul %207, %209, %cst_196 {dimension_numbers = #tpu.dot_dimension_numbers<[1], [0], [0], [1], [0, 0, 1, 1], [], []>} : vector<256x128xbf16>, vector<128x128xbf16>, vector<256x128xf32> -> vector<256x128xf32>
    %c0_197 = arith.constant 0 : index
    %c0_198 = arith.constant 0 : index
    %211 = vector.load %arg10[%c0_197, %c0_198] : memref<256x128xf32, #tpu.memory_space<vmem>>, vector<256x128xf32>
    %212 = arith.addf %211, %210 : vector<256x128xf32>
    %c0_199 = arith.constant 0 : index
    %c0_200 = arith.constant 0 : index
    %213 = vector.load %arg10[%c0_199, %c0_200] : memref<256x128xf32, #tpu.memory_space<vmem>>, vector<256x128xf32>
    tpu.vector_store %arg10[%c0_199, %c0_200], %212 {strides = array<i32>} : memref<256x128xf32, #tpu.memory_space<vmem>>, vector<256x128xf32>,
    %c272 = arith.constant 272 : index
    %c0_201 = arith.constant 0 : index
    %214 = vector.load %arg9[%c272, %c0_201] : memref<544x128xbf16, #tpu.memory_space<vmem>>, vector<256x128xbf16>
    %c1_202 = arith.constant 1 : index
    %c896_203 = arith.constant 896 : index
    %c0_204 = arith.constant 0 : index
    %215 = vector.load %arg4[%c1_202, %c896_203, %c0_204] : memref<2x1152x128xbf16, #tpu.memory_space<vmem>>, vector<1x128x128xbf16>
    %216 = vector.shape_cast %215 : vector<1x128x128xbf16> to vector<128x128xbf16>
    %cst_205 = arith.constant dense<0.000000e+00> : vector<256x128xf32>
    %217 = tpu.matmul %214, %216, %cst_205 {dimension_numbers = #tpu.dot_dimension_numbers<[1], [0], [0], [1], [0, 0, 1, 1], [], []>} : vector<256x128xbf16>, vector<128x128xbf16>, vector<256x128xf32> -> vector<256x128xf32>
    %c0_206 = arith.constant 0 : index
    %c0_207 = arith.constant 0 : index
    %218 = vector.load %arg10[%c0_206, %c0_207] : memref<256x128xf32, #tpu.memory_space<vmem>>, vector<256x128xf32>
    %219 = arith.addf %218, %217 : vector<256x128xf32>
    %c0_208 = arith.constant 0 : index
    %c0_209 = arith.constant 0 : index
    %220 = vector.load %arg10[%c0_208, %c0_209] : memref<256x128xf32, #tpu.memory_space<vmem>>, vector<256x128xf32>
    tpu.vector_store %arg10[%c0_208, %c0_209], %219 {strides = array<i32>} : memref<256x128xf32, #tpu.memory_space<vmem>>, vector<256x128xf32>,
    %c280 = arith.constant 280 : index
    %c0_210 = arith.constant 0 : index
    %221 = vector.load %arg9[%c280, %c0_210] : memref<544x128xbf16, #tpu.memory_space<vmem>>, vector<256x128xbf16>
    %cst_211 = arith.constant 0.000000e+00 : bf16
    %222 = vector.broadcast %cst_211 : bf16 to vector<256x128xbf16>
    %223 = arith.select %156, %221, %222 : vector<256x128xi1>, vector<256x128xbf16>
    %c1_212 = arith.constant 1 : index
    %c1024_213 = arith.constant 1024 : index
    %c0_214 = arith.constant 0 : index
    %224 = vector.load %arg4[%c1_212, %c1024_213, %c0_214] : memref<2x1152x128xbf16, #tpu.memory_space<vmem>>, vector<1x128x128xbf16>
    %225 = vector.shape_cast %224 : vector<1x128x128xbf16> to vector<128x128xbf16>
    %cst_215 = arith.constant dense<0.000000e+00> : vector<256x128xf32>
    %226 = tpu.matmul %223, %225, %cst_215 {dimension_numbers = #tpu.dot_dimension_numbers<[1], [0], [0], [1], [0, 0, 1, 1], [], []>} : vector<256x128xbf16>, vector<128x128xbf16>, vector<256x128xf32> -> vector<256x128xf32>
    %c0_216 = arith.constant 0 : index
    %c0_217 = arith.constant 0 : index
    %227 = vector.load %arg10[%c0_216, %c0_217] : memref<256x128xf32, #tpu.memory_space<vmem>>, vector<256x128xf32>
    %228 = arith.addf %227, %226 : vector<256x128xf32>
    %c0_218 = arith.constant 0 : index
    %c0_219 = arith.constant 0 : index
    %229 = vector.load %arg10[%c0_218, %c0_219] : memref<256x128xf32, #tpu.memory_space<vmem>>, vector<256x128xf32>
    tpu.vector_store %arg10[%c0_218, %c0_219], %228 {strides = array<i32>} : memref<256x128xf32, #tpu.memory_space<vmem>>, vector<256x128xf32>,
    %c0_220 = arith.constant 0 : index
    %c0_221 = arith.constant 0 : index
    %230 = vector.load %arg10[%c0_220, %c0_221] : memref<256x128xf32, #tpu.memory_space<vmem>>, vector<256x128xf32>
    %c1_222 = arith.constant 1 : index
    %c0_223 = arith.constant 0 : index
    %c0_224 = arith.constant 0 : index
    %231 = vector.load %arg5[%c1_222, %c0_223, %c0_224] : memref<2x1x128xf32, #tpu.memory_space<vmem>>, vector<1x1x128xf32>
    %232 = vector.shape_cast %231 : vector<1x1x128xf32> to vector<1x128xf32>
    %233 = vector.broadcast %232 : vector<1x128xf32> to vector<256x128xf32>
    %234 = arith.addf %230, %233 : vector<256x128xf32>
    %cst_225 = arith.constant 0.000000e+00 : f32
    %235 = vector.broadcast %cst_225 : f32 to vector<256x128xf32>
    %236 = arith.maximumf %234, %235 : vector<256x128xf32>
    %237 = arith.truncf %236 : vector<256x128xf32> to vector<256x128xbf16>
    %c1_226 = arith.constant 1 : index
    %c0_227 = arith.constant 0 : index
    %c0_228 = arith.constant 0 : index
    %238 = vector.load %arg6[%c1_226, %c0_227, %c0_228] : memref<2x128x128xbf16, #tpu.memory_space<vmem>>, vector<1x128x128xbf16>
    %239 = vector.shape_cast %238 : vector<1x128x128xbf16> to vector<128x128xbf16>
    %cst_229 = arith.constant dense<0.000000e+00> : vector<256x128xf32>
    %240 = tpu.matmul %237, %239, %cst_229 {dimension_numbers = #tpu.dot_dimension_numbers<[1], [0], [0], [1], [0, 0, 1, 1], [], []>} : vector<256x128xbf16>, vector<128x128xbf16>, vector<256x128xf32> -> vector<256x128xf32>
    %c1_230 = arith.constant 1 : index
    %c0_231 = arith.constant 0 : index
    %c0_232 = arith.constant 0 : index
    %241 = vector.load %arg7[%c1_230, %c0_231, %c0_232] : memref<2x1x128xf32, #tpu.memory_space<vmem>>, vector<1x1x128xf32>
    %242 = vector.shape_cast %241 : vector<1x1x128xf32> to vector<1x128xf32>
    %243 = vector.broadcast %242 : vector<1x128xf32> to vector<256x128xf32>
    %244 = arith.addf %240, %243 : vector<256x128xf32>
    %cst_233 = arith.constant 0.000000e+00 : f32
    %245 = vector.broadcast %cst_233 : f32 to vector<256x128xf32>
    %246 = arith.maximumf %244, %245 : vector<256x128xf32>
    %c0_234 = arith.constant 0 : index
    %c0_235 = arith.constant 0 : index
    %c0_236 = arith.constant 0 : index
    %247 = vector.load %arg8[%c0_234, %c0_235, %c0_236] : memref<1x256x128xf32, #tpu.memory_space<vmem>>, vector<1x256x128xf32>
    %248 = vector.shape_cast %247 : vector<1x256x128xf32> to vector<256x128xf32>
    %249 = arith.addf %246, %248 : vector<256x128xf32>
    %c0_237 = arith.constant 0 : index
    %c0_238 = arith.constant 0 : index
    %c0_239 = arith.constant 0 : index
    %250 = vector.load %arg8[%c0_237, %c0_238, %c0_239] : memref<1x256x128xf32, #tpu.memory_space<vmem>>, vector<1x256x128xf32>
    %251 = vector.shape_cast %250 : vector<1x256x128xf32> to vector<256x128xf32>
    %252 = vector.shape_cast %249 : vector<256x128xf32> to vector<1x256x128xf32>
    tpu.vector_store %arg8[%c0_237, %c0_238, %c0_239], %252 {strides = array<i32>} : memref<1x256x128xf32, #tpu.memory_space<vmem>>, vector<1x256x128xf32>,
    return
  }
  func.func @transform_0(%arg0: i32) -> (i32, i32, i32) {
    %c0_i32 = arith.constant 0 : i32
    %c0_i32_0 = arith.constant 0 : i32
    %c0_i32_1 = arith.constant 0 : i32
    return %arg0, %c0_i32, %c0_i32_0 : i32, i32, i32
  }
  func.func @transform_1(%arg0: i32) -> (i32, i32, i32) {
    %c0_i32 = arith.constant 0 : i32
    %c0_i32_0 = arith.constant 0 : i32
    %c0_i32_1 = arith.constant 0 : i32
    %c0_i32_2 = arith.constant 0 : i32
    return %c0_i32, %c0_i32_0, %c0_i32_1 : i32, i32, i32
  }
  func.func @transform_2(%arg0: i32) -> (i32, i32, i32) {
    %c0_i32 = arith.constant 0 : i32
    %c0_i32_0 = arith.constant 0 : i32
    %c0_i32_1 = arith.constant 0 : i32
    %c0_i32_2 = arith.constant 0 : i32
    return %c0_i32, %c0_i32_0, %c0_i32_1 : i32, i32, i32
  }
  func.func @transform_3(%arg0: i32) -> (i32, i32, i32) {
    %c0_i32 = arith.constant 0 : i32
    %c0_i32_0 = arith.constant 0 : i32
    %c0_i32_1 = arith.constant 0 : i32
    %c0_i32_2 = arith.constant 0 : i32
    return %c0_i32, %c0_i32_0, %c0_i32_1 : i32, i32, i32
  }
  func.func @transform_4(%arg0: i32) -> (i32, i32, i32) {
    %c0_i32 = arith.constant 0 : i32
    %c0_i32_0 = arith.constant 0 : i32
    %c0_i32_1 = arith.constant 0 : i32
    %c0_i32_2 = arith.constant 0 : i32
    return %c0_i32, %c0_i32_0, %c0_i32_1 : i32, i32, i32
  }
  func.func @transform_5(%arg0: i32) -> (i32, i32, i32) {
    %c0_i32 = arith.constant 0 : i32
    %c0_i32_0 = arith.constant 0 : i32
    %c0_i32_1 = arith.constant 0 : i32
    %c0_i32_2 = arith.constant 0 : i32
    return %c0_i32, %c0_i32_0, %c0_i32_1 : i32, i32, i32
  }
  func.func @transform_6(%arg0: i32) -> (i32, i32, i32) {
    %c0_i32 = arith.constant 0 : i32
    %c0_i32_0 = arith.constant 0 : i32
    %c0_i32_1 = arith.constant 0 : i32
    %c0_i32_2 = arith.constant 0 : i32
    return %c0_i32, %c0_i32_0, %c0_i32_1 : i32, i32, i32
  }
  func.func @transform_7(%arg0: i32) -> (i32, i32, i32) {
    %c0_i32 = arith.constant 0 : i32
    %c0_i32_0 = arith.constant 0 : i32
    %c0_i32_1 = arith.constant 0 : i32
    return %arg0, %c0_i32, %c0_i32_0 : i32, i32, i32
  }
}

</mosaic_0001>

<bundles_post_ra>
// kernel: tpu_custom_call.1
= control target key start
LH: loop header
LB: loop body
LE: loop exit
PB: predicated region body
PF: predicated region fallthrough
CT: control target
= control target key end

     0   :  { %12 = vsyncpa [#allocation5], 0  ;;  %s15473_s0 = inlined_call_operand.hbm [shape: f32[2,256,128], index: 0, kind: input, shape index: {}]   ;;  %s15474_s1 = inlined_call_operand.hbm [shape: bf16[2,128,128], index: 1, kind: input, shape index: {}]   ;;  %s15475_s2 = inlined_call_operand.vmem [shape: f32[2,1,128], index: 2, kind: input, shape index: {}]   ;;  %s15476_s3 = inlined_call_operand.hbm [shape: bf16[2,1152,128], index: 3, kind: input, shape index: {}]   ;;  %s15477_s4 = inlined_call_operand.vmem [shape: f32[2,1,128], index: 4, kind: input, shape index: {}]   ;;  %s15478_s5 = inlined_call_operand.hbm [shape: bf16[2,128,128], index: 5, kind: input, shape index: {}]   ;;  %s15479_s6 = inlined_call_operand.vmem [shape: f32[2,1,128], index: 6, kind: input, shape index: {}]   ;;  %s15480_s7 = inlined_call_operand.hbm [shape: f32[2,256,128], index: 7, kind: output, shape index: {}]  }
   0x1   :  { %14 = vsyncpa [#allocation5 + $0x1], 0 }
   0x2   :  { %15 = vsyncpa [#allocation8], 0 }
   0x3   :  { %16 = vsyncpa [#allocation11], 0 }
   0x4   :  { %17 = vsyncpa [#allocation6], 0 }
   0x5   :  { %19 = vsyncpa [#allocation6 + $0x1], 0  ;;  %s13158_s24 = smov 0   ;;  %s13160_s25 = smov 0  }
   0x6   :  { %s13162_s26 = smov 0   ;;  %s13164_s27 = smov 0  }
   0x7 LB: > { %s13179_s28 = sadd.s32 4294967295, %s13102_s27   ;;  %s10268_s29 = sadd.s32 4294967294, %s13102_s27   ;;  %s13102_s27 = sphi %s13164_s27, %s15667_s27   ;;  %s13098_s26 = sphi %s13162_s26, %s15666_s26   ;;  %s13094_s25 = sphi %s13160_s25, %s15665_s25   ;;  %s13090_s24 = sphi %s13158_s24, %s15664_s24  }
   0x8   : > { %p45_p0 = scmp.ne.s32.totalorder %s13094_s25, %s13090_s24  ;;  %p15481_p1 = scmp.eq.s32.totalorder %s13179_s28, 0 }
   0x9   : > { %p201_p3 = scmp.eq.s32.totalorder %s10268_s29, 1  ;;  %p10269_p5 = scmp.ge.s32.totalorder %s13102_s27, 1 }
   0xa   : > { %p13188_p4 = por %p15481_p1, %p45_p0  ;;  %p208_p7 = scmp.lt.s32.totalorder %s13102_s27, 3 }
   0xb   : > { %p13193_p6 = por %p201_p3, %p45_p0  ;;  %s13104_s10 = smov [#allocation7]  }
   0xc   : > { %s15520_s30 = scalar_select %p13188_p4, 1, 0 }
   0xd   : > { %s15521_s8 = scalar_select %p13193_p6, 1, 0 }
   0xe   : > { %p13198_p8 = pnand %p10269_p5, %p208_p7  ;;  %s220_s11 = sshll.u32 %s13104_s10, 4  ;;  %s13202_s11 = int_to_ptr.vmem [resolvable:$true] %s220_s11 }
   0xf   : > { %15522 = sst [smem:[#allocation17_spill]] %s15521_s8  ;;  %s13105_s13 = smov [#allocation9]  }
  0x10   : > { %s15523_s9 = scalar_select %p13198_p8, 1, 0 }
  0x11   : > { %p12653_p9 = pneg %p13198_p8  ;;  %s236_s14 = sshll.u32 %s13105_s13, 4  ;;  %s13213_s14 = int_to_ptr.vmem [resolvable:$true] %s236_s14 }
  0x12   : > { %s13106_s15 = smov [#allocation10]   ;;  %s12914_s19 = scalar_lea.hbm %s15474_s1, 2048 }
  0x13   : > { %p13209_p11 = pnand %p12653_p9, %p15481_p1  ;;  %s13215_s16 = sshll.u32 %s13106_s15, 4  ;;  %s253_s16 = int_to_ptr.vmem [resolvable:$true] %s13215_s16 }
  0x14   : > { %p12915_p12 = scmp.ne.s32.totalorder %s15474_s1, %s12914_s19  ;;  %p12921_p5 = scmp.lt.u32.totalorder %s12914_s19, %s15474_s1 }
  0x15   : > { %p13225_p13 = pneg %p13209_p11 }
  0x17   : > { %p12917_p0 = pnand %p13225_p13, %p12915_p12 }
  0x19   : > { %p12918_p3 = pneg %p12917_p0 }
  0x1b   : > { %p12923_p7 = pnand %p12921_p5, %p12918_p3 }
  0x1d   : > { %12926 = shalt.err (!%p12923_p7)
}
  0x1e   : > { %s12927_s10 = scalar_lea.vmem %s13202_s11, 2048  ;;  %p12935_p2 = scmp.lt.s32.totalorder %s13202_s11, %s13202_s11 }
  0x1f   : > { %p12928_p9 = scmp.ne.s32.totalorder %s13202_s11, %s12927_s10  ;;  %p12936_p6 = scmp.lt.s32.totalorder %s12927_s10, %s12927_s10 }
  0x21   : > { %p12930_p10 = pnand %p12928_p9, %p13225_p13  ;;  %p12937_p12 = por %p12936_p6, %p12935_p2 }
  0x23   : > { %p12931_p1 = pneg %p12930_p10 }
  0x25   : > { %p12938_p0 = pnand %p12937_p12, %p12931_p1 }
  0x27   : > { %12941 = shalt.err (!%p12938_p0)
}
  0x28   : > { %s13107_s13 = smov 64   ;;  %s13108_s15 = smov 4  }
  0x29   : > { %12656 = dma.hbm_to_vmem [thread:$0]  (!%p13209_p11), %s15474_s1, 2048, %s13202_s11, [#allocation8], %s13107_s13, %s13107_s13, %s13108_s15  }
  0x2a   : > { %s12942_s21 = scalar_lea.hbm %s15476_s3, 18432 }
  0x2b   : > { %p12943_p1 = scmp.ne.s32.totalorder %s15476_s3, %s12942_s21  ;;  %p12949_p10 = scmp.lt.u32.totalorder %s12942_s21, %s15476_s3 }
  0x2d   : > { %p12945_p2 = pnand %p12943_p1, %p13225_p13 }
  0x2f   : > { %p12946_p6 = pneg %p12945_p2 }
  0x31   : > { %p12951_p3 = pnand %p12949_p10, %p12946_p6 }
  0x33   : > { %12954 = shalt.err (!%p12951_p3)
}
  0x34   : > { %s12955_s11 = scalar_lea.vmem %s13213_s14, 18432  ;;  %p12963_p12 = scmp.lt.s32.totalorder %s13213_s14, %s13213_s14 }
  0x35   : > { %p12956_p5 = scmp.ne.s32.totalorder %s13213_s14, %s12955_s11  ;;  %p12964_p0 = scmp.lt.s32.totalorder %s12955_s11, %s12955_s11 }
  0x37   : > { %p12958_p7 = pnand %p12956_p5, %p13225_p13  ;;  %p12965_p1 = por %p12964_p0, %p12963_p12 }
  0x39   : > { %p12959_p9 = pneg %p12958_p7 }
  0x3b   : > { %p12966_p2 = pnand %p12965_p1, %p12959_p9 }
  0x3d   : > { %12969 = shalt.err (!%p12966_p2)
}
  0x3e   : > { %12659 = dma.hbm_to_vmem [thread:$0]  (!%p13209_p11), %s15476_s3, 18432, %s13213_s14, [#allocation8], %s13107_s13, %s13107_s13, %s13108_s15  }
  0x3f   : > { %s12970_s20 = scalar_lea.hbm %s15478_s5, 2048 }
  0x40   : > { %p12971_p6 = scmp.ne.s32.totalorder %s15478_s5, %s12970_s20  ;;  %p12977_p5 = scmp.lt.u32.totalorder %s12970_s20, %s15478_s5 }
  0x42   : > { %p12973_p10 = pnand %p12971_p6, %p13225_p13 }
  0x44   : > { %p12974_p3 = pneg %p12973_p10 }
  0x46   : > { %p12979_p7 = pnand %p12977_p5, %p12974_p3 }
  0x48   : > { %12982 = shalt.err (!%p12979_p7)
}
  0x49   : > { %s12983_s11 = scalar_lea.vmem %s253_s16, 2048  ;;  %p12991_p1 = scmp.lt.s32.totalorder %s253_s16, %s253_s16 }
  0x4a   : > { %p12984_p9 = scmp.ne.s32.totalorder %s253_s16, %s12983_s11  ;;  %p12992_p2 = scmp.lt.s32.totalorder %s12983_s11, %s12983_s11 }
  0x4c   : > { %p12986_p12 = pnand %p12984_p9, %p13225_p13  ;;  %p12993_p4 = por %p12992_p2, %p12991_p1 }
  0x4e   : > { %p12987_p0 = pneg %p12986_p12 }
  0x50   : > { %p12994_p8 = pnand %p12993_p4, %p12987_p0 }
  0x52   : > { %12997 = shalt.err (!%p12994_p8)
}
  0x53   : > { %12662 = dma.hbm_to_vmem [thread:$0]  (!%p13209_p11), %s15478_s5, 2048, %s253_s16, [#allocation11], %s13107_s13, %s13107_s13, %s13108_s15  }
  0x54   : > { %s13298_s22 = sadd.s32 1, %s13102_s27   ;;  %s32_s17 = sadd.s32 1, %s13098_s26 }
  0x55   : > { %s29_s12 = ssub.s32 %s13102_s27, %s13298_s22  ;;  %p39_p8 = scmp.ne.s32.totalorder %s13098_s26, %s13094_s25 }
  0x56   : > { %p30_p4 = scmp.eq.s32.totalorder %s29_s12, 0  ;;  %p40_p13 = scmp.eq.s32.totalorder %s13102_s27, 0 }
  0x57   : > { %p12674_p6 = scmp.lt.s32.totalorder %s13102_s27, 2  ;;  %p15526_p3 = scmp.eq.s32.totalorder %s13179_s28, 1 }
  0x58   : > { %s13308_s18 = scalar_select %p30_p4, %s13098_s26, %s32_s17  }
  0x59   : > { %p41_p10 = por %p40_p13, %p39_p8  ;;  %p13312_p5 = por %p15526_p3, %p39_p8 }
  0x5a   : > { %s269_s20 = sand.u32 1, %s13098_s26   ;;  %s10539_s21 = sshll.u32 %s13102_s27, 12 }
  0x5b   : > { %s10274_s16 = sshll.u32 %s269_s20, 8  ;;  %s13321_s23 = scalar_lea.hbm %s15473_s0, %s10539_s21 }
  0x5c   : > { %s273_s29 = scalar_lea.vmem [#allocation4], %s10274_s16  ;;  %p13323_p11 = pnand %p12674_p6, %p41_p10 }
  0x5d   : > { %s280_s10 = sshll.u32 %s273_s29, 4  ;;  %s13329_s14 = scalar_lea.sflag [#allocation5], %s269_s20  ;;  %s13327_s10 = int_to_ptr.vmem [resolvable:$true] %s280_s10 }
  0x5e   : > { %s12998_s8 = scalar_lea.hbm %s13321_s23, 4096  ;;  %p13000_p9 = pneg %p13323_p11 }
  0x5f   : > { %p12999_p7 = scmp.ne.s32.totalorder %s13321_s23, %s12998_s8  ;;  %s13003_s21 = scalar_lea.hbm %s15473_s0, 8192 }
  0x60   : > { %p13004_p1 = scmp.lt.u32.totalorder %s13321_s23, %s15473_s0  ;;  %p13005_p2 = scmp.lt.u32.totalorder %s13003_s21, %s12998_s8 }
  0x61   : > { %p13001_p12 = pnand %p13000_p9, %p12999_p7  ;;  %p13007_p8 = scmp.lt.u32.totalorder %s12998_s8, %s13321_s23 }
  0x62   : > { %p13006_p4 = por %p13005_p2, %p13004_p1 }
  0x63   : > { %p13002_p0 = pneg %p13001_p12 }
  0x64   : > { %p13008_p13 = por %p13007_p8, %p13006_p4 }
  0x66   : > { %p13009_p6 = pnand %p13008_p13, %p13002_p0 }
  0x68   : > { %13012 = shalt.err (!%p13009_p6)
}
  0x69   : > { %s13013_s20 = scalar_lea.vmem %s13327_s10, 4096  ;;  %s13109_s15 = smov [#allocation4]  }
  0x6a   : > { %p13014_p10 = scmp.ne.s32.totalorder %s13327_s10, %s13013_s20  ;;  %s13018_s29 = sshll.u32 %s13109_s15, 4  ;;  %s13019_s29 = int_to_ptr.vmem [resolvable:$false] %s13018_s29 }
  0x6b   : > { %s13020_s12 = scalar_lea.vmem %s13019_s29, 8192  ;;  %p13021_p12 = scmp.lt.s32.totalorder %s13327_s10, %s13019_s29 }
  0x6c   : > { %p13016_p3 = pnand %p13014_p10, %p13000_p9  ;;  %p13022_p1 = scmp.lt.s32.totalorder %s13020_s12, %s13013_s20 }
  0x6e   : > { %p13017_p7 = pneg %p13016_p3  ;;  %p13023_p2 = por %p13022_p1, %p13021_p12 }
  0x70   : > { %p13024_p4 = pnand %p13023_p2, %p13017_p7 }
  0x72   : > { %13027 = shalt.err (!%p13024_p4)
}
  0x73   : > { %s13110_s8 = smov 128   ;;  %s13111_s17 = smov 8  }
  0x74   : > { %12666 = dma.hbm_to_vmem [thread:$0]  (!%p13323_p11), %s13321_s23, 4096, %s13327_s10, %s13329_s14, %s13110_s8, %s13110_s8, %s13111_s17  }
  0x75   : > { %p15529_p9 = scmp.ne.s32.totalorder %s15523_s9, 0 }
  0x77   : > { %292 = sbr.rel (%p15529_p9) target bundleno = 2570 (0xa0a), region = 48 }
  0x7e   : > { %s13360_s21 = sand.u32 1, %s13094_s25   ;;  %p15530_p0 = scmp.ne.s32.totalorder %s15520_s30, 0 }
  0x7f   : > { %s10278_s16 = sshll.u32 %s13360_s21, 8  ;;  %s295_s13 = scalar_lea.sflag [#allocation5], %s13360_s21 }
  0x80   : > { %s13364_s20 = scalar_lea.vmem [#allocation4], %s10278_s16 }
  0x81   : > { %13073 = dma.done.wait (%p15530_p0), %s295_s13, 4096  }
  0x82   : > { %13075 = vsyncadd (%p15530_p0), %s295_s13, 4294963200  ;;  %p15531_p11 = scmp.eq.s32.totalorder %s13179_s28, 0 }
  0x84   : > { %13077 = dma.done.wait (%p15531_p11), [#allocation8], 20480   ;;  %p15532_p8 = pmov %p15531_p11 }
  0x86   : > { %13079 = vsyncadd (%p15532_p8), [#allocation8], 4294946816  ;;  %p15533_p13 = pmov %p15532_p8 }
  0x87   : > { %p15534_p6 = pmov %p15532_p8 }
  0x88   : > { %13081 = dma.done.wait (%p15533_p13), [#allocation11], 2048  }
  0x89   : > { %13083 = vsyncadd (%p15534_p6), [#allocation11], 4294965248  ;;  %v12723_v0 = vld [vmem:[#allocation7] sm:$0xff]   ;;  %v12724_v1 = vld [vmem:[#allocation7 + $0x8] sm:$0xff]   ;;  %s13383_s30 = scalar_lea.vmem [#allocation12], %s10278_s16  ;;  %vm13113_vm4 = vmmov 1  }
  0x8a   : > { %11069 = vmatprep.subr.bf16.mxu1 %v12723_v0  ;;  %v12725_v2 = vld [vmem:[#allocation7 + $0x10] sm:$0xff]   ;;  %v12726_v3 = vld [vmem:[#allocation7 + $0x18] sm:$0xff]   ;;  %v362_v4 = vld [vmem:[%s13364_s20] sm:$0xff]  ;;  %vm1380_vm8 = vcmask 1045504   ;;  %vm1479_vm15 = vcmask 1041408   ;;  %s10166_s9 = sshll.u32 %s13383_s30, 4  ;;  %s15426_s9 = int_to_ptr.vmem [resolvable:$true] %s10166_s9 }
  0x8b   : > { %11070 = vmatpush3.bf16.msra.mxu1 %v12723_v0  ;;  %v363_v5 = vld [vmem:[%s13364_s20 + $0x8] sm:$0xff]  ;;  %v13381_v6 = vld [vmem:[%s13364_s20 + $0x10] sm:$0xff]  ;;  %394 = vst [vmem:[%s13383_s30] sm:$0xff] %v362_v4  ;;  %v13388_v8 = vld [vmem:[%s13364_s20 + $0x18] sm:$0xff]  ;;  %v426_v0 = vlaneseq  ;;  %s13028_s14 = scalar_lea.vmem %s15426_s9, 4096  ;;  %s13115_s15 = smov [#allocation12]  }
  0x8c   : > { %11071 = vmatprep.subr.bf16.mxu1 %v12724_v1  ;;  %395 = vst [vmem:[%s13383_s30 + $0x8] sm:$0xff] %v363_v5  ;;  %v875_v7 = vpack.c.bf16 %v363_v5, %v362_v4  ;;  %396 = vst [vmem:[%s13383_s30 + $0x10] sm:$0xff] %v13381_v6  ;;  %v13393_v9 = vld [vmem:[%s13364_s20 + $0x20] sm:$0xff]  ;;  %v13396_v10 = vld [vmem:[%s13364_s20 + $0x28] sm:$0xff]  ;;  %v876_v43 = vpack.c.bf16 %v13388_v8, %v13381_v6  ;;  %p13029_p10 = scmp.ne.s32.totalorder %s15426_s9, %s13028_s14  ;;  %s13032_s29 = sshll.u32 %s13115_s15, 4  ;;  %s13033_s29 = int_to_ptr.vmem [resolvable:$false] %s13032_s29 }
  0x8d   : > { %v12727_v11 = vld [vmem:[#allocation7 + $0x20] sm:$0xff]   ;;  %397 = vst [vmem:[%s13383_s30 + $0x18] sm:$0xff] %v13388_v8  ;;  %398 = vst [vmem:[%s13383_s30 + $0x20] sm:$0xff] %v13393_v9  ;;  %v13405_v12 = vld [vmem:[%s13364_s20 + $0x30] sm:$0xff]  ;;  %v877_v45 = vpack.c.bf16 %v13396_v10, %v13393_v9  ;;  %v13112_v9 = vmov 0   ;;  %s13034_s12 = scalar_lea.vmem %s13033_s29, 8192  ;;  %p13035_p12 = scmp.lt.s32.totalorder %s15426_s9, %s13033_s29 }
  0x8e   : > { %399 = vst [vmem:[%s13383_s30 + $0x28] sm:$0xff] %v13396_v10  ;;  %v13408_v13 = vld [vmem:[%s13364_s20 + $0x38] sm:$0xff]  ;;  %v13411_v14 = vld [vmem:[%s13364_s20 + $0x40] sm:$0xff]  ;;  %11085 = vmatprep.mubr.bf16.mxu1 %v875_v7  ;;  %400 = vst [vmem:[%s13383_s30 + $0x30] sm:$0xff] %v13405_v12  ;;  %p13030_p3 = pnand %p13029_p10, %p13312_p5  ;;  %p13036_p1 = scmp.lt.s32.totalorder %s13034_s12, %s13028_s14 }
  0x8f   : > { %11072 = vmatpush3.bf16.msra.mxu1 %v12724_v1  ;;  %401 = vst [vmem:[%s13383_s30 + $0x38] sm:$0xff] %v13408_v13  ;;  %v13418_v15 = vld [vmem:[%s13364_s20 + $0x48] sm:$0xff]  ;;  %402 = vst [vmem:[%s13383_s30 + $0x40] sm:$0xff] %v13411_v14  ;;  %v13423_v16 = vld [vmem:[%s13364_s20 + $0x50] sm:$0xff]  ;;  %v878_v47 = vpack.c.bf16 %v13408_v13, %v13405_v12  ;;  %v13560_v1 = vshrl.u32 %v426_v0, 7 }
  0x90   : > { %11073 = vmatprep.subr.bf16.mxu1 %v12725_v2  ;;  %v13426_v17 = vld [vmem:[%s13364_s20 + $0x58] sm:$0xff]  ;;  %403 = vst [vmem:[%s13383_s30 + $0x48] sm:$0xff] %v13418_v15  ;;  %404 = vst [vmem:[%s13383_s30 + $0x50] sm:$0xff] %v13423_v16  ;;  %v13435_v18 = vld [vmem:[%s13364_s20 + $0x60] sm:$0xff]  ;;  %v879_v49 = vpack.c.bf16 %v13418_v15, %v13411_v14  ;;  %p13031_p7 = pneg %p13030_p3  ;;  %p13037_p2 = por %p13036_p1, %p13035_p12 }
  0x91   : > { %405 = vst [vmem:[%s13383_s30 + $0x58] sm:$0xff] %v13426_v17  ;;  %v13438_v19 = vld [vmem:[%s13364_s20 + $0x68] sm:$0xff]  ;;  %v13441_v20 = vld [vmem:[%s13364_s20 + $0x70] sm:$0xff]  ;;  %406 = vst [vmem:[%s13383_s30 + $0x60] sm:$0xff] %v13435_v18  ;;  %v880_v51 = vpack.c.bf16 %v13426_v17, %v13423_v16  ;;  %v463_v4 = vand.u32 15, %v13560_v1  ;;  %v433_v14 = vadd.s32 48, %v13560_v1 }
  0x92   : > { %407 = vst [vmem:[%s13383_s30 + $0x68] sm:$0xff] %v13438_v19  ;;  %v13448_v21 = vld [vmem:[%s13364_s20 + $0x78] sm:$0xff]  ;;  %408 = vst [vmem:[%s13383_s30 + $0x70] sm:$0xff] %v13441_v20  ;;  %v13453_v22 = vld [vmem:[%s13364_s20 + $0x80] sm:$0xff]  ;;  %v881_v53 = vpack.c.bf16 %v13438_v19, %v13435_v18  ;;  %v435_v17 = vadd.s32 64, %v13560_v1  ;;  %p13038_p4 = pnand %p13037_p2, %p13031_p7 }
  0x93   : > { %11074 = vmatpush3.bf16.msra.mxu1 %v12725_v2  ;;  %v13456_v23 = vld [vmem:[%s13364_s20 + $0x88] sm:$0xff]  ;;  %409 = vst [vmem:[%s13383_s30 + $0x78] sm:$0xff] %v13448_v21  ;;  %410 = vst [vmem:[%s13383_s30 + $0x80] sm:$0xff] %v13453_v22  ;;  %v13465_v25 = vld [vmem:[%s13364_s20 + $0x90] sm:$0xff]  ;;  %v882_v55 = vpack.c.bf16 %v13448_v21, %v13441_v20  ;;  %v429_v2 = vadd.s32 16, %v13560_v1  ;;  %vm13565_vm0 = vcmp.ge.s32.totalorder %v463_v4, 4 }
  0x94   : > { %11075 = vmatprep.subr.bf16.mxu1 %v12726_v3  ;;  %v12728_v24 = vld [vmem:[#allocation7 + $0x28] sm:$0xff]   ;;  %411 = vst [vmem:[%s13383_s30 + $0x88] sm:$0xff] %v13456_v23  ;;  %v13468_v26 = vld [vmem:[%s13364_s20 + $0x98] sm:$0xff]  ;;  %v13471_v27 = vld [vmem:[%s13364_s20 + $0xa0] sm:$0xff]  ;;  %v883_v57 = vpack.c.bf16 %v13456_v23, %v13453_v22  ;;  %v505_v20 = vand.u32 15, %v433_v14  ;;  %v519_v22 = vand.u32 15, %v435_v17 }
  0x95   : > { %412 = vst [vmem:[%s13383_s30 + $0x90] sm:$0xff] %v13465_v25  ;;  %413 = vst [vmem:[%s13383_s30 + $0x98] sm:$0xff] %v13468_v26  ;;  %v13478_v28 = vld [vmem:[%s13364_s20 + $0xa8] sm:$0xff]  ;;  %v13483_v29 = vld [vmem:[%s13364_s20 + $0xb0] sm:$0xff]  ;;  %v884_v58 = vpack.c.bf16 %v13468_v26, %v13465_v25  ;;  %v477_v5 = vand.u32 15, %v429_v2  ;;  %v449_v17 = vadd.s32 176, %v13560_v1 }
  0x96   : > { %414 = vst [vmem:[%s13383_s30 + $0xa0] sm:$0xff] %v13471_v27  ;;  %v13486_v30 = vld [vmem:[%s13364_s20 + $0xb8] sm:$0xff]  ;;  %415 = vst [vmem:[%s13383_s30 + $0xa8] sm:$0xff] %v13478_v28  ;;  %v13495_v31 = vld [vmem:[%s13364_s20 + $0xc0] sm:$0xff]  ;;  %v885_v59 = vpack.c.bf16 %v13478_v28, %v13471_v27  ;;  %vm1193_vm10 = vcmp.ge.s32.totalorder %v505_v20, 4  ;;  %vm1195_vm12 = vcmp.ge.s32.totalorder %v519_v22, 4 }
  0x97   : > { %11076 = vmatpush3.bf16.msra.mxu1 %v12726_v3  ;;  %416 = vst [vmem:[%s13383_s30 + $0xb0] sm:$0xff] %v13483_v29  ;;  %417 = vst [vmem:[%s13383_s30 + $0xb8] sm:$0xff] %v13486_v30  ;;  %v13498_v32 = vld [vmem:[%s13364_s20 + $0xc8] sm:$0xff]  ;;  %v13501_v33 = vld [vmem:[%s13364_s20 + $0xd0] sm:$0xff]  ;;  %v886_v60 = vpack.c.bf16 %v13486_v30, %v13483_v29  ;;  %v431_v3 = vadd.s32 32, %v13560_v1  ;;  %vm13569_vm1 = vcmp.ge.s32.totalorder %v477_v5, 4 }
  0x98   : > { %11077 = vmatprep.subr.bf16.mxu1 %v12727_v11  ;;  %418 = vst [vmem:[%s13383_s30 + $0xc0] sm:$0xff] %v13495_v31  ;;  %419 = vst [vmem:[%s13383_s30 + $0xc8] sm:$0xff] %v13498_v32  ;;  %v13508_v34 = vld [vmem:[%s13364_s20 + $0xd8] sm:$0xff]  ;;  %v12729_v35 = vld [vmem:[#allocation7 + $0x30] sm:$0xff]   ;;  %v887_v61 = vpack.c.bf16 %v13498_v32, %v13495_v31  ;;  %v13617_v31 = vrot.slane %v13112_v9, 6  ;;  %v434_v22 = vadd.s32 56, %v13560_v1 }
  0x99   : > { %420 = vst [vmem:[%s13383_s30 + $0xd0] sm:$0xff] %v13501_v33  ;;  %421 = vst [vmem:[%s13383_s30 + $0xd8] sm:$0xff] %v13508_v34  ;;  %v13515_v36 = vld [vmem:[%s13364_s20 + $0xe0] sm:$0xff]  ;;  %v13518_v37 = vld [vmem:[%s13364_s20 + $0xe8] sm:$0xff]  ;;  %v888_v62 = vpack.c.bf16 %v13508_v34, %v13501_v33  ;;  %v491_v6 = vand.u32 15, %v431_v3 }
  0x9a   : > { %422 = vst [vmem:[%s13383_s30 + $0xe0] sm:$0xff] %v13515_v36  ;;  %423 = vst [vmem:[%s13383_s30 + $0xe8] sm:$0xff] %v13518_v37  ;;  %v13525_v38 = vld [vmem:[%s13364_s20 + $0xf0] sm:$0xff]  ;;  %v393_v39 = vld [vmem:[%s13364_s20 + $0xf8] sm:$0xff]  ;;  %v889_v63 = vpack.c.bf16 %v13518_v37, %v13515_v36  ;;  %v1484_v36 = vsel %vm1479_vm15, %v13617_v31, %v13617_v31  ;;  %s10540_s20 = sshll.u32 %s13179_s28, 12  ;;  %s10153_s28 = scalar_lea.sflag [#allocation6], %s13360_s21 }
  0x9b   : > { %11078 = vmatpush3.bf16.msra.mxu1 %v12727_v11  ;;  %424 = vst [vmem:[%s13383_s30 + $0xf0] sm:$0xff] %v13525_v38  ;;  %425 = vst [vmem:[%s13383_s30 + $0xf8] sm:$0xff] %v393_v39  ;;  %v890_v40 = vpack.c.bf16 %v393_v39, %v13525_v38  ;;  %v12730_v41 = vld [vmem:[#allocation7 + $0x38] sm:$0xff]   ;;  %v12731_v42 = vld [vmem:[#allocation9] sm:$0xff]   ;;  %vm1191_vm3 = vcmp.ge.s32.totalorder %v491_v6, 4  ;;  %s15424_s11 = scalar_lea.hbm %s15480_s7, %s10540_s20 }
  0x9c   : > { %11079 = vmatprep.subr.bf16.mxu1 %v12728_v24  ;;  %v12732_v44 = vld [vmem:[#allocation9 + $0x8] sm:$0xff]   ;;  %v12733_v46 = vld [vmem:[#allocation9 + $0x10] sm:$0xff]   ;;  %v12734_v48 = vld [vmem:[#allocation9 + $0x18] sm:$0xff]   ;;  %348 = vst [vmem:[#allocation2 + $0x20] sm:$0xff] %v13112_v9 }
  0x9d   : > { %v12735_v50 = vld [vmem:[#allocation9 + $0x20] sm:$0xff]   ;;  %v12736_v52 = vld [vmem:[#allocation9 + $0x28] sm:$0xff]   ;;  %v12737_v54 = vld [vmem:[#allocation9 + $0x30] sm:$0xff]   ;;  %349 = vst [vmem:[#allocation2 + $0x28] sm:$0xff] %v13112_v9 }
  0x9e   : > { %v12738_v56 = vld [vmem:[#allocation9 + $0x38] sm:$0xff]   ;;  %vm1268_vm2 = vmpackc.low %vm13565_vm0, %vm13565_vm0  ;;  %344 = vst [vmem:[#allocation2] sm:$0xff] %v13112_v9  ;;  %v13658_v6 = vld [vmem:[%s15475_s2] ss:$0 sm:$0xff] }
  0x9f   : > { %11080 = vmatpush3.bf16.msra.mxu1 %v12728_v24  ;;  %345 = vst [vmem:[#allocation2 + $0x8] sm:$0xff] %v13112_v9  ;;  %352 = vst [vmem:[#allocation2 + $0x40] sm:$0xff] %v13112_v9  ;;  %v1300_v10 = vsel %vm1268_vm2, 65537, %v13112_v9 }
  0xa0   : > { %11081 = vmatprep.subr.bf16.mxu1 %v12729_v35  ;;  %353 = vst [vmem:[#allocation2 + $0xc8] sm:$0xff] %v13112_v9  ;;  %356 = vst [vmem:[#allocation2 + $0xe0] sm:$0xff] %v13112_v9 }
  0xa1   : > { %357 = vst [vmem:[#allocation2 + $0xe8] sm:$0xff] %v13112_v9  ;;  %360 = vst [vmem:[#allocation2 + $0x100] sm:$0xff] %v13112_v9 }
  0xa2   : > { %361 = vst [vmem:[#allocation2 + $0x108] sm:$0xff] %v13112_v9  ;;  %vm1269_vm5 = vmpackc.low %vm13113_vm4, %vm13113_vm4 }
  0xa3   : > { %11082 = vmatpush3.bf16.msra.mxu1 %v12729_v35  ;;  %vm1270_vm6 = vmpackc.low %vm13569_vm1, %vm13569_vm1  ;;  %v13591_v11 = vsel %vm1269_vm5, 65537, %v13112_v9  ;;  %v1251_v23 = vld [vmem:[#allocation2 + $0x20] sm:$0xc0] }
  0xa4   : > { %11083 = vmatprep.subr.bf16.mxu1 %v12730_v41  ;;  %v1302_v12 = vsel %vm1270_vm6, 65537, %v13112_v9  ;;  %v10292_v13 = vcombine.low %v1300_v10, %v13591_v11  ;;  %vm1272_vm7 = vmpackc.low %vm1191_vm3, %vm1191_vm3 }
  0xa5   : > { %v10293_v15 = vcombine.low %v1302_v12, %v13591_v11  ;;  %v1304_v16 = vsel %vm1272_vm7, 65537, %v13112_v9  ;;  %vm1274_vm11 = vmpackc.low %vm1193_vm10, %vm1193_vm10 }
  0xa6   : > { %v13599_v18 = vrot.slane %v10292_v13, 2  ;;  %v10294_v19 = vcombine.low %v1304_v16, %v13591_v11  ;;  %v1306_v29 = vsel %vm1274_vm11, 65537, %v13112_v9  ;;  %vm1276_vm14 = vmpackc.low %vm1195_vm12, %vm1195_vm12 }
  0xa7   : > { %11084 = vmatpush3.bf16.msra.mxu1 %v12730_v41  ;;  %v1382_v21 = vrot.slane %v10293_v15, 2  ;;  %v10295_v30 = vcombine.low %v1306_v29, %v13591_v11  ;;  %v1308_v32 = vsel %vm1276_vm14, 65537, %v13112_v9  ;;  %v12740_v41 = vld [vmem:[#allocation9 + $0x48] sm:$0xff]  }
  0xa8   : > { %11117 = vmatprep.subr.bf16.mxu1 %v12731_v42  ;;  %vm15518_vm9 = vcmp.ne.s16.totalorder %v13599_v18, 0  ;;  %v1384_v24 = vrot.slane %v10294_v19, 2  ;;  %v10296_v34 = vcombine.low %v1308_v32, %v13591_v11  ;;  %v451_v19 = vadd.s32 192, %v13560_v1 }
  0xa9   : > { %v13605_v25 = vsel %vm1380_vm8, %v13599_v18, %v1382_v21  ;;  %v1429_v26 = vsel %vm15518_vm9, %v1251_v23, 0  ;;  %v1386_v33 = vrot.slane %v10295_v30, 2 }
  0xaa   : > { %11086 = vmatmul.mubr.bf16.vlgmr.msra.gmra.mrb[0].mxu1 %v876_v43  ;;  %vm15519_vm13 = vcmp.ne.s16.totalorder %v13605_v25, 0  ;;  %v1480_v27 = vrot.slane %v1429_v26, 6  ;;  %v13611_v28 = vsel %vm1380_vm8, %v1382_v21, %v1384_v24  ;;  %v13629_v38 = vrot.slane %v10296_v34, 2  ;;  %v12742_v43 = vld [vmem:[#allocation9 + $0x58] sm:$0xff]  }
  0xab   : > { %11089 = vmatprep.mubr.bf16.mxu1 %v877_v45  ;;  %11118 = vmatpush3.bf16.msra.mxu1 %v12731_v42  ;;  %v13627_v37 = vsel %vm1380_vm8, %v1384_v24, %v1386_v33  ;;  %v12741_v42 = vld [vmem:[#allocation9 + $0x50] sm:$0xff]   ;;  %v12744_v45 = vld [vmem:[#allocation9 + $0x68] sm:$0xff]  }
  0xac   : > { %11119 = vmatprep.subr.bf16.mxu1 %v12732_v44  ;;  %v1482_v35 = vsel %vm1479_vm15, %v1480_v27, %v13617_v31  ;;  %v13634_v39 = vsel %vm1380_vm8, %v1386_v33, %v13629_v38  ;;  %v453_v33 = vadd.s32 208, %v13560_v1 }
  0xaf   : > { %11120 = vmatpush3.bf16.msra.mxu1 %v12732_v44  ;;  %v12743_v44 = vld [vmem:[#allocation9 + $0x60] sm:$0xff]  }
  0xb0   : > { %11121 = vmatprep.subr.bf16.mxu1 %v12733_v46 }
  0xb2   : > { %11090 = vmatmul.mubr.bf16.gmra.mrb[4].mxu1 %v878_v47  ;;  %v12746_v47 = vld [vmem:[#allocation9 + $0x78] sm:$0xff]  }
  0xb3   : > { %11093 = vmatprep.mubr.bf16.mxu1 %v879_v49  ;;  %11122 = vmatpush3.bf16.msra.mxu1 %v12733_v46  ;;  %v12745_v46 = vld [vmem:[#allocation9 + $0x70] sm:$0xff]   ;;  %v437_v49 = vadd.s32 80, %v13560_v1 }
  0xb4   : > { %11123 = vmatprep.subr.bf16.mxu1 %v12734_v48 }
  0xb7   : > { %11124 = vmatpush3.bf16.msra.mxu1 %v12734_v48  ;;  %v13637_v48 = vld [vmem:[#allocation9 + $0x80] sm:$0xff]  }
  0xb8   : > { %11125 = vmatprep.subr.bf16.mxu1 %v12735_v50 }
  0xba   : > { %11094 = vmatmul.mubr.bf16.gmra.mrb[8].mxu1 %v880_v51  ;;  %v533_v51 = vand.u32 15, %v437_v49 }
  0xbb   : > { %11097 = vmatprep.mubr.bf16.mxu1 %v881_v53  ;;  %11126 = vmatpush3.bf16.msra.mxu1 %v12735_v50  ;;  %v439_v50 = vadd.s32 96, %v13560_v1  ;;  %v441_v53 = vadd.s32 112, %v13560_v1 }
  0xbc   : > { %11127 = vmatprep.subr.bf16.mxu1 %v12736_v52  ;;  %vm1197_vm3 = vcmp.ge.s32.totalorder %v533_v51, 4 }
  0xbd   : > { %vm1278_vm5 = vmpackc.low %vm1197_vm3, %vm1197_vm3 }
  0xbf   : > { %11128 = vmatpush3.bf16.msra.mxu1 %v12736_v52  ;;  %v547_v52 = vand.u32 15, %v439_v50 }
  0xc0   : > { %11129 = vmatprep.subr.bf16.mxu1 %v12737_v54 }
  0xc1   : > { %vm1199_vm4 = vcmp.ge.s32.totalorder %v547_v52, 4 }
  0xc2   : > { %11098 = vmatmul.mubr.bf16.gmra.mrb[12].mxu1 %v882_v55  ;;  %vm1280_vm6 = vmpackc.low %vm1199_vm4, %vm1199_vm4  ;;  %v443_v55 = vadd.s32 128, %v13560_v1 }
  0xc3   : > { %11101 = vmatprep.mubr.bf16.mxu1 %v883_v57  ;;  %11130 = vmatpush3.bf16.msra.mxu1 %v12737_v54  ;;  %v561_v54 = vand.u32 15, %v441_v53  ;;  %v1312_v57 = vsel %vm1280_vm6, 65537, %v13112_v9  ;;  %v645_v53 = vand.u32 15, %v453_v33  ;;  %v13774_v33 = vadd.s32 104, %v13560_v1 }
  0xc4   : > { %11131 = vmatprep.subr.bf16.mxu1 %v12738_v56 }
  0xc5   : > { %vm1201_vm7 = vcmp.ge.s32.totalorder %v561_v54, 4 }
  0xc6   : > { %vm1282_vm10 = vmpackc.low %vm1201_vm7, %vm1201_vm7 }
  0xc7   : > { %11132 = vmatpush3.bf16.msra.mxu1 %v12738_v56  ;;  %v1310_v56 = vsel %vm1278_vm5, 65537, %v13112_v9  ;;  %v1314_v4 = vsel %vm1282_vm10, 65537, %v13112_v9 }
  0xc8   : > { %v10299_v10 = vcombine.low %v1314_v4, %v13591_v11 }
  0xca   : > { %11102 = vmatmul.mubr.bf16.gmra.mrb[16].mxu1 %v884_v58  ;;  %v445_v58 = vadd.s32 144, %v13560_v1  ;;  %v1394_v26 = vrot.slane %v10299_v10, 2 }
  0xcb   : > { %11105 = vmatprep.mubr.bf16.mxu1 %v885_v59  ;;  %v575_v59 = vand.u32 15, %v443_v55 }
  0xcd   : > { %vm1203_vm11 = vcmp.ge.s32.totalorder %v575_v59, 4 }
  0xce   : > { %vm1284_vm12 = vmpackc.low %vm1203_vm11, %vm1203_vm11 }
  0xcf   : > { %v1316_v14 = vsel %vm1284_vm12, 65537, %v13112_v9 }
  0xd0   : > { %v10300_v27 = vcombine.low %v1316_v14, %v13591_v11 }
  0xd2   : > { %11106 = vmatmul.mubr.bf16.gmra.mrb[20].mxu1 %v886_v60  ;;  %v447_v60 = vadd.s32 160, %v13560_v1 }
  0xd3   : > { %11109 = vmatprep.mubr.bf16.mxu1 %v887_v61  ;;  %v10297_v61 = vcombine.low %v1310_v56, %v13591_v11 }
  0xd4   : > { %v603_v0 = vand.u32 15, %v447_v60 }
  0xd5   : > { %v1390_v2 = vrot.slane %v10297_v61, 2 }
  0xd6   : > { %vm13660_vm3 = vcmp.ge.s32.totalorder %v603_v0, 4 }
  0xd7   : > { %v13666_v8 = vsel %vm1380_vm8, %v13629_v38, %v1390_v2  ;;  %vm1288_vm5 = vmpackc.low %vm13660_vm3, %vm13660_vm3  ;;  %v631_v38 = vand.u32 15, %v451_v19  ;;  %vm13743_vm3 = vcmp.ge.s32.totalorder %v645_v53, 4 }
  0xd8   : > { %vm1417_vm6 = vcmp.ne.s16.totalorder %v13666_v8, 0  ;;  %v1320_v32 = vsel %vm1288_vm5, 65537, %v13112_v9  ;;  %v12750_v8 = vld [vmem:[#allocation9 + $0x98] sm:$0xff]  }
  0xd9   : > { %v10302_v52 = vcombine.low %v1320_v32, %v13591_v11  ;;  %vm13719_vm11 = vcmp.ge.s32.totalorder %v631_v38, 4  ;;  %v438_v32 = vadd.s32 88, %v13560_v1 }
  0xda   : > { %11110 = vmatmul.mubr.bf16.gmra.mrb[24].mxu1 %v888_v62  ;;  %v10298_v62 = vcombine.low %v1312_v57, %v13591_v11 }
  0xdb   : > { %11113 = vmatprep.mubr.bf16.mxu1 %v889_v63  ;;  %v589_v63 = vand.u32 15, %v445_v58  ;;  %v13738_v14 = vrot.slane %v10302_v52, 2  ;;  %v540_v58 = vand.u32 15, %v438_v32  ;;  %v554_v32 = vand.u32 15, %v13774_v33 }
  0xdc   : > { %v1392_v3 = vrot.slane %v10298_v62, 2 }
  0xdd   : > { %vm13651_vm14 = vcmp.ge.s32.totalorder %v589_v63, 4  ;;  %vm13886_vm0 = vcmp.lt.s32.totalorder %v554_v32, 12 }
  0xde   : > { %v13670_v13 = vsel %vm1380_vm8, %v1390_v2, %v1392_v3  ;;  %vm1286_vm4 = vmpackc.low %vm13651_vm14, %vm13651_vm14 }
  0xdf   : > { %vm1418_vm7 = vcmp.ne.s16.totalorder %v13670_v13, 0  ;;  %v1318_v30 = vsel %vm1286_vm4, 65537, %v13112_v9  ;;  %vm1292_vm4 = vmpackc.low %vm13719_vm11, %vm13719_vm11 }
  0xe0   : > { %v10301_v51 = vcombine.low %v1318_v30, %v13591_v11  ;;  %v1324_v30 = vsel %vm1292_vm4, 65537, %v13112_v9  ;;  %vm1294_vm11 = vmpackc.low %vm13743_vm3, %vm13743_vm3 }
  0xe1   : > { %v10304_v53 = vcombine.low %v1324_v30, %v13591_v11 }
  0xe2   : > { %11114 = vmatmul.mubr.bf16.gmra.mrb[28].mxu1 %v890_v40  ;;  %v12739_v40 = vld [vmem:[#allocation9 + $0x40] sm:$0xff]  }
  0xe3   : > { %11133 = vmatprep.mubr.bf16.mxu1 %v1482_v35  ;;  %11165 = vmatprep.subr.bf16.mxu1 %v12739_v40 }
  0xea   : > { %11134 = vmatmul.mubr.bf16.vlgmr.msra.gmra.mrb[32].mxu1 %v1484_v36 }
  0xeb   : > { %11137 = vmatprep.mubr.bf16.mxu1 %v1484_v36  ;;  %11166 = vmatpush3.bf16.msra.mxu1 %v12739_v40 }
  0xec   : > { %11167 = vmatprep.subr.bf16.mxu1 %v12740_v41 }
  0xef   : > { %11168 = vmatpush3.bf16.msra.mxu1 %v12740_v41 }
  0xf0   : > { %11169 = vmatprep.subr.bf16.mxu1 %v12741_v42 }
  0xf2   : > { %11138 = vmatmul.mubr.bf16.gmra.mrb[36].mxu1 %v1484_v36  ;;  %v617_v36 = vand.u32 15, %v449_v17 }
  0xf3   : > { %11170 = vmatpush3.bf16.msra.mxu1 %v12741_v42  ;;  %v455_v42 = vadd.s32 224, %v13560_v1 }
  0xf4   : > { %11171 = vmatprep.subr.bf16.mxu1 %v12742_v43  ;;  %vm13715_vm10 = vcmp.ge.s32.totalorder %v617_v36, 4 }
  0xf5   : > { %v659_v63 = vand.u32 15, %v455_v42  ;;  %vm1290_vm14 = vmpackc.low %vm13715_vm10, %vm13715_vm10 }
  0xf7   : > { %11172 = vmatpush3.bf16.msra.mxu1 %v12742_v43  ;;  %v512_v43 = vand.u32 15, %v434_v22  ;;  %vm13754_vm10 = vcmp.ge.s32.totalorder %v659_v63, 4 }
  0xf8   : > { %11173 = vmatprep.subr.bf16.mxu1 %v12743_v44 }
  0xf9   : > { %vm13729_vm12 = vcmp.lt.s32.totalorder %v512_v43, 12 }
  0xfa   : > { %vm2131_vm4 = vmpackc.low %vm13729_vm12, %vm13729_vm12 }
  0xfb   : > { %11174 = vmatpush3.bf16.msra.mxu1 %v12743_v44 }
  0xfc   : > { %11175 = vmatprep.subr.bf16.mxu1 %v12744_v45 }
  0xff   : > { %11176 = vmatpush3.bf16.msra.mxu1 %v12744_v45  ;;  %v13701_v45 = vsel %vm1380_vm8, %v1392_v3, %v1394_v26 }
 0x100   : > { %11177 = vmatprep.subr.bf16.mxu1 %v12745_v46  ;;  %vm1419_vm2 = vcmp.ne.s16.totalorder %v13701_v45, 0 }
 0x103   : > { %11178 = vmatpush3.bf16.msra.mxu1 %v12745_v46  ;;  %v1396_v46 = vrot.slane %v10300_v27, 2 }
 0x104   : > { %11179 = vmatprep.subr.bf16.mxu1 %v12746_v47 }
 0x105   : > { %v13735_v5 = vsel %vm1380_vm8, %v1394_v26, %v1396_v46 }
 0x106   : > { %vm1420_vm5 = vcmp.ne.s16.totalorder %v13735_v5, 0 }
 0x107   : > { %11180 = vmatpush3.bf16.msra.mxu1 %v12746_v47  ;;  %v436_v47 = vadd.s32 72, %v13560_v1 }
 0x108   : > { %11213 = vmatprep.subr.bf16.mxu1 %v13637_v48 }
 0x109   : > { %v526_v7 = vand.u32 15, %v436_v47 }
 0x10b   : > { %vm13762_vm1 = vcmp.lt.s32.totalorder %v526_v7, 12  ;;  %v13823_v7 = vrot.slane %v10304_v53, 2 }
 0x17d   : > { %v11087_v12 = vpop.f32.mrb[0].mxu1 }
 0x17e   : > { %v1005_v15 = vadd.f32 %v11087_v12, %v13658_v6  ;;  %v996_v16 = vpop.f32.mrb[1].mxu1  ;;  %v1398_v12 = vrot.slane %v10301_v51, 2 }
 0x17f   : > { %v997_v20 = vadd.f32 %v13658_v6, %v996_v16  ;;  %v11088_v21 = vpop.f32.mrb[2].mxu1 }
 0x180   : > { %v1008_v23 = vadd.f32 %v11088_v21, %v13658_v6  ;;  %v999_v24 = vpop.f32.mrb[3].mxu1  ;;  %v1125_v34 = vmax.f32 %v1005_v15, 0.0  ;;  %v13784_v38 = vsel %vm1380_vm8, %v1396_v46, %v1398_v12 }
 0x181   : > { %v1000_v29 = vadd.f32 %v13658_v6, %v999_v24  ;;  %v1123_v40 = vmax.f32 %v997_v20, 0.0 }
 0x182   : > { %v1126_v35 = vmax.f32 %v1008_v23, 0.0 }
 0x183   : > { %v1124_v41 = vmax.f32 %v1000_v29, 0.0 }
 0x184   : > { %v13698_v44 = vpack.c.bf16 %v1126_v35, %v1125_v34 }
 0x185   : > { %v13704_v49 = vpack.c.bf16 %v1124_v41, %v1123_v40  ;;  %v11091_v50 = vpop.f32.mrb[4].mxu1  ;;  %v13788_v40 = vsel %vm1380_vm8, %v1398_v12, %v13738_v14 }
 0x186   : > { %1172 = vst [vmem:[#allocation2 + $0x50] sm:$0xff] %v13698_v44  ;;  %v1021_v54 = vadd.f32 %v11091_v50, %v13658_v6  ;;  %v1012_v55 = vpop.f32.mrb[5].mxu1  ;;  %v13713_v56 = vsel %vm1418_vm7, %v13698_v44, 0  ;;  %vm15485_vm3 = vcmp.ne.s16.totalorder %v13788_v40, 0 }
 0x187   : > { %1171 = vst [vmem:[#allocation2 + $0x48] sm:$0xff] %v13704_v49  ;;  %v1013_v59 = vadd.f32 %v13658_v6, %v1012_v55  ;;  %v11092_v60 = vpop.f32.mrb[6].mxu1  ;;  %v1434_v61 = vsel %vm1417_vm6, %v13704_v49, 0  ;;  %v1491_v62 = vrot.slane %v13713_v56, 6  ;;  %v1326_v56 = vsel %vm1294_vm11, 65537, %v13112_v9  ;;  %vm2133_vm11 = vmpackc.low %vm13762_vm1, %vm13762_vm1 }
 0x188   : > { %v1024_v2 = vadd.f32 %v11092_v60, %v13658_v6  ;;  %v1015_v3 = vpop.f32.mrb[7].mxu1  ;;  %v1489_v4 = vrot.slane %v1434_v61, 6  ;;  %v1129_v16 = vmax.f32 %v1021_v54, 0.0  ;;  %v457_v54 = vadd.s32 240, %v13560_v1 }
 0x189   : > { %v1016_v10 = vadd.f32 %v13658_v6, %v1015_v3  ;;  %v1127_v21 = vmax.f32 %v1013_v59, 0.0  ;;  %v2165_v23 = vsel %vm2133_vm11, 65537, %v13112_v9  ;;  %vm13843_vm1 = vcmp.lt.s32.totalorder %v540_v58, 12 }
 0x18a   : > { %v1130_v17 = vmax.f32 %v1024_v2, 0.0  ;;  %v1490_v19 = vsel %vm1479_vm15, %v13617_v31, %v1489_v4  ;;  %v1492_v20 = vsel %vm1479_vm15, %v1489_v4, %v1491_v62  ;;  %v1322_v31 = vsel %vm1290_vm14, 65537, %v13112_v9  ;;  %vm1296_vm14 = vmpackc.low %vm13754_vm10, %vm13754_vm10 }
 0x18b   : > { %v1128_v22 = vmax.f32 %v1016_v10, 0.0  ;;  %11141 = vmatprep.mubr.bf16.mxu1 %v1490_v19  ;;  %v10303_v47 = vcombine.low %v1322_v31, %v13591_v11  ;;  %v1328_v57 = vsel %vm1296_vm14, 65537, %v13112_v9  ;;  %vm1421_vm10 = vcmp.ne.s16.totalorder %v13784_v38, 0 }
 0x18c   : > { %v13758_v24 = vpack.c.bf16 %v1130_v17, %v1129_v16  ;;  %11142 = vmatmul.mubr.bf16.gmra.mrb[40].mxu1 %v1492_v20  ;;  %v673_v10 = vand.u32 15, %v457_v54  ;;  %v10305_v16 = vcombine.low %v1326_v56, %v13591_v11  ;;  %v10306_v17 = vcombine.low %v1328_v57, %v13591_v11 }
 0x18d   : > { %v13766_v27 = vpack.c.bf16 %v1128_v22, %v1127_v21  ;;  %v11095_v29 = vpop.f32.mrb[8].mxu1  ;;  %v2163_v19 = vsel %vm2131_vm4, 65537, %v13112_v9 }
 0x18e   : > { %1174 = vst [vmem:[#allocation2 + $0x60] sm:$0xff] %v13758_v24  ;;  %v1037_v34 = vadd.f32 %v11095_v29, %v13658_v6  ;;  %v1028_v35 = vpop.f32.mrb[9].mxu1  ;;  %v13781_v36 = vsel %vm1420_vm5, %v13758_v24, 0  ;;  %vm13859_vm12 = vcmp.ge.s32.totalorder %v673_v10, 4  ;;  %v13868_v33 = vrot.slane %v10306_v17, 2 }
 0x18f   : > { %1173 = vst [vmem:[#allocation2 + $0x58] sm:$0xff] %v13766_v27  ;;  %v1029_v41 = vadd.f32 %v13658_v6, %v1028_v35  ;;  %v11096_v42 = vpop.f32.mrb[10].mxu1  ;;  %v1436_v43 = vsel %vm1419_vm2, %v13766_v27, 0  ;;  %v1495_v46 = vrot.slane %v13781_v36, 6  ;;  %vm1298_vm4 = vmpackc.low %vm13859_vm12, %vm13859_vm12 }
 0x190   : > { %v1040_v50 = vadd.f32 %v11096_v42, %v13658_v6  ;;  %v1031_v51 = vpop.f32.mrb[11].mxu1  ;;  %v1493_v52 = vrot.slane %v1436_v43, 6  ;;  %v1133_v59 = vmax.f32 %v1037_v34, 0.0 }
 0x191   : > { %v1032_v55 = vadd.f32 %v13658_v6, %v1031_v51  ;;  %v1131_v2 = vmax.f32 %v1029_v41, 0.0 }
 0x192   : > { %v1134_v60 = vmax.f32 %v1040_v50, 0.0  ;;  %v1494_v61 = vsel %vm1479_vm15, %v1491_v62, %v1493_v52  ;;  %v1496_v63 = vsel %vm1479_vm15, %v1493_v52, %v1495_v46  ;;  %v1402_v62 = vrot.slane %v10303_v47, 2 }
 0x193   : > { %v1132_v3 = vmax.f32 %v1032_v55, 0.0  ;;  %11145 = vmatprep.mubr.bf16.mxu1 %v1494_v61  ;;  %v1406_v50 = vrot.slane %v10305_v16, 2 }
 0x194   : > { %v13821_v4 = vpack.c.bf16 %v1134_v60, %v1133_v59  ;;  %11146 = vmatmul.mubr.bf16.gmra.mrb[44].mxu1 %v1496_v63  ;;  %v13857_v41 = vsel %vm1380_vm8, %v1402_v62, %v13823_v7  ;;  %v13866_v47 = vsel %vm1380_vm8, %v13738_v14, %v1402_v62  ;;  %v10327_v14 = vcombine.low %v13591_v11, %v2163_v19 }
 0x195   : > { %v13825_v12 = vpack.c.bf16 %v1132_v3, %v1131_v2  ;;  %v11099_v15 = vpop.f32.mrb[12].mxu1  ;;  %vm1424_vm14 = vcmp.ne.s16.totalorder %v13857_v41, 0  ;;  %vm1423_vm11 = vcmp.ne.s16.totalorder %v13866_v47, 0  ;;  %v13899_v3 = vsel %vm1380_vm8, %v1406_v50, %v13868_v33  ;;  %v14574_v47 = vld [vmem:[#allocation2 + $0x20] sm:$0xff] }
 0x196   : > { %1176 = vst [vmem:[#allocation2 + $0x70] sm:$0xff] %v13821_v4  ;;  %v1053_v20 = vadd.f32 %v11099_v15, %v13658_v6  ;;  %v1044_v21 = vpop.f32.mrb[13].mxu1  ;;  %v13840_v22 = vsel %vm15485_vm3, %v13821_v4, 0  ;;  %vm2135_vm3 = vmpackc.low %vm13843_vm1, %vm13843_vm1  ;;  %v1330_v62 = vsel %vm1298_vm4, 65537, %v13112_v9  ;;  %v13908_v19 = vrot.slane %v10327_v14, 6 }
 0x197   : > { %1175 = vst [vmem:[#allocation2 + $0x68] sm:$0xff] %v13825_v12  ;;  %v1045_v0 = vadd.f32 %v13658_v6, %v1044_v21  ;;  %v11100_v26 = vpop.f32.mrb[14].mxu1  ;;  %v1438_v29 = vsel %vm1421_vm10, %v13825_v12, 0  ;;  %v1499_v30 = vrot.slane %v13840_v22, 6  ;;  %vm15492_vm12 = vcmp.ne.s16.totalorder %v13899_v3, 0  ;;  %vm2137_vm4 = vmpackc.low %vm13886_vm0, %vm13886_vm0 }
 0x198   : > { %v1056_v34 = vadd.f32 %v11100_v26, %v13658_v6  ;;  %v1047_v35 = vpop.f32.mrb[15].mxu1  ;;  %v1497_v36 = vrot.slane %v1438_v29, 6  ;;  %v1137_v51 = vmax.f32 %v1053_v20, 0.0 }
 0x199   : > { %v1048_v43 = vadd.f32 %v13658_v6, %v1047_v35  ;;  %v1135_v55 = vmax.f32 %v1045_v0, 0.0  ;;  %v2167_v0 = vsel %vm2135_vm3, 65537, %v13112_v9  ;;  %v10307_v35 = vcombine.low %v1330_v62, %v13591_v11 }
 0x19a   : > { %v1138_v52 = vmax.f32 %v1056_v34, 0.0  ;;  %v1498_v53 = vsel %vm1479_vm15, %v1495_v46, %v1497_v36  ;;  %v1500_v54 = vsel %vm1479_vm15, %v1497_v36, %v1499_v30  ;;  %v10328_v46 = vcombine.low %v13591_v11, %v2165_v23 }
 0x19b   : > { %v1136_v56 = vmax.f32 %v1048_v43, 0.0  ;;  %11149 = vmatprep.mubr.bf16.mxu1 %v1498_v53  ;;  %v13926_v34 = vsel %vm1380_vm8, %v13823_v7, %v1406_v50  ;;  %v13950_v14 = vrot.slane %v10307_v35, 2 }
 0x19c   : > { %v13877_v57 = vpack.c.bf16 %v1138_v52, %v1137_v51  ;;  %11150 = vmatmul.mubr.bf16.gmra.mrb[48].mxu1 %v1500_v54  ;;  %v13911_v23 = vrot.slane %v10328_v46, 6  ;;  %vm1425_vm0 = vcmp.ne.s16.totalorder %v13926_v34, 0  ;;  %v2169_v54 = vsel %vm2137_vm4, 65537, %v13112_v9  ;;  %v3883_v34 = vld [vmem:[#allocation2 + $0xe0] sm:$0x3f] }
 0x19d   : > { %v13881_v58 = vpack.c.bf16 %v1136_v56, %v1135_v55  ;;  %v11103_v59 = vpop.f32.mrb[16].mxu1  ;;  %v13921_v29 = vld [vmem:[#allocation2 + $0x70] sm:$0xff] }
 0x19e   : > { %1178 = vst [vmem:[#allocation2 + $0x80] sm:$0xff] %v13877_v57  ;;  %v1069_v61 = vadd.f32 %v11103_v59, %v13658_v6  ;;  %v1060_v63 = vpop.f32.mrb[17].mxu1  ;;  %v13895_v2 = vsel %vm1424_vm14, %v13877_v57, 0  ;;  %v13919_v26 = vld [vmem:[#allocation2 + $0x68] sm:$0xff]  ;;  %15562 = vst [vmem:[#allocation19_spill] sm:$0xff] %v13921_v29  ;;  %v2711_v50 = vsel %vm1418_vm7, %v13921_v29, 0 }
 0x19f   : > { %1177 = vst [vmem:[#allocation2 + $0x78] sm:$0xff] %v13881_v58  ;;  %v1061_v10 = vadd.f32 %v13658_v6, %v1060_v63  ;;  %v11104_v15 = vpop.f32.mrb[18].mxu1  ;;  %v1440_v16 = vsel %vm1423_vm11, %v13881_v58, 0  ;;  %v1503_v17 = vrot.slane %v13895_v2, 6  ;;  %15561 = vst [vmem:[#allocation18_spill] sm:$0xff] %v13919_v26  ;;  %v13938_v7 = vsel %vm1417_vm6, %v13919_v26, 0 }
 0x1a0   : > { %v1072_v20 = vadd.f32 %v11104_v15, %v13658_v6  ;;  %v1063_v21 = vpop.f32.mrb[19].mxu1  ;;  %v1501_v22 = vrot.slane %v1440_v16, 6  ;;  %v1141_v31 = vmax.f32 %v1069_v61, 0.0  ;;  %v15487_v46 = vrot.slane %v13938_v7, 6 }
 0x1a1   : > { %v1064_v32 = vadd.f32 %v13658_v6, %v1063_v21  ;;  %v1139_v51 = vmax.f32 %v1061_v10, 0.0  ;;  %v2766_v59 = vrot.slane %v2711_v50, 6  ;;  %v13967_v21 = vsel %vm1479_vm15, %v13908_v19, %v13911_v23 }
 0x1a2   : > { %v1142_v36 = vmax.f32 %v1072_v20, 0.0  ;;  %v1502_v42 = vsel %vm1479_vm15, %v1499_v30, %v1501_v22  ;;  %v1504_v43 = vsel %vm1479_vm15, %v1501_v22, %v1503_v17  ;;  %v10329_v30 = vcombine.low %v13591_v11, %v2167_v0 }
 0x1a3   : > { %v1140_v52 = vmax.f32 %v1064_v32, 0.0  ;;  %11153 = vmatprep.mubr.bf16.mxu1 %v1502_v42  ;;  %v10330_v22 = vcombine.low %v13591_v11, %v2169_v54  ;;  %v13983_v42 = vsel %vm1479_vm15, %v15487_v46, %v2766_v59  ;;  %vm2271_vm1 = vcmp.ne.s16.totalorder %v13967_v21, 0 }
 0x1a4   : > { %v13943_v53 = vpack.c.bf16 %v1142_v36, %v1141_v31  ;;  %11154 = vmatmul.mubr.bf16.gmra.mrb[52].mxu1 %v1504_v43  ;;  %v13978_v31 = vsel %vm1380_vm8, %v13868_v33, %v13950_v14  ;;  %v2245_v36 = vrot.slane %v10329_v30, 6 }
 0x1a5   : > { %v13948_v55 = vpack.c.bf16 %v1140_v52, %v1139_v51  ;;  %v11107_v56 = vpop.f32.mrb[20].mxu1  ;;  %v13972_v32 = vld [vmem:[#allocation2 + $0x80] sm:$0xff]  ;;  %vm15486_vm3 = vcmp.ne.s16.totalorder %v13978_v31, 0 }
 0x1a6   : > { %1180 = vst [vmem:[#allocation2 + $0x90] sm:$0xff] %v13943_v53  ;;  %v1085_v60 = vadd.f32 %v11107_v56, %v13658_v6  ;;  %v1076_v61 = vpop.f32.mrb[21].mxu1  ;;  %v1443_v63 = vsel %vm15492_vm12, %v13943_v53, 0  ;;  %v13970_v0 = vld [vmem:[#allocation2 + $0x78] sm:$0xff]  ;;  %15564 = vst [vmem:[#allocation21_spill] sm:$0xff] %v13972_v32  ;;  %v2713_v30 = vsel %vm1420_vm5, %v13972_v32, 0 }
 0x1a7   : > { %1179 = vst [vmem:[#allocation2 + $0x88] sm:$0xff] %v13948_v55  ;;  %v1077_v9 = vadd.f32 %v13658_v6, %v1076_v61  ;;  %v11108_v2 = vpop.f32.mrb[22].mxu1  ;;  %v1442_v62 = vsel %vm1425_vm0, %v13948_v55, 0  ;;  %v1507_v10 = vrot.slane %v1443_v63, 6  ;;  %15563 = vst [vmem:[#allocation20_spill] sm:$0xff] %v13970_v0  ;;  %v2712_v33 = vsel %vm1419_vm2, %v13970_v0, 0 }
 0x1a8   : > { %v1088_v15 = vadd.f32 %v11108_v2, %v13658_v6  ;;  %v1079_v16 = vpop.f32.mrb[23].mxu1  ;;  %v1505_v20 = vrot.slane %v1442_v62, 6  ;;  %v1145_v43 = vmax.f32 %v1085_v60, 0.0  ;;  %v2768_v60 = vrot.slane %v2712_v33, 6 }
 0x1a9   : > { %v1080_v35 = vadd.f32 %v13658_v6, %v1079_v16  ;;  %v1143_v54 = vmax.f32 %v1077_v9, 0.0  ;;  %v14000_v2 = vsel %vm1479_vm15, %v13911_v23, %v2245_v36 }
 0x1aa   : > { %v1146_v51 = vmax.f32 %v1088_v15, 0.0  ;;  %v1506_v52 = vsel %vm1479_vm15, %v1503_v17, %v1505_v20  ;;  %v1508_v50 = vsel %vm1479_vm15, %v1505_v20, %v1507_v10  ;;  %v2770_v17 = vrot.slane %v2713_v30, 6 }
 0x1ab   : > { %v1144_v56 = vmax.f32 %v1080_v35, 0.0  ;;  %11157 = vmatprep.mubr.bf16.mxu1 %v1506_v52  ;;  %v14006_v16 = vsel %vm1479_vm15, %v2766_v59, %v2768_v60  ;;  %v14018_v52 = vrot.slane %v10330_v22, 6  ;;  %v14023_v59 = vsel %vm2271_vm1, %v13919_v26, 0 }
 0x1ac   : > { %v13993_v61 = vpack.c.bf16 %v1146_v51, %v1145_v43  ;;  %11158 = vmatmul.mubr.bf16.gmra.mrb[56].mxu1 %v1508_v50  ;;  %v14009_v20 = vsel %vm1479_vm15, %v2768_v60, %v2770_v17  ;;  %15565 = vst [vmem:[#allocation22_spill] sm:$0xff] %v14023_v59  ;;  %vm2272_vm4 = vcmp.ne.s16.totalorder %v14000_v2, 0 }
 0x1ad   : > { %v13996_v63 = vpack.c.bf16 %v1144_v56, %v1143_v54  ;;  %v11111_v9 = vpop.f32.mrb[24].mxu1 }
 0x1ae   : > { %1182 = vst [vmem:[#allocation2 + $0xa0] sm:$0xff] %v13993_v61  ;;  %v1101_v62 = vadd.f32 %v11111_v9, %v13658_v6  ;;  %v1092_v15 = vpop.f32.mrb[25].mxu1  ;;  %v14011_v35 = vld [vmem:[#allocation2 + $0x88] sm:$0xff]  ;;  %v3468_v9 = vsel %vm2272_vm4, %v13921_v29, 0 }
 0x1af   : > { %1181 = vst [vmem:[#allocation2 + $0x98] sm:$0xff] %v13996_v63  ;;  %v1093_v23 = vadd.f32 %v13658_v6, %v1092_v15  ;;  %v11112_v43 = vpop.f32.mrb[26].mxu1  ;;  %v1444_v51 = vsel %vm15486_vm3, %v13996_v63, 0  ;;  %v14031_v22 = vsel %vm1421_vm10, %v14011_v35, 0  ;;  %vm15503_vm3 = vcmp.ne.s16.totalorder %v13950_v14, 0 }
 0x1b0   : > { %v1149_v50 = vmax.f32 %v1101_v62, 0.0  ;;  %v1104_v54 = vadd.f32 %v11112_v43, %v13658_v6  ;;  %v1095_v56 = vpop.f32.mrb[27].mxu1  ;;  %v1509_v33 = vrot.slane %v1444_v51, 6  ;;  %v15494_v43 = vrot.slane %v14023_v59, 2 }
 0x1b1   : > { %v1147_v30 = vmax.f32 %v1093_v23, 0.0  ;;  %v1096_v60 = vadd.f32 %v13658_v6, %v1095_v56  ;;  %v14041_v23 = vsel %vm1479_vm15, %v2245_v36, %v14018_v52  ;;  %v15493_v56 = vrot.slane %v14031_v22, 6 }
 0x1b2   : > { %v1150_v15 = vmax.f32 %v1104_v54, 0.0  ;;  %v1510_v62 = vsel %vm1479_vm15, %v1507_v10, %v1509_v33  ;;  %v3522_v32 = vrot.slane %v3468_v9, 2  ;;  %vm2273_vm12 = vcmp.ne.s16.totalorder %v14041_v23, 0  ;;  %v12759_v23 = vld [vmem:[#allocation9 + $0xe0] sm:$0xff]  }
 0x1b3   : > { %v1148_v51 = vmax.f32 %v1096_v60, 0.0  ;;  %11161 = vmatprep.mubr.bf16.mxu1 %v1510_v62  ;;  %v14049_v10 = vsel %vm1479_vm15, %v2770_v17, %v15493_v56 }
 0x1b4   : > { %v1168_v46 = vpack.c.bf16 %v1150_v15, %v1149_v50  ;;  %v14058_v50 = vsel %vm1380_vm8, %v15494_v43, %v3522_v32 }
 0x1b5   : > { %v14044_v26 = vpack.c.bf16 %v1148_v51, %v1147_v30  ;;  %v1267_v29 = vld [vmem:[#allocation2 + $0xa0] sm:$0x3f]  ;;  %v11115_v54 = vpop.f32.mrb[28].mxu1  ;;  %15566 = vst [vmem:[#allocation23_spill] sm:$0xff] %v14058_v50 }
 0x1b6   : > { %1184 = vst [vmem:[#allocation2 + $0xb0] sm:$0xff] %v1168_v46  ;;  %v1445_v60 = vsel %vm15503_vm3, %v1267_v29, 0  ;;  %v1117_v36 = vadd.f32 %v11115_v54, %v13658_v6  ;;  %v1108_v62 = vpop.f32.mrb[29].mxu1  ;;  %v14065_v29 = vsel %vm2273_vm12, %v13970_v0, 0 }
 0x1b7   : > { %1183 = vst [vmem:[#allocation2 + $0xa8] sm:$0xff] %v14044_v26  ;;  %v1511_v30 = vrot.slane %v1445_v60, 6  ;;  %v1109_v17 = vadd.f32 %v13658_v6, %v1108_v62  ;;  %v11116_v9 = vpop.f32.mrb[30].mxu1  ;;  %15567 = vst [vmem:[#allocation24_spill] sm:$0xff] %v14065_v29  ;;  %v15499_v60 = vrot.slane %v14065_v29, 2  ;;  %v14071_v62 = vld [vmem:[#allocation2 + $0x20] sm:$0xff] }
 0x1b8   : > { %v1153_v46 = vmax.f32 %v1117_v36, 0.0  ;;  %v1120_v15 = vadd.f32 %v11116_v9, %v13658_v6  ;;  %v1111_v51 = vpop.f32.mrb[31].mxu1  ;;  %v12756_v29 = vld [vmem:[#allocation9 + $0xc8] sm:$0xff]  }
 0x1b9   : > { %v1512_v54 = vsel %vm1479_vm15, %v1509_v33, %v1511_v30  ;;  %v1151_v56 = vmax.f32 %v1109_v17, 0.0  ;;  %v1112_v43 = vadd.f32 %v13658_v6, %v1111_v51  ;;  %v14079_v36 = vsel %vm1380_vm8, %v3522_v32, %v15499_v60  ;;  %v12748_v6 = vld [vmem:[#allocation9 + $0x88] sm:$0xff]   ;;  %v14086_v30 = vld [vmem:[#allocation2 + $0x90] sm:$0xff]  ;;  %v12749_v32 = vld [vmem:[#allocation9 + $0x90] sm:$0xff]  }
 0x1ba   : > { %11162 = vmatmul.mubr.bf16.gmra.mrb[60].mxu1 %v1512_v54  ;;  %v1154_v50 = vmax.f32 %v1120_v15, 0.0  ;;  %15568 = vst [vmem:[#allocation25_spill] sm:$0xff] %v14079_v36  ;;  %v14088_v17 = vld [vmem:[#allocation2 + $0x98] sm:$0xff]  ;;  %v14237_v36 = vld [vmem:[#allocation2 + $0x50] sm:$0xff] }
 0x1bb   : > { %11181 = vmatprep.mubr.bf16.mxu1 %v14071_v62  ;;  %v1152_v59 = vmax.f32 %v1112_v43, 0.0  ;;  %v14092_v43 = vld [vmem:[#allocation2 + $0xa0] sm:$0xff] }
 0x1bc   : > { %v14074_v0 = vpack.c.bf16 %v1154_v50, %v1153_v46  ;;  %v3890_v50 = vsel %vm1418_vm7, %v14086_v30, 0  ;;  %v3892_v51 = vsel %vm1420_vm5, %v14092_v43, 0 }
 0x1bd   : > { %v14081_v33 = vpack.c.bf16 %v1152_v59, %v1151_v56  ;;  %v14099_v56 = vsel %vm1417_vm6, %v14011_v35, 0  ;;  %v3945_v46 = vrot.slane %v3890_v50, 6  ;;  %v3949_v54 = vrot.slane %v3892_v51, 6 }
 0x1be   : > { %1186 = vst [vmem:[#allocation2 + $0xc0] sm:$0xff] %v14074_v0  ;;  %v14094_v59 = vld [vmem:[#allocation2 + $0xa8] sm:$0xff]  ;;  %15569 = vst [vmem:[#allocation26_spill] sm:$0xff] %v14099_v56  ;;  %v15498_v9 = vrot.slane %v14099_v56, 6 }
 0x1bf   : > { %1185 = vst [vmem:[#allocation2 + $0xb8] sm:$0xff] %v14081_v33  ;;  %v14114_v13 = vsel %vm1421_vm10, %v14094_v59, 0 }
 0x1c0   : > { %15570 = vst [vmem:[#allocation27_spill] sm:$0xff] %v14114_v13  ;;  %v14119_v45 = vsel %vm1479_vm15, %v15498_v9, %v3945_v46  ;;  %v15497_v50 = vrot.slane %v14114_v13, 6  ;;  %v430_v13 = vadd.s32 24, %v13560_v1 }
 0x1c1   : > { %15571 = vst [vmem:[#allocation28_spill] sm:$0xff] %v14119_v45 }
 0x1c2   : > { %11182 = vmatmul.mubr.bf16.vlgmr.msra.gmra.mrb[32].mxu1 %v14071_v62  ;;  %v14133_v38 = vsel %vm1479_vm15, %v3949_v54, %v15497_v50  ;;  %v12752_v50 = vld [vmem:[#allocation9 + $0xa8] sm:$0xff]  }
 0x1c3   : > { %11214 = vmatpush3.bf16.msra.mxu1 %v13637_v48  ;;  %11185 = vmatprep.mubr.bf16.mxu1 %v14071_v62  ;;  %v3891_v48 = vsel %vm1419_vm2, %v14088_v17, 0  ;;  %15574 = vst [vmem:[#allocation31_spill] sm:$0xff] %v14133_v38 }
 0x1c4   : > { %11215 = vmatprep.subr.bf16.mxu1 %v12748_v6  ;;  %v3947_v15 = vrot.slane %v3891_v48, 6  ;;  %v12751_v48 = vld [vmem:[#allocation9 + $0xa0] sm:$0xff]  }
 0x1c6   : > { %v14127_v5 = vsel %vm1479_vm15, %v3947_v15, %v3949_v54 }
 0x1c7   : > { %11216 = vmatpush3.bf16.msra.mxu1 %v12748_v6  ;;  %v14122_v6 = vsel %vm1479_vm15, %v3945_v46, %v3947_v15  ;;  %15573 = vst [vmem:[#allocation30_spill] sm:$0xff] %v14127_v5  ;;  %v14138_v46 = vsel %vm2271_vm1, %v14011_v35, 0  ;;  %v4647_v15 = vsel %vm2272_vm4, %v14086_v30, 0 }
 0x1c8   : > { %11217 = vmatprep.subr.bf16.mxu1 %v12749_v32  ;;  %15572 = vst [vmem:[#allocation29_spill] sm:$0xff] %v14122_v6  ;;  %15575 = vst [vmem:[#allocation32_spill] sm:$0xff] %v14138_v46  ;;  %v4701_v51 = vrot.slane %v4647_v15, 2  ;;  %v12753_v15 = vld [vmem:[#allocation9 + $0xb0] sm:$0xff]  }
 0x1ca   : > { %11186 = vmatmul.mubr.bf16.gmra.mrb[36].mxu1 %v14071_v62 }
 0x1cb   : > { %11189 = vmatprep.mubr.bf16.mxu1 %v13704_v49  ;;  %11218 = vmatpush3.bf16.msra.mxu1 %v12749_v32  ;;  %v14146_v49 = vsel %vm2273_vm12, %v14088_v17, 0  ;;  %v15502_v32 = vrot.slane %v14138_v46, 2 }
 0x1cc   : > { %11219 = vmatprep.subr.bf16.mxu1 %v12750_v8  ;;  %15576 = vst [vmem:[#allocation33_spill] sm:$0xff] %v14146_v49  ;;  %v15504_v54 = vrot.slane %v14146_v49, 2 }
 0x1cd   : > { %v14153_v9 = vsel %vm1380_vm8, %v15502_v32, %v4701_v51  ;;  %v12754_v32 = vld [vmem:[#allocation9 + $0xb8] sm:$0xff]  }
 0x1ce   : > { %15577 = vst [vmem:[#allocation34_spill] sm:$0xff] %v14153_v9  ;;  %v14158_v60 = vsel %vm1380_vm8, %v4701_v51, %v15504_v54  ;;  %v484_v9 = vand.u32 15, %v430_v13 }
 0x1cf   : > { %11220 = vmatpush3.bf16.msra.mxu1 %v12750_v8  ;;  %15578 = vst [vmem:[#allocation35_spill] sm:$0xff] %v14158_v60  ;;  %v428_v8 = vadd.s32 8, %v13560_v1  ;;  %v444_v60 = vadd.s32 136, %v13560_v1 }
 0x1d0   : > { %11221 = vmatprep.subr.bf16.mxu1 %v12751_v48  ;;  %vm1222_vm6 = vcmp.lt.s32.totalorder %v484_v9, 12 }
 0x1d1   : > { %v470_v46 = vand.u32 15, %v428_v8  ;;  %vm2127_vm5 = vmpackc.low %vm1222_vm6, %vm1222_vm6 }
 0x1d2   : > { %11190 = vmatmul.mubr.bf16.gmra.mrb[40].mxu1 %v13698_v44  ;;  %v14166_v44 = vld [vmem:[#allocation9 + $0xc0] sm:$0xff]   ;;  %v2159_v51 = vsel %vm2127_vm5, 65537, %v14071_v62 }
 0x1d3   : > { %11193 = vmatprep.mubr.bf16.mxu1 %v13766_v27  ;;  %11222 = vmatpush3.bf16.msra.mxu1 %v12751_v48  ;;  %vm1220_vm2 = vcmp.lt.s32.totalorder %v470_v46, 12  ;;  %v432_v48 = vadd.s32 40, %v13560_v1  ;;  %v10325_v46 = vcombine.low %v13591_v11, %v2159_v51 }
 0x1d4   : > { %11223 = vmatprep.subr.bf16.mxu1 %v12752_v50  ;;  %vm2125_vm7 = vmpackc.low %vm1220_vm2, %vm1220_vm2 }
 0x1d5   : > { %v2157_v13 = vsel %vm2125_vm7, 65537, %v14071_v62 }
 0x1d6   : > { %v10324_v9 = vcombine.low %v13591_v11, %v2157_v13  ;;  %v2107_v13 = vld [vmem:[#allocation2 + $0x28] sm:$0xfc] }
 0x1d7   : > { %11224 = vmatpush3.bf16.msra.mxu1 %v12752_v50  ;;  %v498_v50 = vand.u32 15, %v432_v48  ;;  %v442_v48 = vadd.s32 120, %v13560_v1 }
 0x1d8   : > { %11225 = vmatprep.subr.bf16.mxu1 %v12753_v15  ;;  %v14176_v8 = vrot.slane %v10324_v9, 6 }
 0x1d9   : > { %vm1224_vm10 = vcmp.lt.s32.totalorder %v498_v50, 12  ;;  %v568_v51 = vand.u32 15, %v442_v48  ;;  %v446_v48 = vadd.s32 152, %v13560_v1 }
 0x1da   : > { %11194 = vmatmul.mubr.bf16.gmra.mrb[44].mxu1 %v13758_v24  ;;  %vm2129_vm3 = vmpackc.low %vm1224_vm10, %vm1224_vm10  ;;  %vm2267_vm2 = vcmp.ne.s16.totalorder %v14176_v8, 0 }
 0x1db   : > { %11197 = vmatprep.mubr.bf16.mxu1 %v13825_v12  ;;  %11226 = vmatpush3.bf16.msra.mxu1 %v12753_v15  ;;  %v2161_v15 = vsel %vm2129_vm3, 65537, %v14071_v62  ;;  %v2284_v9 = vsel %vm2267_vm2, %v2107_v13, 0  ;;  %vm1234_vm3 = vcmp.lt.s32.totalorder %v568_v51, 12 }
 0x1dc   : > { %11227 = vmatprep.subr.bf16.mxu1 %v12754_v32  ;;  %v10326_v50 = vcombine.low %v13591_v11, %v2161_v15  ;;  %v2334_v38 = vrot.slane %v2284_v9, 2  ;;  %vm2139_vm5 = vmpackc.low %vm1234_vm3, %vm1234_vm3  ;;  %v596_v9 = vand.u32 15, %v446_v48  ;;  %v450_v48 = vadd.s32 184, %v13560_v1 }
 0x1dd   : > { %v2171_v51 = vsel %vm2139_vm5, 65537, %v14071_v62 }
 0x1de   : > { %v2239_v49 = vrot.slane %v10326_v50, 6  ;;  %v582_v50 = vand.u32 15, %v444_v60  ;;  %v10331_v45 = vcombine.low %v13591_v11, %v2171_v51  ;;  %v624_v51 = vand.u32 15, %v450_v48 }
 0x1df   : > { %11228 = vmatpush3.bf16.msra.mxu1 %v12754_v32  ;;  %v2237_v32 = vrot.slane %v10325_v46, 6 }
 0x1e0   : > { %11261 = vmatprep.subr.bf16.mxu1 %v14166_v44  ;;  %v14203_v13 = vsel %vm1479_vm15, %v2239_v49, %v13908_v19  ;;  %vm14216_vm3 = vcmp.lt.s32.totalorder %v582_v50, 12 }
 0x1e1   : > { %v14184_v54 = vsel %vm1479_vm15, %v14176_v8, %v2237_v32  ;;  %v14197_v15 = vsel %vm1479_vm15, %v2237_v32, %v2239_v49  ;;  %15580 = vst [vmem:[#allocation37_spill] sm:$0xff] %v14203_v13  ;;  %vm15507_vm10 = vcmp.ne.s16.totalorder %v14203_v13, 0  ;;  %vm2141_vm5 = vmpackc.low %vm14216_vm3, %vm14216_vm3 }
 0x1e2   : > { %11198 = vmatmul.mubr.bf16.gmra.mrb[48].mxu1 %v13821_v4  ;;  %vm2268_vm6 = vcmp.ne.s16.totalorder %v14184_v54, 0  ;;  %15579 = vst [vmem:[#allocation36_spill] sm:$0xff] %v14197_v15  ;;  %vm15506_vm7 = vcmp.ne.s16.totalorder %v14197_v15, 0  ;;  %v2287_v49 = vsel %vm15507_vm10, %v14071_v62, 0  ;;  %v2173_v60 = vsel %vm2141_vm5, 65537, %v14071_v62 }
 0x1e3   : > { %11201 = vmatprep.mubr.bf16.mxu1 %v13881_v58  ;;  %v2285_v46 = vsel %vm2268_vm6, %v14071_v62, 0  ;;  %v2286_v32 = vsel %vm15506_vm7, %v14071_v62, 0  ;;  %vm14221_vm7 = vcmp.lt.s32.totalorder %v596_v9, 12  ;;  %v10332_v21 = vcombine.low %v13591_v11, %v2173_v60  ;;  %v12758_v60 = vld [vmem:[#allocation9 + $0xd8] sm:$0xff]  }
 0x1e4   : > { %v2335_v5 = vrot.slane %v2285_v46, 2  ;;  %v2337_v19 = vrot.slane %v2286_v32, 2  ;;  %v14231_v32 = vld [vmem:[#allocation2 + $0x48] sm:$0xff]  ;;  %vm2143_vm10 = vmpackc.low %vm14221_vm7, %vm14221_vm7  ;;  %v12757_v46 = vld [vmem:[#allocation9 + $0xd0] sm:$0xff]  }
 0x1e5   : > { %v2175_v13 = vsel %vm2143_vm10, 65537, %v14071_v62 }
 0x1e6   : > { %v2336_v6 = vsel %vm1380_vm8, %v2334_v38, %v2335_v5  ;;  %v448_v38 = vadd.s32 168, %v13560_v1  ;;  %v2338_v50 = vsel %vm1380_vm8, %v2335_v5, %v2337_v19  ;;  %v2288_v5 = vsel %vm2271_vm1, %v14231_v32, 0 }
 0x1e7   : > { %vm14254_vm1 = vcmp.lt.s32.totalorder %v624_v51, 12 }
 0x1e8   : > { %v610_v9 = vand.u32 15, %v448_v38  ;;  %vm2147_vm10 = vmpackc.low %vm14254_vm1, %vm14254_vm1 }
 0x1ea   : > { %11202 = vmatmul.mubr.bf16.gmra.mrb[52].mxu1 %v13877_v57  ;;  %vm14248_vm7 = vcmp.lt.s32.totalorder %v610_v9, 12 }
 0x1eb   : > { %11205 = vmatprep.mubr.bf16.mxu1 %v13948_v55 }
 0x1f2   : > { %11206 = vmatmul.mubr.bf16.gmra.mrb[56].mxu1 %v13943_v53 }
 0x1f3   : > { %11209 = vmatprep.mubr.bf16.mxu1 %v13996_v63 }
 0x1fa   : > { %11210 = vmatmul.mubr.bf16.gmra.mrb[60].mxu1 %v13993_v61 }
 0x1fb   : > { %11229 = vmatprep.mubr.bf16.mxu1 %v2336_v6  ;;  %v2339_v6 = vrot.slane %v2287_v49, 2  ;;  %v2249_v49 = vrot.slane %v10331_v45, 6  ;;  %v452_v45 = vadd.s32 200, %v13560_v1 }
 0x1fd   : > { %v2340_v56 = vsel %vm1380_vm8, %v2337_v19, %v2339_v6  ;;  %v2289_v19 = vsel %vm2272_vm4, %v14237_v36, 0  ;;  %v14261_v2 = vsel %vm1479_vm15, %v14018_v52, %v2249_v49  ;;  %vm2145_vm4 = vmpackc.low %vm14248_vm7, %vm14248_vm7  ;;  %v638_v51 = vand.u32 15, %v452_v45 }
 0x1fe   : > { %v2343_v9 = vrot.slane %v2289_v19, 2  ;;  %vm2274_vm3 = vcmp.ne.s16.totalorder %v14261_v2, 0  ;;  %v2177_v19 = vsel %vm2145_vm4, 65537, %v14071_v62  ;;  %v2179_v45 = vsel %vm2147_vm10, 65537, %v14071_v62 }
 0x1ff   : > { %vm14281_vm5 = vcmp.lt.s32.totalorder %v638_v51, 12 }
 0x200   : > { %vm2149_vm7 = vmpackc.low %vm14281_vm5, %vm14281_vm5 }
 0x202   : > { %11230 = vmatmul.mubr.bf16.vlgmr.msra.gmra.mrb[32].mxu1 %v2338_v50  ;;  %v10333_v50 = vcombine.low %v13591_v11, %v2175_v13 }
 0x203   : > { %11262 = vmatpush3.bf16.msra.mxu1 %v14166_v44  ;;  %11233 = vmatprep.mubr.bf16.mxu1 %v2340_v56  ;;  %v454_v56 = vadd.s32 216, %v13560_v1  ;;  %v2341_v44 = vrot.slane %v2288_v5, 2  ;;  %v2251_v5 = vrot.slane %v10332_v21, 6  ;;  %v2291_v21 = vsel %vm2274_vm3, %v13758_v24, 0 }
 0x204   : > { %11263 = vmatprep.subr.bf16.mxu1 %v12756_v29  ;;  %v2253_v13 = vrot.slane %v10333_v50, 6  ;;  %v10335_v50 = vcombine.low %v13591_v11, %v2179_v45  ;;  %v2347_v51 = vrot.slane %v2291_v21, 2 }
 0x205   : > { %v652_v52 = vand.u32 15, %v454_v56  ;;  %v2342_v15 = vsel %vm1380_vm8, %v2339_v6, %v2341_v44  ;;  %v2344_v38 = vsel %vm1380_vm8, %v2341_v44, %v2343_v9  ;;  %v14287_v48 = vsel %vm1479_vm15, %v2249_v49, %v2251_v5  ;;  %v12761_v56 = vld [vmem:[#allocation9 + $0xf0] sm:$0xff]  }
 0x206   : > { %v14296_v44 = vsel %vm1479_vm15, %v2251_v5, %v2253_v13  ;;  %vm15515_vm1 = vcmp.ne.s16.totalorder %v14287_v48, 0  ;;  %v12760_v5 = vld [vmem:[#allocation9 + $0xe8] sm:$0xff]  }
 0x207   : > { %11264 = vmatpush3.bf16.msra.mxu1 %v12756_v29  ;;  %v2290_v29 = vsel %vm2273_vm12, %v13766_v27, 0  ;;  %v10334_v27 = vcombine.low %v13591_v11, %v2177_v19  ;;  %vm14290_vm12 = vcmp.lt.s32.totalorder %v652_v52, 12  ;;  %vm15514_vm10 = vcmp.ne.s16.totalorder %v14296_v44, 0 }
 0x208   : > { %11265 = vmatprep.subr.bf16.mxu1 %v12757_v46  ;;  %v2345_v24 = vrot.slane %v2290_v29, 2  ;;  %vm2151_vm4 = vmpackc.low %vm14290_vm12, %vm14290_vm12  ;;  %v2181_v29 = vsel %vm2149_vm7, 65537, %v14071_v62  ;;  %v2293_v6 = vsel %vm15514_vm10, %v13821_v4, 0 }
 0x209   : > { %v2183_v21 = vsel %vm2151_vm4, 65537, %v14071_v62 }
 0x20a   : > { %11234 = vmatmul.mubr.bf16.gmra.mrb[36].mxu1 %v2342_v15  ;;  %v456_v15 = vadd.s32 232, %v13560_v1  ;;  %v2346_v19 = vsel %vm1380_vm8, %v2343_v9, %v2345_v24  ;;  %v2348_v45 = vsel %vm1380_vm8, %v2345_v24, %v2347_v51  ;;  %v10337_v4 = vcombine.low %v13591_v11, %v2183_v21  ;;  %v12763_v21 = vld [vmem:[#allocation9 + $0x100] sm:$0xff]  }
 0x20b   : > { %11237 = vmatprep.mubr.bf16.mxu1 %v2344_v38  ;;  %11266 = vmatpush3.bf16.msra.mxu1 %v12757_v46  ;;  %v458_v46 = vadd.s32 248, %v13560_v1  ;;  %v2255_v1 = vrot.slane %v10334_v27, 6  ;;  %v2257_v38 = vrot.slane %v10335_v50, 6  ;;  %v10336_v27 = vcombine.low %v13591_v11, %v2181_v29  ;;  %v12762_v50 = vld [vmem:[#allocation9 + $0xf8] sm:$0xff]  }
 0x20c   : > { %11267 = vmatprep.subr.bf16.mxu1 %v12758_v60  ;;  %v666_v49 = vand.u32 15, %v456_v15 }
 0x20d   : > { %v680_v52 = vand.u32 15, %v458_v46  ;;  %v14322_v15 = vsel %vm1479_vm15, %v2253_v13, %v2255_v1  ;;  %v14330_v24 = vsel %vm1479_vm15, %v2255_v1, %v2257_v38  ;;  %v2259_v13 = vrot.slane %v10336_v27, 6 }
 0x20e   : > { %vm14317_vm5 = vcmp.lt.s32.totalorder %v666_v49, 12  ;;  %vm2277_vm4 = vcmp.ne.s16.totalorder %v14322_v15, 0  ;;  %v2261_v1 = vrot.slane %v10337_v4, 6 }
 0x20f   : > { %11268 = vmatpush3.bf16.msra.mxu1 %v12758_v60  ;;  %v2292_v60 = vsel %vm15515_vm1, %v13825_v12, 0  ;;  %vm14325_vm12 = vcmp.lt.s32.totalorder %v680_v52, 12  ;;  %vm2153_vm7 = vmpackc.low %vm14317_vm5, %vm14317_vm5  ;;  %vm2278_vm1 = vcmp.ne.s16.totalorder %v14330_v24, 0 }
 0x210   : > { %11269 = vmatprep.subr.bf16.mxu1 %v12759_v23  ;;  %v2349_v46 = vrot.slane %v2292_v60, 2  ;;  %vm2155_vm10 = vmpackc.low %vm14325_vm12, %vm14325_vm12  ;;  %v2185_v52 = vsel %vm2153_vm7, 65537, %v14071_v62  ;;  %v14356_v9 = vsel %vm1479_vm15, %v2259_v13, %v2261_v1 }
 0x211   : > { %v2187_v29 = vsel %vm2155_vm10, 65537, %v14071_v62  ;;  %v10338_v60 = vcombine.low %v13591_v11, %v2185_v52  ;;  %vm15516_vm5 = vcmp.ne.s16.totalorder %v14356_v9, 0 }
 0x212   : > { %11238 = vmatmul.mubr.bf16.gmra.mrb[40].mxu1 %v2346_v19  ;;  %v2350_v49 = vsel %vm1380_vm8, %v2347_v51, %v2349_v46  ;;  %v14352_v51 = vsel %vm1479_vm15, %v2257_v38, %v2259_v13 }
 0x213   : > { %11241 = vmatprep.mubr.bf16.mxu1 %v2348_v45  ;;  %11270 = vmatpush3.bf16.msra.mxu1 %v12759_v23  ;;  %v2351_v23 = vrot.slane %v2293_v6, 2  ;;  %v2295_v45 = vsel %vm2278_vm1, %v13877_v57, 0  ;;  %vm2279_vm10 = vcmp.ne.s16.totalorder %v14352_v51, 0  ;;  %v2263_v57 = vrot.slane %v10338_v60, 6 }
 0x214   : > { %11271 = vmatprep.subr.bf16.mxu1 %v12760_v5  ;;  %v2355_v62 = vrot.slane %v2295_v45, 2  ;;  %v2296_v12 = vsel %vm2279_vm10, %v13948_v55, 0  ;;  %v4654_v15 = vsel %vm2279_vm10, %v14574_v47, 0 }
 0x215   : > { %v2352_v19 = vsel %vm1380_vm8, %v2349_v46, %v2351_v23  ;;  %v2297_v46 = vsel %vm15516_vm5, %v13943_v53, 0  ;;  %v14372_v4 = vsel %vm1479_vm15, %v2261_v1, %v2263_v57  ;;  %v2357_v13 = vrot.slane %v2296_v12, 2 }
 0x216   : > { %vm2281_vm12 = vcmp.ne.s16.totalorder %v14372_v4, 0 }
 0x217   : > { %11272 = vmatpush3.bf16.msra.mxu1 %v12760_v5  ;;  %v2294_v5 = vsel %vm2277_vm4, %v13881_v58, 0  ;;  %v10339_v58 = vcombine.low %v13591_v11, %v2187_v29  ;;  %v2358_v55 = vsel %vm1380_vm8, %v2355_v62, %v2357_v13  ;;  %v2298_v53 = vsel %vm2281_vm12, %v13996_v63, 0  ;;  %v2688_v29 = vld [vmem:[#allocation2 + $0x40] sm:$0xc0] }
 0x218   : > { %11273 = vmatprep.subr.bf16.mxu1 %v12761_v56  ;;  %v2353_v6 = vrot.slane %v2294_v5, 2  ;;  %v2361_v52 = vrot.slane %v2298_v53, 2  ;;  %v2123_v5 = vld [vmem:[#allocation2 + $0xa8] sm:$0x3]  ;;  %v2705_v63 = vsel %vm15518_vm9, %v2688_v29, 0  ;;  %vm15598_vm9 = vcmp.ne.s16.totalorder %v13627_v37, 0 }
 0x219   : > { %v14362_v27 = vrot.slane %v10339_v58, 6  ;;  %v12764_v53 = vld [vmem:[#allocation9 + $0x108] sm:$0xff]  }
 0x21a   : > { %11242 = vmatmul.mubr.bf16.gmra.mrb[44].mxu1 %v2350_v49  ;;  %v2354_v38 = vsel %vm1380_vm8, %v2351_v23, %v2353_v6 }
 0x21b   : > { %11245 = vmatprep.mubr.bf16.mxu1 %v2352_v19  ;;  %11274 = vmatpush3.bf16.msra.mxu1 %v12761_v56  ;;  %v2356_v56 = vsel %vm1380_vm8, %v2353_v6, %v2355_v62  ;;  %v14376_v23 = vsel %vm1479_vm15, %v2263_v57, %v14362_v27  ;;  %vm15517_vm5 = vcmp.ne.s16.totalorder %v14362_v27, 0  ;;  %v2755_v62 = vrot.slane %v2705_v63, 6 }
 0x21c   : > { %11275 = vmatprep.subr.bf16.mxu1 %v12762_v50  ;;  %vm2282_vm7 = vcmp.ne.s16.totalorder %v14376_v23, 0  ;;  %v2300_v6 = vsel %vm15517_vm5, %v2123_v5, 0  ;;  %vm15597_vm5 = vcmp.ne.s16.totalorder %v13611_v28, 0  ;;  %v12765_v5 = vld [vmem:[#allocation9 + $0x110] sm:$0xff]  }
 0x21d   : > { %v2299_v1 = vsel %vm2282_vm7, %v13993_v61, 0  ;;  %v2706_v61 = vsel %vm15519_vm13, %v14231_v32, 0  ;;  %v2365_v58 = vrot.slane %v2300_v6, 2  ;;  %vm15599_vm13 = vcmp.ne.s16.totalorder %v13634_v39, 0  ;;  %v12809_v23 = vld [vmem:[#allocation10 + $0x30] sm:$0xff]  }
 0x21e   : > { %v2363_v19 = vrot.slane %v2299_v1, 2  ;;  %v2756_v57 = vrot.slane %v2706_v61, 6  ;;  %v15600_v6 = vrot.slane %v13938_v7, 6  ;;  %v12767_v61 = vld [vmem:[#allocation9 + $0x120] sm:$0xff]  }
 0x21f   : > { %11276 = vmatpush3.bf16.msra.mxu1 %v12762_v50  ;;  %v2359_v50 = vrot.slane %v2297_v46, 2  ;;  %v2707_v46 = vsel %vm15597_vm5, %v14237_v36, 0  ;;  %vm15604_vm5 = vcmp.ne.s16.totalorder %v13978_v31, 0 }
 0x220   : > { %11309 = vmatprep.subr.bf16.mxu1 %v12763_v21  ;;  %v2364_v60 = vsel %vm1380_vm8, %v2361_v52, %v2363_v19  ;;  %v2757_v12 = vsel %vm1479_vm15, %v2755_v62, %v2756_v57  ;;  %v12770_v62 = vld [vmem:[#allocation9 + $0x138] sm:$0xff]  }
 0x221   : > { %v2360_v49 = vsel %vm1380_vm8, %v2357_v13, %v2359_v50  ;;  %v2362_v45 = vsel %vm1380_vm8, %v2359_v50, %v2361_v52  ;;  %v2758_v50 = vrot.slane %v2707_v46, 6 }
 0x222   : > { %11246 = vmatmul.mubr.bf16.gmra.mrb[48].mxu1 %v2354_v38  ;;  %v14398_v38 = vld [vmem:[#allocation2 + $0x58] sm:$0xff] }
 0x223   : > { %11249 = vmatprep.mubr.bf16.mxu1 %v2356_v56  ;;  %v2366_v56 = vsel %vm1380_vm8, %v2363_v19, %v2365_v58  ;;  %v2708_v13 = vsel %vm15598_vm9, %v14398_v38, 0  ;;  %v2759_v1 = vsel %vm1479_vm15, %v2756_v57, %v2758_v50  ;;  %v12769_v58 = vld [vmem:[#allocation9 + $0x130] sm:$0xff]   ;;  %vm15601_vm9 = vcmp.ne.s16.totalorder %v13788_v40, 0 }
 0x224   : > { %v2715_v7 = vsel %vm15601_vm9, %v14086_v30, 0  ;;  %vm15605_vm9 = vcmp.ne.s16.totalorder %v13950_v14, 0 }
 0x225   : > { %v2774_v57 = vrot.slane %v2715_v7, 6  ;;  %v15606_v7 = vld [vmem:[#allocation18_spill] sm:$0xff] }
 0x22a   : > { %11250 = vmatmul.mubr.bf16.gmra.mrb[52].mxu1 %v2358_v55  ;;  %v2760_v55 = vrot.slane %v2708_v13, 6  ;;  %v2718_v13 = vsel %vm1425_vm0, %v14044_v26, 0 }
 0x22b   : > { %11253 = vmatprep.mubr.bf16.mxu1 %v2360_v49  ;;  %v14408_v49 = vld [vmem:[#allocation2 + $0x60] sm:$0xff] }
 0x22c   : > { %v2761_v52 = vsel %vm1479_vm15, %v2758_v50, %v2760_v55  ;;  %v2709_v19 = vsel %vm15599_vm13, %v14408_v49, 0  ;;  %vm15603_vm13 = vcmp.ne.s16.totalorder %v13899_v3, 0 }
 0x22d   : > { %v2762_v29 = vrot.slane %v2709_v19, 6  ;;  %v2720_v19 = vsel %vm15604_vm5, %v14081_v33, 0 }
 0x22e   : > { %v2784_v26 = vrot.slane %v2720_v19, 6 }
 0x22f   : > { %v2765_v63 = vsel %vm1479_vm15, %v2762_v29, %v15600_v6 }
 0x232   : > { %11254 = vmatmul.mubr.bf16.gmra.mrb[56].mxu1 %v2362_v45  ;;  %v12766_v45 = vld [vmem:[#allocation9 + $0x118] sm:$0xff]  }
 0x233   : > { %11257 = vmatprep.mubr.bf16.mxu1 %v2364_v60  ;;  %v2763_v60 = vsel %vm1479_vm15, %v2760_v55, %v2762_v29  ;;  %v2780_v55 = vrot.slane %v2718_v13, 6  ;;  %v2704_v29 = vld [vmem:[#allocation2 + $0xc0] sm:$0x3f] }
 0x234   : > { %v2721_v6 = vsel %vm15605_vm9, %v2704_v29, 0  ;;  %vm15620_vm9 = vcmp.ne.s16.totalorder %v14287_v48, 0 }
 0x23a   : > { %11258 = vmatmul.mubr.bf16.gmra.mrb[60].mxu1 %v2366_v56 }
 0x23b   : > { %11277 = vmatprep.mubr.bf16.mxu1 %v2757_v12  ;;  %v15602_v12 = vrot.slane %v14031_v22, 6 }
 0x242   : > { %11278 = vmatmul.mubr.bf16.vlgmr.msra.gmra.mrb[32].mxu1 %v2759_v1 }
 0x243   : > { %11310 = vmatpush3.bf16.msra.mxu1 %v12763_v21  ;;  %11281 = vmatprep.mubr.bf16.mxu1 %v2761_v52  ;;  %v12768_v21 = vld [vmem:[#allocation9 + $0x128] sm:$0xff]  }
 0x244   : > { %11311 = vmatprep.subr.bf16.mxu1 %v12764_v53 }
 0x247   : > { %11312 = vmatpush3.bf16.msra.mxu1 %v12764_v53  ;;  %v14439_v53 = vld [vmem:[#allocation2 + $0xb0] sm:$0xff] }
 0x248   : > { %11313 = vmatprep.subr.bf16.mxu1 %v12765_v5  ;;  %v2719_v52 = vsel %vm15603_vm13, %v14439_v53, 0 }
 0x24a   : > { %11282 = vmatmul.mubr.bf16.gmra.mrb[36].mxu1 %v2763_v60 }
 0x24b   : > { %11285 = vmatprep.mubr.bf16.mxu1 %v2765_v63  ;;  %11314 = vmatpush3.bf16.msra.mxu1 %v12765_v5  ;;  %v2782_v5 = vrot.slane %v2719_v52, 6  ;;  %v2786_v63 = vrot.slane %v2721_v6, 6  ;;  %v15610_v52 = vld [vmem:[#allocation36_spill] sm:$0xff] }
 0x24c   : > { %11315 = vmatprep.subr.bf16.mxu1 %v12766_v45  ;;  %vm15611_vm13 = vcmp.ne.s16.totalorder %v15610_v52, 0 }
 0x24d   : > { %v2785_v60 = vsel %vm1479_vm15, %v2782_v5, %v2784_v26  ;;  %v3465_v19 = vsel %vm15611_vm13, %v14398_v38, 0  ;;  %vm15621_vm13 = vcmp.ne.s16.totalorder %v14296_v44, 0 }
 0x24e   : > { %v3516_v29 = vrot.slane %v3465_v19, 2  ;;  %v12787_v19 = vld [vmem:[#allocation9 + $0x1c0] sm:$0xff]  }
 0x24f   : > { %11316 = vmatpush3.bf16.msra.mxu1 %v12766_v45  ;;  %v2783_v45 = vsel %vm1479_vm15, %v2780_v55, %v2782_v5  ;;  %v15612_v5 = vld [vmem:[#allocation37_spill] sm:$0xff] }
 0x250   : > { %11317 = vmatprep.subr.bf16.mxu1 %v12767_v61  ;;  %vm15613_vm5 = vcmp.ne.s16.totalorder %v15612_v5, 0 }
 0x252   : > { %11286 = vmatmul.mubr.bf16.gmra.mrb[40].mxu1 %v13983_v42  ;;  %v2716_v42 = vsel %vm1423_vm11, %v14088_v17, 0 }
 0x253   : > { %11289 = vmatprep.mubr.bf16.mxu1 %v14006_v16  ;;  %11318 = vmatpush3.bf16.msra.mxu1 %v12767_v61  ;;  %v12771_v16 = vld [vmem:[#allocation9 + $0x140] sm:$0xff]   ;;  %v2776_v56 = vrot.slane %v2716_v42, 6  ;;  %v2787_v61 = vsel %vm1479_vm15, %v2784_v26, %v2786_v63  ;;  %v3466_v26 = vsel %vm15613_vm5, %v14408_v49, 0  ;;  %v12781_v63 = vld [vmem:[#allocation9 + $0x190] sm:$0xff]   ;;  %vm15622_vm5 = vcmp.ne.s16.totalorder %v14356_v9, 0 }
 0x254   : > { %11319 = vmatprep.subr.bf16.mxu1 %v12768_v21  ;;  %v12775_v42 = vld [vmem:[#allocation9 + $0x160] sm:$0xff]  }
 0x255   : > { %v2777_v46 = vsel %vm1479_vm15, %v2774_v57, %v2776_v56 }
 0x257   : > { %11320 = vmatpush3.bf16.msra.mxu1 %v12768_v21  ;;  %v12772_v21 = vld [vmem:[#allocation9 + $0x148] sm:$0xff]  }
 0x258   : > { %11321 = vmatprep.subr.bf16.mxu1 %v12769_v58 }
 0x25a   : > { %11290 = vmatmul.mubr.bf16.gmra.mrb[44].mxu1 %v14009_v20  ;;  %v2775_v20 = vsel %vm1479_vm15, %v15602_v12, %v2774_v57  ;;  %v15607_v57 = vld [vmem:[#allocation19_spill] sm:$0xff]  ;;  %v12778_v12 = vld [vmem:[#allocation9 + $0x178] sm:$0xff]  }
 0x25b   : > { %11293 = vmatprep.mubr.bf16.mxu1 %v14049_v10  ;;  %11322 = vmatpush3.bf16.msra.mxu1 %v12769_v58  ;;  %v2717_v10 = vsel %vm1424_vm14, %v14092_v43, 0  ;;  %v12773_v58 = vld [vmem:[#allocation9 + $0x150] sm:$0xff]  }
 0x25c   : > { %11323 = vmatprep.subr.bf16.mxu1 %v12770_v62  ;;  %v2778_v50 = vrot.slane %v2717_v10, 6  ;;  %v3446_v10 = vld [vmem:[#allocation2 + $0x48] sm:$0xfc] }
 0x25d   : > { %v3463_v13 = vsel %vm2267_vm2, %v3446_v10, 0  ;;  %v12785_v10 = vld [vmem:[#allocation9 + $0x1b0] sm:$0xff]  }
 0x25e   : > { %v2779_v22 = vsel %vm1479_vm15, %v2776_v56, %v2778_v50  ;;  %v2781_v1 = vsel %vm1479_vm15, %v2778_v50, %v2780_v55  ;;  %v12777_v56 = vld [vmem:[#allocation9 + $0x170] sm:$0xff]   ;;  %v3464_v50 = vsel %vm2268_vm6, %v14237_v36, 0  ;;  %v3513_v55 = vrot.slane %v3463_v13, 2 }
 0x25f   : > { %11324 = vmatpush3.bf16.msra.mxu1 %v12770_v62  ;;  %v12774_v62 = vld [vmem:[#allocation9 + $0x158] sm:$0xff]  }
 0x260   : > { %11357 = vmatprep.subr.bf16.mxu1 %v12771_v16 }
 0x262   : > { %11294 = vmatmul.mubr.bf16.gmra.mrb[48].mxu1 %v2775_v20  ;;  %v15609_v20 = vld [vmem:[#allocation21_spill] sm:$0xff] }
 0x263   : > { %11297 = vmatprep.mubr.bf16.mxu1 %v2777_v46  ;;  %v12779_v46 = vld [vmem:[#allocation9 + $0x180] sm:$0xff]  }
 0x26a   : > { %11298 = vmatmul.mubr.bf16.gmra.mrb[52].mxu1 %v2779_v22  ;;  %v3514_v22 = vrot.slane %v3464_v50, 2 }
 0x26b   : > { %11301 = vmatprep.mubr.bf16.mxu1 %v2781_v1 }
 0x26c   : > { %v3515_v1 = vsel %vm1380_vm8, %v3513_v55, %v3514_v22  ;;  %v12786_v55 = vld [vmem:[#allocation9 + $0x1b8] sm:$0xff]  }
 0x272   : > { %11302 = vmatmul.mubr.bf16.gmra.mrb[56].mxu1 %v2783_v45  ;;  %v3518_v45 = vrot.slane %v3466_v26, 2 }
 0x273   : > { %11305 = vmatprep.mubr.bf16.mxu1 %v2785_v60  ;;  %v12780_v60 = vld [vmem:[#allocation9 + $0x188] sm:$0xff]  }
 0x274   : > { %v3519_v6 = vsel %vm1380_vm8, %v3516_v29, %v3518_v45 }
 0x27a   : > { %11306 = vmatmul.mubr.bf16.gmra.mrb[60].mxu1 %v2787_v61  ;;  %v15614_v61 = vld [vmem:[#allocation22_spill] sm:$0xff] }
 0x27b   : > { %11325 = vmatprep.mubr.bf16.mxu1 %v14231_v32  ;;  %v12776_v32 = vld [vmem:[#allocation9 + $0x168] sm:$0xff]  }
 0x282   : > { %11326 = vmatmul.mubr.bf16.vlgmr.msra.gmra.mrb[32].mxu1 %v14237_v36  ;;  %v3517_v36 = vsel %vm1380_vm8, %v3514_v22, %v3516_v29 }
 0x283   : > { %11358 = vmatpush3.bf16.msra.mxu1 %v12771_v16  ;;  %11329 = vmatprep.mubr.bf16.mxu1 %v14398_v38  ;;  %v15608_v16 = vld [vmem:[#allocation20_spill] sm:$0xff]  ;;  %v12782_v38 = vld [vmem:[#allocation9 + $0x198] sm:$0xff]  }
 0x284   : > { %11359 = vmatprep.subr.bf16.mxu1 %v12772_v21 }
 0x287   : > { %11360 = vmatpush3.bf16.msra.mxu1 %v12772_v21  ;;  %v15615_v21 = vrot.slane %v15614_v61, 2  ;;  %v3477_v61 = vsel %vm2281_vm12, %v14081_v33, 0 }
 0x288   : > { %11361 = vmatprep.subr.bf16.mxu1 %v12773_v58 }
 0x28a   : > { %11330 = vmatmul.mubr.bf16.gmra.mrb[36].mxu1 %v14408_v49  ;;  %v15616_v49 = vld [vmem:[#allocation23_spill] sm:$0xff] }
 0x28b   : > { %11333 = vmatprep.mubr.bf16.mxu1 %v15606_v7  ;;  %11362 = vmatpush3.bf16.msra.mxu1 %v12773_v58  ;;  %v3521_v58 = vsel %vm1380_vm8, %v3518_v45, %v15615_v21  ;;  %v12783_v7 = vld [vmem:[#allocation9 + $0x1a0] sm:$0xff]   ;;  %v3540_v21 = vrot.slane %v3477_v61, 2 }
 0x28c   : > { %11363 = vmatprep.subr.bf16.mxu1 %v12774_v62  ;;  %v15633_v61 = vld [vmem:[#allocation30_spill] sm:$0xff] }
 0x28f   : > { %11364 = vmatpush3.bf16.msra.mxu1 %v12774_v62  ;;  %v3470_v62 = vsel %vm2274_vm3, %v15609_v20, 0 }
 0x290   : > { %11365 = vmatprep.subr.bf16.mxu1 %v12775_v42 }
 0x292   : > { %11334 = vmatmul.mubr.bf16.gmra.mrb[40].mxu1 %v15607_v57  ;;  %v15617_v57 = vld [vmem:[#allocation25_spill] sm:$0xff] }
 0x293   : > { %11337 = vmatprep.mubr.bf16.mxu1 %v15608_v16  ;;  %11366 = vmatpush3.bf16.msra.mxu1 %v12775_v42  ;;  %v3526_v42 = vrot.slane %v3470_v62, 2  ;;  %v15618_v16 = vld [vmem:[#allocation24_spill] sm:$0xff] }
 0x294   : > { %11367 = vmatprep.subr.bf16.mxu1 %v12776_v32 }
 0x297   : > { %11368 = vmatpush3.bf16.msra.mxu1 %v12776_v32  ;;  %v12784_v32 = vld [vmem:[#allocation9 + $0x1a8] sm:$0xff]  }
 0x298   : > { %11369 = vmatprep.subr.bf16.mxu1 %v12777_v56 }
 0x29a   : > { %11338 = vmatmul.mubr.bf16.gmra.mrb[44].mxu1 %v15609_v20  ;;  %v3472_v20 = vsel %vm15621_vm13, %v14086_v30, 0  ;;  %vm15624_vm13 = vcmp.ne.s16.totalorder %v13605_v25, 0  ;;  %v14543_v25 = vld [vmem:[#allocation2 + $0x78] sm:$0xff] }
 0x29b   : > { %11341 = vmatprep.mubr.bf16.mxu1 %v14011_v35  ;;  %11370 = vmatpush3.bf16.msra.mxu1 %v12777_v56  ;;  %v15619_v56 = vrot.slane %v15618_v16, 2  ;;  %v3530_v50 = vrot.slane %v3472_v20, 2 }
 0x29c   : > { %11371 = vmatprep.subr.bf16.mxu1 %v12778_v12 }
 0x29f   : > { %11372 = vmatpush3.bf16.msra.mxu1 %v12778_v12  ;;  %v3527_v12 = vsel %vm1380_vm8, %v15619_v56, %v3526_v42 }
 0x2a0   : > { %11405 = vmatprep.subr.bf16.mxu1 %v12779_v46 }
 0x2a2   : > { %11342 = vmatmul.mubr.bf16.gmra.mrb[48].mxu1 %v14086_v30  ;;  %v3474_v30 = vsel %vm2278_vm1, %v14092_v43, 0 }
 0x2a3   : > { %11345 = vmatprep.mubr.bf16.mxu1 %v14088_v17  ;;  %v3534_v29 = vrot.slane %v3474_v30, 2  ;;  %v14550_v30 = vld [vmem:[#allocation2 + $0x80] sm:$0xff] }
 0x2aa   : > { %11346 = vmatmul.mubr.bf16.gmra.mrb[52].mxu1 %v14092_v43  ;;  %v3476_v43 = vsel %vm15622_vm5, %v14439_v53, 0  ;;  %vm15625_vm5 = vcmp.ne.s16.totalorder %v13599_v18, 0 }
 0x2ab   : > { %11349 = vmatprep.mubr.bf16.mxu1 %v14094_v59 }
 0x2b2   : > { %11350 = vmatmul.mubr.bf16.gmra.mrb[56].mxu1 %v14439_v53 }
 0x2b3   : > { %11353 = vmatprep.mubr.bf16.mxu1 %v14081_v33 }
 0x2ba   : > { %11354 = vmatmul.mubr.bf16.gmra.mrb[60].mxu1 %v14074_v0 }
 0x2bb   : > { %11373 = vmatprep.mubr.bf16.mxu1 %v3515_v1 }
 0x2c2   : > { %11374 = vmatmul.mubr.bf16.vlgmr.msra.gmra.mrb[32].mxu1 %v3517_v36 }
 0x2c3   : > { %11406 = vmatpush3.bf16.msra.mxu1 %v12779_v46  ;;  %11377 = vmatprep.mubr.bf16.mxu1 %v3519_v6  ;;  %v3471_v46 = vsel %vm15620_vm9, %v14011_v35, 0  ;;  %v3473_v35 = vsel %vm2277_vm4, %v14088_v17, 0  ;;  %v3475_v17 = vsel %vm2279_vm10, %v14094_v59, 0  ;;  %v3538_v6 = vrot.slane %v3476_v43, 2 }
 0x2c4   : > { %11407 = vmatprep.subr.bf16.mxu1 %v12780_v60  ;;  %v3528_v13 = vrot.slane %v3471_v46, 2  ;;  %v3532_v26 = vrot.slane %v3473_v35, 2  ;;  %v3536_v36 = vrot.slane %v3475_v17, 2  ;;  %v3478_v59 = vsel %vm2282_vm7, %v14074_v0, 0 }
 0x2c5   : > { %v3541_v62 = vsel %vm1380_vm8, %v3538_v6, %v3540_v21  ;;  %vm15623_vm9 = vcmp.ne.s16.totalorder %v14362_v27, 0 }
 0x2c6   : > { %v3529_v22 = vsel %vm1380_vm8, %v3526_v42, %v3528_v13  ;;  %v3531_v1 = vsel %vm1380_vm8, %v3528_v13, %v3530_v50  ;;  %v3533_v45 = vsel %vm1380_vm8, %v3530_v50, %v3532_v26 }
 0x2c7   : > { %11408 = vmatpush3.bf16.msra.mxu1 %v12780_v60  ;;  %v3535_v60 = vsel %vm1380_vm8, %v3532_v26, %v3534_v29  ;;  %v12789_v26 = vld [vmem:[#allocation9 + $0x1d0] sm:$0xff]  }
 0x2c8   : > { %11409 = vmatprep.subr.bf16.mxu1 %v12781_v63 }
 0x2ca   : > { %11378 = vmatmul.mubr.bf16.gmra.mrb[36].mxu1 %v3521_v58  ;;  %v3542_v58 = vrot.slane %v3478_v59, 2 }
 0x2cb   : > { %11381 = vmatprep.mubr.bf16.mxu1 %v15616_v49  ;;  %11410 = vmatpush3.bf16.msra.mxu1 %v12781_v63  ;;  %v3537_v63 = vsel %vm1380_vm8, %v3534_v29, %v3536_v36  ;;  %v3462_v49 = vld [vmem:[#allocation2 + $0xc8] sm:$0x3] }
 0x2cc   : > { %11411 = vmatprep.subr.bf16.mxu1 %v12782_v38  ;;  %v3479_v42 = vsel %vm15623_vm9, %v3462_v49, 0  ;;  %vm15626_vm9 = vcmp.ne.s16.totalorder %v13611_v28, 0  ;;  %v12790_v29 = vld [vmem:[#allocation9 + $0x1d8] sm:$0xff]  }
 0x2cd   : > { %v3544_v0 = vrot.slane %v3479_v42, 2 }
 0x2cf   : > { %11412 = vmatpush3.bf16.msra.mxu1 %v12782_v38  ;;  %v3539_v38 = vsel %vm1380_vm8, %v3536_v36, %v3538_v6  ;;  %v3545_v46 = vsel %vm1380_vm8, %v3542_v58, %v3544_v0  ;;  %v15631_v36 = vld [vmem:[#allocation28_spill] sm:$0xff]  ;;  %v15632_v6 = vld [vmem:[#allocation29_spill] sm:$0xff] }
 0x2d0   : > { %11413 = vmatprep.subr.bf16.mxu1 %v12783_v7 }
 0x2d2   : > { %11382 = vmatmul.mubr.bf16.gmra.mrb[40].mxu1 %v15617_v57  ;;  %v14529_v57 = vld [vmem:[#allocation2 + $0x68] sm:$0xff] }
 0x2d3   : > { %11385 = vmatprep.mubr.bf16.mxu1 %v3527_v12  ;;  %11414 = vmatpush3.bf16.msra.mxu1 %v12783_v7  ;;  %v3543_v7 = vsel %vm1380_vm8, %v3540_v21, %v3542_v58  ;;  %v3885_v33 = vsel %vm15624_vm13, %v14529_v57, 0  ;;  %vm15627_vm13 = vcmp.ne.s16.totalorder %v13627_v37, 0  ;;  %v15635_v21 = vld [vmem:[#allocation31_spill] sm:$0xff] }
 0x2d4   : > { %11415 = vmatprep.subr.bf16.mxu1 %v12784_v32  ;;  %v3935_v56 = vrot.slane %v3885_v33, 6  ;;  %v3887_v18 = vsel %vm15627_vm13, %v14543_v25, 0  ;;  %v12904_v58 = vld [vmem:[#allocation2 + $0xb8] sm:$0xff]  ;;  %vm15639_vm13 = vcmp.ne.s16.totalorder %v13978_v31, 0 }
 0x2d5   : > { %v3895_v49 = vsel %vm1423_vm11, %v12904_v58, 0  ;;  %vm15638_vm11 = vcmp.ne.s16.totalorder %v13899_v3, 0  ;;  %v3899_v41 = vsel %vm15639_vm13, %v14574_v47, 0  ;;  %v4298_v58 = vld [vmem:[#allocation2 + $0xb8] sm:$0xff] }
 0x2d6   : > { %v3955_v42 = vrot.slane %v3895_v49, 6  ;;  %v4299_v49 = vld [vmem:[#allocation2 + $0xc0] sm:$0xff] }
 0x2d7   : > { %11416 = vmatpush3.bf16.msra.mxu1 %v12784_v32  ;;  %v3867_v32 = vld [vmem:[#allocation2 + $0x60] sm:$0xc0] }
 0x2d8   : > { %11417 = vmatprep.subr.bf16.mxu1 %v12785_v10  ;;  %v3884_v16 = vsel %vm15625_vm5, %v3867_v32, 0  ;;  %vm15628_vm5 = vcmp.ne.s16.totalorder %v13634_v39, 0  ;;  %v12791_v39 = vld [vmem:[#allocation9 + $0x1e0] sm:$0xff]   ;;  %v15636_v32 = vld [vmem:[#allocation27_spill] sm:$0xff] }
 0x2d9   : > { %v3934_v12 = vrot.slane %v3884_v16, 6  ;;  %v3888_v28 = vsel %vm15628_vm5, %v14550_v30, 0  ;;  %v15637_v33 = vrot.slane %v15636_v32, 6  ;;  %v12905_v16 = vld [vmem:[#allocation2 + $0xc0] sm:$0xff] }
 0x2da   : > { %11386 = vmatmul.mubr.bf16.gmra.mrb[44].mxu1 %v3529_v22  ;;  %v12788_v22 = vld [vmem:[#allocation9 + $0x1c8] sm:$0xff]   ;;  %v3941_v37 = vrot.slane %v3888_v28, 6 }
 0x2db   : > { %11389 = vmatprep.mubr.bf16.mxu1 %v3531_v1  ;;  %11418 = vmatpush3.bf16.msra.mxu1 %v12785_v10  ;;  %v3936_v20 = vsel %vm1479_vm15, %v3934_v12, %v3935_v56  ;;  %v14538_v10 = vld [vmem:[#allocation2 + $0x70] sm:$0xff]  ;;  %v3897_v12 = vsel %vm1425_vm0, %v14574_v47, 0  ;;  %vm15642_vm0 = vcmp.ne.s16.totalorder %v15612_v5, 0 }
 0x2dc   : > { %11419 = vmatprep.subr.bf16.mxu1 %v12786_v55  ;;  %v3886_v13 = vsel %vm15626_vm9, %v14538_v10, 0  ;;  %vm15634_vm9 = vcmp.ne.s16.totalorder %v13788_v40, 0  ;;  %v4645_v8 = vsel %vm15642_vm0, %v14550_v30, 0 }
 0x2dd   : > { %v3937_v50 = vrot.slane %v3886_v13, 6  ;;  %v3894_v59 = vsel %vm15634_vm9, %v14439_v53, 0  ;;  %v3898_v13 = vsel %vm15638_vm11, %v14574_v47, 0 }
 0x2df   : > { %11420 = vmatpush3.bf16.msra.mxu1 %v12786_v55  ;;  %v3939_v55 = vrot.slane %v3887_v18, 6  ;;  %v3938_v1 = vsel %vm1479_vm15, %v3935_v56, %v3937_v50  ;;  %v3896_v56 = vsel %vm1424_vm14, %v12905_v16, 0  ;;  %vm15640_vm14 = vcmp.ne.s16.totalorder %v13950_v14, 0  ;;  %v12806_v14 = vld [vmem:[#allocation10 + $0x18] sm:$0xff]  }
 0x2e0   : > { %11453 = vmatprep.subr.bf16.mxu1 %v12787_v19  ;;  %v3900_v3 = vsel %vm15640_vm14, %v3883_v34, 0 }
 0x2e1   : > { %v3940_v35 = vsel %vm1479_vm15, %v3937_v50, %v3939_v55  ;;  %v3965_v28 = vrot.slane %v3900_v3, 6 }
 0x2e2   : > { %11390 = vmatmul.mubr.bf16.gmra.mrb[48].mxu1 %v3533_v45  ;;  %v3942_v45 = vsel %vm1479_vm15, %v3939_v55, %v3941_v37  ;;  %v3961_v55 = vrot.slane %v3898_v13, 6  ;;  %v15647_v13 = vld [vmem:[#allocation33_spill] sm:$0xff] }
 0x2e3   : > { %11393 = vmatprep.mubr.bf16.mxu1 %v3535_v60  ;;  %v15629_v60 = vld [vmem:[#allocation26_spill] sm:$0xff] }
 0x2e4   : > { %v15630_v17 = vrot.slane %v15629_v60, 6  ;;  %v12797_v60 = vld [vmem:[#allocation9 + $0x210] sm:$0xff]  }
 0x2e6   : > { %v3944_v43 = vsel %vm1479_vm15, %v3941_v37, %v15630_v17  ;;  %v12804_v37 = vld [vmem:[#allocation10 + $0x8] sm:$0xff]   ;;  %v12807_v17 = vld [vmem:[#allocation10 + $0x20] sm:$0xff]  }
 0x2ea   : > { %11394 = vmatmul.mubr.bf16.gmra.mrb[52].mxu1 %v3537_v63  ;;  %v12793_v63 = vld [vmem:[#allocation9 + $0x1f0] sm:$0xff]  }
 0x2eb   : > { %11397 = vmatprep.mubr.bf16.mxu1 %v3539_v38  ;;  %v12794_v38 = vld [vmem:[#allocation9 + $0x1f8] sm:$0xff]  }
 0x2f2   : > { %11398 = vmatmul.mubr.bf16.gmra.mrb[56].mxu1 %v3541_v62  ;;  %v12795_v62 = vld [vmem:[#allocation9 + $0x200] sm:$0xff]  }
 0x2f3   : > { %11401 = vmatprep.mubr.bf16.mxu1 %v3543_v7  ;;  %v3953_v7 = vrot.slane %v3894_v59, 6  ;;  %v12910_v59 = vld [vmem:[#allocation2 + $0xa0] sm:$0xff] }
 0x2f5   : > { %v3954_v0 = vsel %vm1479_vm15, %v15637_v33, %v3953_v7  ;;  %v3956_v40 = vsel %vm1479_vm15, %v3953_v7, %v3955_v42 }
 0x2fa   : > { %11402 = vmatmul.mubr.bf16.gmra.mrb[60].mxu1 %v3545_v46  ;;  %v3957_v46 = vrot.slane %v3896_v56, 6  ;;  %v4697_v56 = vrot.slane %v4645_v8, 2 }
 0x2fb   : > { %11421 = vmatprep.mubr.bf16.mxu1 %v3936_v20  ;;  %v3959_v20 = vrot.slane %v3897_v12, 6  ;;  %v15643_v12 = vld [vmem:[#allocation32_spill] sm:$0xff] }
 0x2fc   : > { %v3958_v18 = vsel %vm1479_vm15, %v3955_v42, %v3957_v46  ;;  %v4643_v42 = vsel %vm2268_vm6, %v14538_v10, 0  ;;  %vm15650_vm6 = vcmp.ne.s16.totalorder %v14296_v44, 0 }
 0x2fd   : > { %v3960_v50 = vsel %vm1479_vm15, %v3957_v46, %v3959_v20  ;;  %v4693_v33 = vrot.slane %v4643_v42, 2  ;;  %v15644_v46 = vrot.slane %v15643_v12, 2 }
 0x302   : > { %11422 = vmatmul.mubr.bf16.vlgmr.msra.gmra.mrb[32].mxu1 %v3938_v1  ;;  %v3962_v1 = vsel %vm1479_vm15, %v3959_v20, %v3961_v55  ;;  %v4700_v20 = vsel %vm1380_vm8, %v4697_v56, %v15644_v46 }
 0x303   : > { %11454 = vmatpush3.bf16.msra.mxu1 %v12787_v19  ;;  %11425 = vmatprep.mubr.bf16.mxu1 %v3940_v35  ;;  %v12792_v19 = vld [vmem:[#allocation9 + $0x1e8] sm:$0xff]  }
 0x304   : > { %11455 = vmatprep.subr.bf16.mxu1 %v12788_v22 }
 0x307   : > { %11456 = vmatpush3.bf16.msra.mxu1 %v12788_v22  ;;  %v3963_v22 = vrot.slane %v3899_v41, 6 }
 0x308   : > { %11457 = vmatprep.subr.bf16.mxu1 %v12789_v26 }
 0x309   : > { %v3964_v35 = vsel %vm1479_vm15, %v3961_v55, %v3963_v22  ;;  %v3966_v31 = vsel %vm1479_vm15, %v3963_v22, %v3965_v28  ;;  %vm15641_vm15 = vcmp.ne.s16.totalorder %v15610_v52, 0  ;;  %v15645_v52 = vld [vmem:[#allocation34_spill] sm:$0xff]  ;;  %v4651_v55 = vsel %vm15650_vm6, %v14439_v53, 0 }
 0x30a   : > { %11426 = vmatmul.mubr.bf16.gmra.mrb[36].mxu1 %v3942_v45  ;;  %v12796_v45 = vld [vmem:[#allocation9 + $0x208] sm:$0xff]   ;;  %v4709_v34 = vrot.slane %v4651_v55, 2 }
 0x30b   : > { %11429 = vmatprep.mubr.bf16.mxu1 %v3944_v43  ;;  %11458 = vmatpush3.bf16.msra.mxu1 %v12789_v26  ;;  %v12803_v26 = vld [vmem:[#allocation10] sm:$0xff]   ;;  %v12808_v43 = vld [vmem:[#allocation10 + $0x28] sm:$0xff]  }
 0x30c   : > { %11459 = vmatprep.subr.bf16.mxu1 %v12790_v29  ;;  %11549 = vmatprep.subr.bf16.mxu0 %v12803_v26 }
 0x30d   : > { %11550 = vmatpush3.bf16.msra.mxu0 %v12803_v26 }
 0x30e   : > { %11551 = vmatprep.subr.bf16.mxu0 %v12804_v37 }
 0x30f   : > { %11460 = vmatpush3.bf16.msra.mxu1 %v12790_v29  ;;  %v12805_v29 = vld [vmem:[#allocation10 + $0x10] sm:$0xff]  }
 0x310   : > { %11461 = vmatprep.subr.bf16.mxu1 %v12791_v39 }
 0x311   : > { %11552 = vmatpush3.bf16.msra.mxu0 %v12804_v37  ;;  %v4715_v37 = vrot.slane %v4654_v15, 2 }
 0x312   : > { %11430 = vmatmul.mubr.bf16.gmra.mrb[40].mxu1 %v15631_v36  ;;  %11553 = vmatprep.subr.bf16.mxu0 %v12805_v29  ;;  %v12800_v36 = vld [vmem:[#allocation9 + $0x228] sm:$0xff]  }
 0x313   : > { %11433 = vmatprep.mubr.bf16.mxu1 %v15632_v6  ;;  %11462 = vmatpush3.bf16.msra.mxu1 %v12791_v39  ;;  %v12907_v39 = vld [vmem:[#allocation2 + $0x88] sm:$0xff]  ;;  %v12908_v6 = vld [vmem:[#allocation2 + $0x90] sm:$0xff] }
 0x314   : > { %11463 = vmatprep.subr.bf16.mxu1 %v12792_v19 }
 0x315   : > { %11554 = vmatpush3.bf16.msra.mxu0 %v12805_v29  ;;  %v4656_v29 = vsel %vm2281_vm12, %v14574_v47, 0 }
 0x316   : > { %11555 = vmatprep.subr.bf16.mxu0 %v12806_v14 }
 0x317   : > { %11464 = vmatpush3.bf16.msra.mxu1 %v12792_v19  ;;  %v12799_v19 = vld [vmem:[#allocation9 + $0x220] sm:$0xff]  }
 0x318   : > { %11465 = vmatprep.subr.bf16.mxu1 %v12793_v63 }
 0x319   : > { %11556 = vmatpush3.bf16.msra.mxu0 %v12806_v14  ;;  %v4719_v14 = vrot.slane %v4656_v29, 2 }
 0x31a   : > { %11434 = vmatmul.mubr.bf16.gmra.mrb[44].mxu1 %v15633_v61  ;;  %11557 = vmatprep.subr.bf16.mxu0 %v12807_v17  ;;  %v12802_v61 = vld [vmem:[#allocation9 + $0x238] sm:$0xff]  }
 0x31b   : > { %11437 = vmatprep.mubr.bf16.mxu1 %v15635_v21  ;;  %11466 = vmatpush3.bf16.msra.mxu1 %v12793_v63  ;;  %v12909_v63 = vld [vmem:[#allocation2 + $0x98] sm:$0xff]  ;;  %v12911_v21 = vld [vmem:[#allocation2 + $0xa8] sm:$0xff] }
 0x31c   : > { %11467 = vmatprep.subr.bf16.mxu1 %v12794_v38 }
 0x31d   : > { %11558 = vmatpush3.bf16.msra.mxu0 %v12807_v17 }
 0x31e   : > { %11559 = vmatprep.subr.bf16.mxu0 %v12808_v43 }
 0x31f   : > { %11468 = vmatpush3.bf16.msra.mxu1 %v12794_v38  ;;  %v12801_v38 = vld [vmem:[#allocation9 + $0x230] sm:$0xff]  }
 0x320   : > { %11501 = vmatprep.subr.bf16.mxu1 %v12795_v62 }
 0x321   : > { %11560 = vmatpush3.bf16.msra.mxu0 %v12808_v43 }
 0x322   : > { %11438 = vmatmul.mubr.bf16.gmra.mrb[48].mxu1 %v3954_v0  ;;  %11561 = vmatprep.subr.bf16.mxu0 %v12809_v23 }
 0x323   : > { %11441 = vmatprep.mubr.bf16.mxu1 %v3956_v40  ;;  %v4644_v40 = vsel %vm15641_vm15, %v14543_v25, 0 }
 0x324   : > { %v4695_v16 = vrot.slane %v4644_v40, 2 }
 0x325   : > { %11562 = vmatpush3.bf16.msra.mxu0 %v12809_v23 }
 0x326   : > { %v4696_v54 = vsel %vm1380_vm8, %v4693_v33, %v4695_v16 }
 0x32a   : > { %11442 = vmatmul.mubr.bf16.gmra.mrb[52].mxu1 %v3958_v18  ;;  %v15648_v18 = vrot.slane %v15647_v13, 2 }
 0x32b   : > { %11445 = vmatprep.mubr.bf16.mxu1 %v3960_v50 }
 0x332   : > { %11446 = vmatmul.mubr.bf16.gmra.mrb[56].mxu1 %v3962_v1 }
 0x333   : > { %11449 = vmatprep.mubr.bf16.mxu1 %v3964_v35  ;;  %v4652_v35 = vsel %vm2277_vm4, %v4298_v58, 0 }
 0x334   : > { %v4711_v3 = vrot.slane %v4652_v35, 2 }
 0x33a   : > { %11450 = vmatmul.mubr.bf16.gmra.mrb[60].mxu1 %v3966_v31  ;;  %v4712_v31 = vsel %vm1380_vm8, %v4709_v34, %v4711_v3 }
 0x33b   : > { %11469 = vmatprep.mubr.bf16.mxu1 %v14529_v57  ;;  %v12798_v57 = vld [vmem:[#allocation9 + $0x218] sm:$0xff]  }
 0x342   : > { %11470 = vmatmul.mubr.bf16.vlgmr.msra.gmra.mrb[32].mxu1 %v14538_v10  ;;  %v4698_v10 = vsel %vm1380_vm8, %v4695_v16, %v4697_v56  ;;  %v12812_v56 = vld [vmem:[#allocation7 + $0x48] sm:$0xff]  }
 0x343   : > { %11502 = vmatpush3.bf16.msra.mxu1 %v12795_v62  ;;  %11473 = vmatprep.mubr.bf16.mxu1 %v14543_v25  ;;  %v4625_v62 = vld [vmem:[#allocation2 + $0x68] sm:$0xfc]  ;;  %v4649_v25 = vsel %vm2274_vm3, %v12910_v59, 0  ;;  %vm15651_vm3 = vcmp.ne.s16.totalorder %v14356_v9, 0  ;;  %v4657_v9 = vsel %vm2282_vm7, %v14574_v47, 0  ;;  %vm6133_vm7 = vcmask 1043456  }
 0x344   : > { %11503 = vmatprep.subr.bf16.mxu1 %v12796_v45  ;;  %v4642_v7 = vsel %vm2267_vm2, %v4625_v62, 0  ;;  %v4705_v5 = vrot.slane %v4649_v25, 2  ;;  %vm15649_vm2 = vcmp.ne.s16.totalorder %v14287_v48, 0  ;;  %v4653_v48 = vsel %vm2278_vm1, %v4299_v49, 0 }
 0x345   : > { %v4692_v32 = vrot.slane %v4642_v7, 2  ;;  %v4650_v50 = vsel %vm15649_vm2, %v12911_v21, 0  ;;  %v4713_v28 = vrot.slane %v4653_v48, 2  ;;  %v4655_v44 = vsel %vm15651_vm3, %v14574_v47, 0 }
 0x346   : > { %v4706_v41 = vsel %vm1380_vm8, %v15648_v18, %v4705_v5  ;;  %v4707_v22 = vrot.slane %v4650_v50, 2  ;;  %v4717_v26 = vrot.slane %v4655_v44, 2  ;;  %v4721_v51 = vrot.slane %v4657_v9, 2  ;;  %v12815_v44 = vld [vmem:[#allocation7 + $0x60] sm:$0xff]   ;;  %v12816_v9 = vld [vmem:[#allocation7 + $0x68] sm:$0xff]  }
 0x347   : > { %11504 = vmatpush3.bf16.msra.mxu1 %v12796_v45  ;;  %v4694_v0 = vsel %vm1380_vm8, %v4692_v32, %v4693_v33  ;;  %v4716_v45 = vsel %vm1380_vm8, %v4713_v28, %v4715_v37  ;;  %vm15652_vm1 = vcmp.ne.s16.totalorder %v14362_v27, 0 }
 0x348   : > { %11505 = vmatprep.subr.bf16.mxu1 %v12797_v60  ;;  %v4708_v2 = vsel %vm1380_vm8, %v4705_v5, %v4707_v22  ;;  %v4710_v1 = vsel %vm1380_vm8, %v4707_v22, %v4709_v34  ;;  %v4718_v24 = vsel %vm1380_vm8, %v4715_v37, %v4717_v26  ;;  %v4720_v17 = vsel %vm1380_vm8, %v4717_v26, %v4719_v14  ;;  %v12813_v5 = vld [vmem:[#allocation7 + $0x50] sm:$0xff]   ;;  %v12814_v34 = vld [vmem:[#allocation7 + $0x58] sm:$0xff]  }
 0x34a   : > { %11474 = vmatmul.mubr.bf16.gmra.mrb[36].mxu1 %v14550_v30  ;;  %v15646_v30 = vld [vmem:[#allocation35_spill] sm:$0xff] }
 0x34b   : > { %11477 = vmatprep.mubr.bf16.mxu1 %v12907_v39  ;;  %11506 = vmatpush3.bf16.msra.mxu1 %v12797_v60  ;;  %v4641_v60 = vld [vmem:[#allocation2 + $0xe8] sm:$0x3] }
 0x34c   : > { %11507 = vmatprep.subr.bf16.mxu1 %v12798_v57  ;;  %v4658_v43 = vsel %vm15652_vm1, %v4641_v60, 0 }
 0x34d   : > { %v4723_v4 = vrot.slane %v4658_v43, 2 }
 0x34f   : > { %11508 = vmatpush3.bf16.msra.mxu1 %v12798_v57  ;;  %v4722_v57 = vsel %vm1380_vm8, %v4719_v14, %v4721_v51  ;;  %v4724_v39 = vsel %vm1380_vm8, %v4721_v51, %v4723_v4 }
 0x350   : > { %11509 = vmatprep.subr.bf16.mxu1 %v12799_v19 }
 0x352   : > { %11478 = vmatmul.mubr.bf16.gmra.mrb[40].mxu1 %v12908_v6  ;;  %v14660_v6 = vld [vmem:[%s15477_s4] ss:$0 sm:$0xff] }
 0x353   : > { %11481 = vmatprep.mubr.bf16.mxu1 %v12909_v63  ;;  %11510 = vmatpush3.bf16.msra.mxu1 %v12799_v19  ;;  %v12810_v19 = vld [vmem:[#allocation10 + $0x38] sm:$0xff]  }
 0x354   : > { %11511 = vmatprep.subr.bf16.mxu1 %v12800_v36  ;;  %11563 = vmatprep.subr.bf16.mxu0 %v12810_v19 }
 0x355   : > { %11564 = vmatpush3.bf16.msra.mxu0 %v12810_v19 }
 0x357   : > { %11512 = vmatpush3.bf16.msra.mxu1 %v12800_v36  ;;  %v12811_v36 = vld [vmem:[#allocation7 + $0x40] sm:$0xff]  }
 0x358   : > { %11513 = vmatprep.subr.bf16.mxu1 %v12801_v38  ;;  %11597 = vmatprep.subr.bf16.mxu0 %v12811_v36 }
 0x35a   : > { %11482 = vmatmul.mubr.bf16.gmra.mrb[44].mxu1 %v12910_v59 }
 0x35b   : > { %11485 = vmatprep.mubr.bf16.mxu1 %v12911_v21  ;;  %11514 = vmatpush3.bf16.msra.mxu1 %v12801_v38 }
 0x35c   : > { %11515 = vmatprep.subr.bf16.mxu1 %v12802_v61 }
 0x35f   : > { %11516 = vmatpush3.bf16.msra.mxu1 %v12802_v61 }
 0x362   : > { %11486 = vmatmul.mubr.bf16.gmra.mrb[48].mxu1 %v14439_v53  ;;  %v4714_v53 = vsel %vm1380_vm8, %v4711_v3, %v4713_v28  ;;  %vm13114_vm8 = vmmov 0  }
 0x363   : > { %11489 = vmatprep.mubr.bf16.mxu1 %v4298_v58  ;;  %vm5952_vm4 = vmpackc.low %vm13114_vm8, %vm13114_vm8 }
 0x36a   : > { %11490 = vmatmul.mubr.bf16.gmra.mrb[52].mxu1 %v4299_v49 }
 0x36b   : > { %11493 = vmatprep.mubr.bf16.mxu1 %v14574_v47 }
 0x372   : > { %11494 = vmatmul.mubr.bf16.gmra.mrb[56].mxu1 %v14574_v47 }
 0x373   : > { %11497 = vmatprep.mubr.bf16.mxu1 %v14574_v47 }
 0x37a   : > { %11498 = vmatmul.mubr.bf16.gmra.mrb[60].mxu1 %v14574_v47 }
 0x37b   : > { %11517 = vmatprep.mubr.bf16.mxu1 %v4694_v0 }
 0x382   : > { %11518 = vmatmul.mubr.bf16.vlgmr.msra.gmra.mrb[32].mxu1 %v4696_v54 }
 0x383   : > { %11521 = vmatprep.mubr.bf16.mxu1 %v4698_v10 }
 0x38a   : > { %11522 = vmatmul.mubr.bf16.gmra.mrb[36].mxu1 %v4700_v20 }
 0x38b   : > { %11525 = vmatprep.mubr.bf16.mxu1 %v15645_v52 }
 0x392   : > { %11526 = vmatmul.mubr.bf16.gmra.mrb[40].mxu1 %v15646_v30 }
 0x393   : > { %11529 = vmatprep.mubr.bf16.mxu1 %v4706_v41 }
 0x39a   : > { %11530 = vmatmul.mubr.bf16.gmra.mrb[44].mxu1 %v4708_v2 }
 0x39b   : > { %11533 = vmatprep.mubr.bf16.mxu1 %v4710_v1 }
 0x3a2   : > { %11534 = vmatmul.mubr.bf16.gmra.mrb[48].mxu1 %v4712_v31 }
 0x3a3   : > { %11537 = vmatprep.mubr.bf16.mxu1 %v4714_v53 }
 0x3aa   : > { %11538 = vmatmul.mubr.bf16.gmra.mrb[52].mxu1 %v4716_v45 }
 0x3ab   : > { %11541 = vmatprep.mubr.bf16.mxu1 %v4718_v24 }
 0x3b2   : > { %11542 = vmatmul.mubr.bf16.gmra.mrb[56].mxu1 %v4720_v17 }
 0x3b3   : > { %11545 = vmatprep.mubr.bf16.mxu1 %v4722_v57 }
 0x3ba   : > { %11546 = vmatmul.mubr.bf16.gmra.mrb[60].mxu1 %v4724_v39 }
 0x455   : > { %v11519_v27 = vpop.f32.mrb[32].mxu1 }
 0x456   : > { %v5087_v63 = vadd.f32 %v11519_v27, %v14660_v6  ;;  %v4823_v38 = vpop.f32.mrb[33].mxu1 }
 0x457   : > { %v5085_v61 = vadd.f32 %v14660_v6, %v4823_v38  ;;  %v11520_v59 = vpop.f32.mrb[34].mxu1 }
 0x458   : > { %v5088_v21 = vadd.f32 %v11520_v59, %v14660_v6  ;;  %v4826_v58 = vpop.f32.mrb[35].mxu1  ;;  %v5119_v62 = vmax.f32 %v5087_v63, 0.0 }
 0x459   : > { %v5086_v49 = vadd.f32 %v14660_v6, %v4826_v58  ;;  %v5117_v42 = vmax.f32 %v5085_v61, 0.0 }
 0x45a   : > { %v5120_v7 = vmax.f32 %v5088_v21, 0.0 }
 0x45b   : > { %v5118_v32 = vmax.f32 %v5086_v49, 0.0 }
 0x45c   : > { %v5150_v33 = vpack.c.bf16 %v5120_v7, %v5119_v62 }
 0x45d   : > { %v11523_v0 = vpop.f32.mrb[36].mxu1  ;;  %v5149_v40 = vpack.c.bf16 %v5118_v32, %v5117_v42 }
 0x45e   : > { %v5091_v8 = vadd.f32 %v11523_v0, %v14660_v6  ;;  %v4839_v16 = vpop.f32.mrb[37].mxu1 }
 0x45f   : > { %v5089_v54 = vadd.f32 %v14660_v6, %v4839_v16  ;;  %v11524_v10 = vpop.f32.mrb[38].mxu1  ;;  %11565 = vmatprep.mubr.bf16.mxu0 %v5149_v40 }
 0x460   : > { %v5092_v12 = vadd.f32 %v11524_v10, %v14660_v6  ;;  %v4842_v46 = vpop.f32.mrb[39].mxu1  ;;  %11566 = vmatmul.mubr.bf16.vlgmr.msra.gmra.mrb[0].mxu0 %v5150_v33  ;;  %v5123_v52 = vmax.f32 %v5091_v8, 0.0 }
 0x461   : > { %v5090_v20 = vadd.f32 %v14660_v6, %v4842_v46  ;;  %11598 = vmatpush3.bf16.msra.mxu0 %v12811_v36  ;;  %v5121_v30 = vmax.f32 %v5089_v54, 0.0 }
 0x462   : > { %v5124_v25 = vmax.f32 %v5092_v12, 0.0  ;;  %11599 = vmatprep.subr.bf16.mxu0 %v12812_v56 }
 0x463   : > { %v5122_v13 = vmax.f32 %v5090_v20, 0.0 }
 0x464   : > { %v5152_v18 = vpack.c.bf16 %v5124_v25, %v5123_v52 }
 0x465   : > { %v5151_v41 = vpack.c.bf16 %v5122_v13, %v5121_v30  ;;  %v11527_v50 = vpop.f32.mrb[40].mxu1  ;;  %11600 = vmatpush3.bf16.msra.mxu0 %v12812_v56 }
 0x466   : > { %v5095_v55 = vadd.f32 %v11527_v50, %v14660_v6  ;;  %v4855_v22 = vpop.f32.mrb[41].mxu1  ;;  %11601 = vmatprep.subr.bf16.mxu0 %v12813_v5 }
 0x467   : > { %v5093_v2 = vadd.f32 %v14660_v6, %v4855_v22  ;;  %v11528_v1 = vpop.f32.mrb[42].mxu1  ;;  %11569 = vmatprep.mubr.bf16.mxu0 %v5151_v41 }
 0x468   : > { %v5096_v35 = vadd.f32 %v11528_v1, %v14660_v6  ;;  %v4858_v48 = vpop.f32.mrb[43].mxu1  ;;  %11570 = vmatmul.mubr.bf16.gmra.mrb[4].mxu0 %v5152_v18  ;;  %v5127_v28 = vmax.f32 %v5095_v55, 0.0 }
 0x469   : > { %v5094_v3 = vadd.f32 %v14660_v6, %v4858_v48  ;;  %11602 = vmatpush3.bf16.msra.mxu0 %v12813_v5  ;;  %v5125_v53 = vmax.f32 %v5093_v2, 0.0 }
 0x46a   : > { %v5128_v31 = vmax.f32 %v5096_v35, 0.0  ;;  %11603 = vmatprep.subr.bf16.mxu0 %v12814_v34 }
 0x46b   : > { %v5126_v15 = vmax.f32 %v5094_v3, 0.0 }
 0x46c   : > { %v5154_v26 = vpack.c.bf16 %v5128_v31, %v5127_v28 }
 0x46d   : > { %v5153_v37 = vpack.c.bf16 %v5126_v15, %v5125_v53  ;;  %v11531_v24 = vpop.f32.mrb[44].mxu1  ;;  %11604 = vmatpush3.bf16.msra.mxu0 %v12814_v34 }
 0x46e   : > { %v5099_v29 = vadd.f32 %v11531_v24, %v14660_v6  ;;  %v4871_v45 = vpop.f32.mrb[45].mxu1  ;;  %11605 = vmatprep.subr.bf16.mxu0 %v12815_v44 }
 0x46f   : > { %v5097_v14 = vadd.f32 %v14660_v6, %v4871_v45  ;;  %v11532_v51 = vpop.f32.mrb[46].mxu1  ;;  %11573 = vmatprep.mubr.bf16.mxu0 %v5153_v37 }
 0x470   : > { %v5100_v60 = vadd.f32 %v11532_v51, %v14660_v6  ;;  %v4874_v17 = vpop.f32.mrb[47].mxu1  ;;  %11574 = vmatmul.mubr.bf16.gmra.mrb[8].mxu0 %v5154_v26  ;;  %v5131_v43 = vmax.f32 %v5099_v29, 0.0 }
 0x471   : > { %v5098_v57 = vadd.f32 %v14660_v6, %v4874_v17  ;;  %11606 = vmatpush3.bf16.msra.mxu0 %v12815_v44  ;;  %v5129_v39 = vmax.f32 %v5097_v14, 0.0 }
 0x472   : > { %v5132_v4 = vmax.f32 %v5100_v60, 0.0  ;;  %11607 = vmatprep.subr.bf16.mxu0 %v12816_v9 }
 0x473   : > { %v5130_v23 = vmax.f32 %v5098_v57, 0.0 }
 0x474   : > { %v5156_v19 = vpack.c.bf16 %v5132_v4, %v5131_v43  ;;  %v12817_v4 = vld [vmem:[#allocation7 + $0x70] sm:$0xff]  }
 0x475   : > { %v5155_v36 = vpack.c.bf16 %v5130_v23, %v5129_v39  ;;  %v11535_v27 = vpop.f32.mrb[48].mxu1  ;;  %11608 = vmatpush3.bf16.msra.mxu0 %v12816_v9  ;;  %v12818_v39 = vld [vmem:[#allocation7 + $0x78] sm:$0xff]   ;;  %v12819_v23 = vld [vmem:[#allocation9 + $0x240] sm:$0xff]  }
 0x476   : > { %v5103_v63 = vadd.f32 %v11535_v27, %v14660_v6  ;;  %v4887_v38 = vpop.f32.mrb[49].mxu1  ;;  %11609 = vmatprep.subr.bf16.mxu0 %v12817_v4 }
 0x477   : > { %v5101_v61 = vadd.f32 %v14660_v6, %v4887_v38  ;;  %v11536_v59 = vpop.f32.mrb[50].mxu1  ;;  %11577 = vmatprep.mubr.bf16.mxu0 %v5155_v36 }
 0x478   : > { %v5104_v21 = vadd.f32 %v11536_v59, %v14660_v6  ;;  %v4890_v58 = vpop.f32.mrb[51].mxu1  ;;  %11578 = vmatmul.mubr.bf16.gmra.mrb[12].mxu0 %v5156_v19  ;;  %v5135_v62 = vmax.f32 %v5103_v63, 0.0  ;;  %v5431_v63 = vld [vmem:[%s13383_s30 + $0x10] sm:$0xff] }
 0x479   : > { %v5102_v49 = vadd.f32 %v14660_v6, %v4890_v58  ;;  %v5133_v42 = vmax.f32 %v5101_v61, 0.0  ;;  %11610 = vmatpush3.bf16.msra.mxu0 %v12817_v4  ;;  %v5440_v4 = vld [vmem:[%s13383_s30 + $0x58] sm:$0xff] }
 0x47a   : > { %v5136_v7 = vmax.f32 %v5104_v21, 0.0  ;;  %11611 = vmatprep.subr.bf16.mxu0 %v12818_v39  ;;  %v5429_v21 = vld [vmem:[%s13383_s30] sm:$0xff] }
 0x47b   : > { %v5134_v32 = vmax.f32 %v5102_v49, 0.0 }
 0x47c   : > { %v5158_v33 = vpack.c.bf16 %v5136_v7, %v5135_v62  ;;  %v5432_v7 = vld [vmem:[%s13383_s30 + $0x18] sm:$0xff] }
 0x47d   : > { %v5157_v0 = vpack.c.bf16 %v5134_v32, %v5133_v42  ;;  %v11539_v40 = vpop.f32.mrb[52].mxu1  ;;  %11612 = vmatpush3.bf16.msra.mxu0 %v12818_v39 }
 0x47e   : > { %v5107_v8 = vadd.f32 %v11539_v40, %v14660_v6  ;;  %v4903_v16 = vpop.f32.mrb[53].mxu1  ;;  %11645 = vmatprep.subr.bf16.mxu0 %v12819_v23 }
 0x47f   : > { %v5105_v56 = vadd.f32 %v14660_v6, %v4903_v16  ;;  %v11540_v54 = vpop.f32.mrb[54].mxu1  ;;  %11581 = vmatprep.mubr.bf16.mxu0 %v5157_v0  ;;  %v5430_v0 = vld [vmem:[%s13383_s30 + $0x8] sm:$0xff] }
 0x480   : > { %v5108_v10 = vadd.f32 %v11540_v54, %v14660_v6  ;;  %v4906_v12 = vpop.f32.mrb[55].mxu1  ;;  %11582 = vmatmul.mubr.bf16.gmra.mrb[16].mxu0 %v5158_v33  ;;  %v5139_v20 = vmax.f32 %v5107_v8, 0.0 }
 0x481   : > { %v5106_v46 = vadd.f32 %v14660_v6, %v4906_v12  ;;  %v5137_v25 = vmax.f32 %v5105_v56, 0.0 }
 0x482   : > { %v5140_v52 = vmax.f32 %v5108_v10, 0.0 }
 0x483   : > { %v5138_v5 = vmax.f32 %v5106_v46, 0.0 }
 0x484   : > { %v5160_v30 = vpack.c.bf16 %v5140_v52, %v5139_v20  ;;  %v5435_v20 = vld [vmem:[%s13383_s30 + $0x30] sm:$0xff] }
 0x485   : > { %v5159_v13 = vpack.c.bf16 %v5138_v5, %v5137_v25  ;;  %v11543_v18 = vpop.f32.mrb[56].mxu1 }
 0x486   : > { %v5111_v41 = vadd.f32 %v11543_v18, %v14660_v6  ;;  %v4919_v50 = vpop.f32.mrb[57].mxu1 }
 0x487   : > { %v5109_v55 = vadd.f32 %v14660_v6, %v4919_v50  ;;  %v11544_v22 = vpop.f32.mrb[58].mxu1  ;;  %11585 = vmatprep.mubr.bf16.mxu0 %v5159_v13  ;;  %v5433_v13 = vld [vmem:[%s13383_s30 + $0x20] sm:$0xff]  ;;  %v12820_v50 = vld [vmem:[#allocation9 + $0x248] sm:$0xff]  }
 0x488   : > { %v5112_v34 = vadd.f32 %v11544_v22, %v14660_v6  ;;  %v4922_v2 = vpop.f32.mrb[59].mxu1  ;;  %11586 = vmatmul.mubr.bf16.gmra.mrb[20].mxu0 %v5160_v30  ;;  %v5143_v35 = vmax.f32 %v5111_v41, 0.0  ;;  %v5436_v22 = vld [vmem:[%s13383_s30 + $0x38] sm:$0xff] }
 0x489   : > { %v5110_v1 = vadd.f32 %v14660_v6, %v4922_v2  ;;  %v5141_v3 = vmax.f32 %v5109_v55, 0.0 }
 0x48a   : > { %v5144_v48 = vmax.f32 %v5112_v34, 0.0 }
 0x48b   : > { %v5142_v28 = vmax.f32 %v5110_v1, 0.0 }
 0x48c   : > { %v5162_v31 = vpack.c.bf16 %v5144_v48, %v5143_v35  ;;  %v5434_v35 = vld [vmem:[%s13383_s30 + $0x28] sm:$0xff] }
 0x48d   : > { %v5161_v44 = vpack.c.bf16 %v5142_v28, %v5141_v3  ;;  %v11547_v53 = vpop.f32.mrb[60].mxu1 }
 0x48e   : > { %v5115_v15 = vadd.f32 %v11547_v53, %v14660_v6  ;;  %v4935_v26 = vpop.f32.mrb[61].mxu1 }
 0x48f   : > { %v5113_v37 = vadd.f32 %v14660_v6, %v4935_v26  ;;  %v11548_v24 = vpop.f32.mrb[62].mxu1  ;;  %11589 = vmatprep.mubr.bf16.mxu0 %v5161_v44 }
 0x490   : > { %v5116_v29 = vadd.f32 %v11548_v24, %v14660_v6  ;;  %v4938_v45 = vpop.f32.mrb[63].mxu1  ;;  %11590 = vmatmul.mubr.bf16.gmra.mrb[24].mxu0 %v5162_v31  ;;  %v5147_v14 = vmax.f32 %v5115_v15, 0.0  ;;  %v12821_v31 = vld [vmem:[#allocation9 + $0x250] sm:$0xff]  }
 0x491   : > { %v5114_v9 = vadd.f32 %v14660_v6, %v4938_v45  ;;  %v5145_v60 = vmax.f32 %v5113_v37, 0.0  ;;  %v14697_v6 = vld [vmem:[%s15479_s6] ss:$0 sm:$0xff] }
 0x492   : > { %v5148_v51 = vmax.f32 %v5116_v29, 0.0  ;;  %v5439_v24 = vld [vmem:[%s13383_s30 + $0x50] sm:$0xff] }
 0x493   : > { %v5146_v17 = vmax.f32 %v5114_v9, 0.0 }
 0x494   : > { %v5164_v57 = vpack.c.bf16 %v5148_v51, %v5147_v14  ;;  %v5437_v51 = vld [vmem:[%s13383_s30 + $0x40] sm:$0xff] }
 0x495   : > { %v5163_v43 = vpack.c.bf16 %v5146_v17, %v5145_v60 }
 0x497   : > { %11593 = vmatprep.mubr.bf16.mxu0 %v5163_v43 }
 0x498   : > { %11594 = vmatmul.mubr.bf16.gmra.mrb[28].mxu0 %v5164_v57  ;;  %v12822_v57 = vld [vmem:[#allocation9 + $0x258] sm:$0xff]  }
 0x533   : > { %v11567_v19 = vpop.f32.mrb[0].mxu0 }
 0x534   : > { %v5279_v36 = vadd.f32 %v11567_v19, %v14697_v6  ;;  %v5270_v27 = vpop.f32.mrb[1].mxu0 }
 0x535   : > { %v5271_v38 = vadd.f32 %v14697_v6, %v5270_v27  ;;  %v11568_v61 = vpop.f32.mrb[2].mxu0 }
 0x536   : > { %v5399_v59 = vmax.f32 %v5279_v36, 0.0  ;;  %v5282_v58 = vadd.f32 %v11568_v61, %v14697_v6  ;;  %v5273_v49 = vpop.f32.mrb[3].mxu0  ;;  %v5438_v36 = vld [vmem:[%s13383_s30 + $0x48] sm:$0xff]  ;;  %v12823_v61 = vld [vmem:[#allocation9 + $0x260] sm:$0xff]  }
 0x537   : > { %v5397_v62 = vmax.f32 %v5271_v38, 0.0  ;;  %v5274_v42 = vadd.f32 %v14697_v6, %v5273_v49 }
 0x538   : > { %v5463_v32 = vadd.f32 %v5431_v63, %v5399_v59  ;;  %v5400_v33 = vmax.f32 %v5282_v58, 0.0 }
 0x539   : > { %v5461_v40 = vadd.f32 %v5429_v21, %v5397_v62  ;;  %v5398_v8 = vmax.f32 %v5274_v42, 0.0 }
 0x53a   : > { %5495 = vst [vmem:[%s13383_s30 + $0x10] sm:$0xff] %v5463_v32  ;;  %v5464_v16 = vadd.f32 %v5432_v7, %v5400_v33  ;;  %v5443_v7 = vld [vmem:[%s13383_s30 + $0x70] sm:$0xff] }
 0x53b   : > { %5493 = vst [vmem:[%s13383_s30] sm:$0xff] %v5461_v40  ;;  %v5462_v56 = vadd.f32 %v5430_v0, %v5398_v8  ;;  %v11571_v54 = vpop.f32.mrb[4].mxu0 }
 0x53c   : > { %5496 = vst [vmem:[%s13383_s30 + $0x18] sm:$0xff] %v5464_v16  ;;  %v5295_v10 = vadd.f32 %v11571_v54, %v14697_v6  ;;  %v5286_v12 = vpop.f32.mrb[5].mxu0  ;;  %v5558_v46 = vpack.c.bf16 %v5464_v16, %v5463_v32 }
 0x53d   : > { %5494 = vst [vmem:[%s13383_s30 + $0x8] sm:$0xff] %v5462_v56  ;;  %v5287_v52 = vadd.f32 %v14697_v6, %v5286_v12  ;;  %v11572_v25 = vpop.f32.mrb[6].mxu0  ;;  %v5557_v5 = vpack.c.bf16 %v5462_v56, %v5461_v40  ;;  %v5441_v40 = vld [vmem:[%s13383_s30 + $0x60] sm:$0xff]  ;;  %v12824_v56 = vld [vmem:[#allocation9 + $0x268] sm:$0xff]  }
 0x53e   : > { %v5403_v30 = vmax.f32 %v5295_v10, 0.0  ;;  %v5298_v18 = vadd.f32 %v11572_v25, %v14697_v6  ;;  %v5289_v41 = vpop.f32.mrb[7].mxu0  ;;  %v5444_v10 = vld [vmem:[%s13383_s30 + $0x78] sm:$0xff] }
 0x53f   : > { %v5401_v55 = vmax.f32 %v5287_v52, 0.0  ;;  %v5290_v34 = vadd.f32 %v14697_v6, %v5289_v41  ;;  %11613 = vmatprep.mubr.bf16.mxu0 %v5557_v5  ;;  %v5442_v52 = vld [vmem:[%s13383_s30 + $0x68] sm:$0xff] }
 0x540   : > { %v5467_v2 = vadd.f32 %v5435_v20, %v5403_v30  ;;  %v5404_v1 = vmax.f32 %v5298_v18, 0.0  ;;  %11614 = vmatmul.mubr.bf16.vlgmr.msra.gmra.mrb[32].mxu0 %v5558_v46 }
 0x541   : > { %v5465_v48 = vadd.f32 %v5433_v13, %v5401_v55  ;;  %v5402_v3 = vmax.f32 %v5290_v34, 0.0  ;;  %11646 = vmatpush3.bf16.msra.mxu0 %v12819_v23  ;;  %v12825_v13 = vld [vmem:[#allocation9 + $0x270] sm:$0xff]  }
 0x542   : > { %5499 = vst [vmem:[%s13383_s30 + $0x30] sm:$0xff] %v5467_v2  ;;  %v5468_v28 = vadd.f32 %v5436_v22, %v5404_v1  ;;  %11647 = vmatprep.subr.bf16.mxu0 %v12820_v50  ;;  %v5447_v34 = vld [vmem:[%s13383_s30 + $0x90] sm:$0xff] }
 0x543   : > { %5497 = vst [vmem:[%s13383_s30 + $0x20] sm:$0xff] %v5465_v48  ;;  %v5466_v44 = vadd.f32 %v5434_v35, %v5402_v3  ;;  %v11575_v53 = vpop.f32.mrb[8].mxu0  ;;  %v5445_v3 = vld [vmem:[%s13383_s30 + $0x80] sm:$0xff] }
 0x544   : > { %5500 = vst [vmem:[%s13383_s30 + $0x38] sm:$0xff] %v5468_v28  ;;  %v5311_v15 = vadd.f32 %v11575_v53, %v14697_v6  ;;  %v5302_v26 = vpop.f32.mrb[9].mxu0  ;;  %v5560_v37 = vpack.c.bf16 %v5468_v28, %v5467_v2 }
 0x545   : > { %5498 = vst [vmem:[%s13383_s30 + $0x28] sm:$0xff] %v5466_v44  ;;  %v5303_v29 = vadd.f32 %v14697_v6, %v5302_v26  ;;  %v11576_v45 = vpop.f32.mrb[10].mxu0  ;;  %v5559_v9 = vpack.c.bf16 %v5466_v44, %v5465_v48  ;;  %11648 = vmatpush3.bf16.msra.mxu0 %v12820_v50  ;;  %v12826_v44 = vld [vmem:[#allocation9 + $0x278] sm:$0xff]  }
 0x546   : > { %v5407_v14 = vmax.f32 %v5311_v15, 0.0  ;;  %v5314_v60 = vadd.f32 %v11576_v45, %v14697_v6  ;;  %v5305_v17 = vpop.f32.mrb[11].mxu0  ;;  %11649 = vmatprep.subr.bf16.mxu0 %v12821_v31  ;;  %v5448_v15 = vld [vmem:[%s13383_s30 + $0x98] sm:$0xff] }
 0x547   : > { %v5405_v43 = vmax.f32 %v5303_v29, 0.0  ;;  %v5306_v39 = vadd.f32 %v14697_v6, %v5305_v17  ;;  %11617 = vmatprep.mubr.bf16.mxu0 %v5559_v9  ;;  %v5446_v29 = vld [vmem:[%s13383_s30 + $0x88] sm:$0xff] }
 0x548   : > { %v5471_v23 = vadd.f32 %v5439_v24, %v5407_v14  ;;  %v5408_v19 = vmax.f32 %v5314_v60, 0.0  ;;  %11618 = vmatmul.mubr.bf16.gmra.mrb[36].mxu0 %v5560_v37 }
 0x549   : > { %v5469_v27 = vadd.f32 %v5437_v51, %v5405_v43  ;;  %v5406_v63 = vmax.f32 %v5306_v39, 0.0  ;;  %11650 = vmatpush3.bf16.msra.mxu0 %v12821_v31  ;;  %v14756_v51 = vld [vmem:[#allocation9 + $0x280] sm:$0xff]   ;;  %v5451_v39 = vld [vmem:[%s13383_s30 + $0xb0] sm:$0xff] }
 0x54a   : > { %5503 = vst [vmem:[%s13383_s30 + $0x50] sm:$0xff] %v5471_v23  ;;  %v5472_v38 = vadd.f32 %v5440_v4, %v5408_v19  ;;  %11651 = vmatprep.subr.bf16.mxu0 %v12822_v57 }
 0x54b   : > { %5501 = vst [vmem:[%s13383_s30 + $0x40] sm:$0xff] %v5469_v27  ;;  %v5470_v59 = vadd.f32 %v5438_v36, %v5406_v63  ;;  %v11579_v21 = vpop.f32.mrb[12].mxu0  ;;  %v5449_v63 = vld [vmem:[%s13383_s30 + $0xa0] sm:$0xff] }
 0x54c   : > { %5504 = vst [vmem:[%s13383_s30 + $0x58] sm:$0xff] %v5472_v38  ;;  %v5327_v58 = vadd.f32 %v11579_v21, %v14697_v6  ;;  %v5318_v49 = vpop.f32.mrb[13].mxu0  ;;  %v5562_v62 = vpack.c.bf16 %v5472_v38, %v5471_v23  ;;  %v5452_v21 = vld [vmem:[%s13383_s30 + $0xb8] sm:$0xff] }
 0x54d   : > { %5502 = vst [vmem:[%s13383_s30 + $0x48] sm:$0xff] %v5470_v59  ;;  %v5319_v42 = vadd.f32 %v14697_v6, %v5318_v49  ;;  %v11580_v32 = vpop.f32.mrb[14].mxu0  ;;  %v5561_v33 = vpack.c.bf16 %v5470_v59, %v5469_v27  ;;  %11652 = vmatpush3.bf16.msra.mxu0 %v12822_v57 }
 0x54e   : > { %v5411_v0 = vmax.f32 %v5327_v58, 0.0  ;;  %v5330_v8 = vadd.f32 %v11580_v32, %v14697_v6  ;;  %v5321_v16 = vpop.f32.mrb[15].mxu0  ;;  %11653 = vmatprep.subr.bf16.mxu0 %v12823_v61 }
 0x54f   : > { %v5409_v54 = vmax.f32 %v5319_v42, 0.0  ;;  %v5322_v12 = vadd.f32 %v14697_v6, %v5321_v16  ;;  %11621 = vmatprep.mubr.bf16.mxu0 %v5561_v33 }
 0x550   : > { %v5475_v46 = vadd.f32 %v5443_v7, %v5411_v0  ;;  %v5412_v20 = vmax.f32 %v5330_v8, 0.0  ;;  %11622 = vmatmul.mubr.bf16.gmra.mrb[40].mxu0 %v5562_v62  ;;  %v5450_v7 = vld [vmem:[%s13383_s30 + $0xa8] sm:$0xff] }
 0x551   : > { %v5473_v25 = vadd.f32 %v5441_v40, %v5409_v54  ;;  %v5410_v5 = vmax.f32 %v5322_v12, 0.0  ;;  %11654 = vmatpush3.bf16.msra.mxu0 %v12823_v61  ;;  %v5455_v54 = vld [vmem:[%s13383_s30 + $0xd0] sm:$0xff] }
 0x552   : > { %5507 = vst [vmem:[%s13383_s30 + $0x70] sm:$0xff] %v5475_v46  ;;  %v5476_v30 = vadd.f32 %v5444_v10, %v5412_v20  ;;  %11655 = vmatprep.subr.bf16.mxu0 %v12824_v56  ;;  %v14778_v20 = vsel %vm5952_vm4, 65537, %v14574_v47 }
 0x553   : > { %5505 = vst [vmem:[%s13383_s30 + $0x60] sm:$0xff] %v5473_v25  ;;  %v5474_v18 = vadd.f32 %v5442_v52, %v5410_v5  ;;  %v11583_v41 = vpop.f32.mrb[16].mxu0  ;;  %v10416_v47 = vcombine.low %v14778_v20, %v14778_v20 }
 0x554   : > { %5508 = vst [vmem:[%s13383_s30 + $0x78] sm:$0xff] %v5476_v30  ;;  %v5343_v50 = vadd.f32 %v11583_v41, %v14697_v6  ;;  %v5334_v55 = vpop.f32.mrb[17].mxu0  ;;  %v5564_v22 = vpack.c.bf16 %v5476_v30, %v5475_v46 }
 0x555   : > { %5506 = vst [vmem:[%s13383_s30 + $0x68] sm:$0xff] %v5474_v18  ;;  %v5335_v2 = vadd.f32 %v14697_v6, %v5334_v55  ;;  %v11584_v1 = vpop.f32.mrb[18].mxu0  ;;  %v5563_v35 = vpack.c.bf16 %v5474_v18, %v5473_v25  ;;  %11656 = vmatpush3.bf16.msra.mxu0 %v12824_v56  ;;  %v5453_v25 = vld [vmem:[%s13383_s30 + $0xc0] sm:$0xff]  ;;  %v5456_v18 = vld [vmem:[%s13383_s30 + $0xd8] sm:$0xff]  ;;  %vm14793_vm10 = vcmp.ne.s16.totalorder %v10416_v47, 0 }
 0x556   : > { %v5415_v48 = vmax.f32 %v5343_v50, 0.0  ;;  %v5346_v28 = vadd.f32 %v11584_v1, %v14697_v6  ;;  %v5337_v31 = vpop.f32.mrb[19].mxu0  ;;  %11657 = vmatprep.subr.bf16.mxu0 %v12825_v13 }
 0x557   : > { %v5413_v53 = vmax.f32 %v5335_v2, 0.0  ;;  %v5338_v26 = vadd.f32 %v14697_v6, %v5337_v31  ;;  %11625 = vmatprep.mubr.bf16.mxu0 %v5563_v35 }
 0x558   : > { %v5479_v37 = vadd.f32 %v5447_v34, %v5415_v48  ;;  %v5416_v24 = vmax.f32 %v5346_v28, 0.0  ;;  %11626 = vmatmul.mubr.bf16.gmra.mrb[44].mxu0 %v5564_v22  ;;  %v5454_v22 = vld [vmem:[%s13383_s30 + $0xc8] sm:$0xff]  ;;  %v10417_v34 = vcombine.low %v13591_v11, %v14778_v20 }
 0x559   : > { %v5477_v45 = vadd.f32 %v5445_v3, %v5413_v53  ;;  %v5414_v9 = vmax.f32 %v5338_v26, 0.0  ;;  %11658 = vmatpush3.bf16.msra.mxu0 %v12825_v13  ;;  %v5935_v53 = vld [vmem:[#allocation2] sm:$0xf0]  ;;  %v8507_v26 = vld [vmem:[#allocation2 + $0x100] sm:$0xf] }
 0x55a   : > { %5511 = vst [vmem:[%s13383_s30 + $0x90] sm:$0xff] %v5479_v37  ;;  %v5480_v14 = vadd.f32 %v5448_v15, %v5416_v24  ;;  %11659 = vmatprep.subr.bf16.mxu0 %v12826_v44  ;;  %vm14797_vm12 = vcmp.ne.s16.totalorder %v10417_v34, 0 }
 0x55b   : > { %5509 = vst [vmem:[%s13383_s30 + $0x80] sm:$0xff] %v5477_v45  ;;  %v5478_v60 = vadd.f32 %v5446_v29, %v5414_v9  ;;  %v11587_v17 = vpop.f32.mrb[20].mxu0 }
 0x55c   : > { %5512 = vst [vmem:[%s13383_s30 + $0x98] sm:$0xff] %v5480_v14  ;;  %v5359_v57 = vadd.f32 %v11587_v17, %v14697_v6  ;;  %v5350_v43 = vpop.f32.mrb[21].mxu0  ;;  %v5566_v4 = vpack.c.bf16 %v5480_v14, %v5479_v37  ;;  %v5459_v37 = vld [vmem:[%s13383_s30 + $0xf0] sm:$0xff]  ;;  %v5457_v14 = vld [vmem:[%s13383_s30 + $0xe0] sm:$0xff] }
 0x55d   : > { %5510 = vst [vmem:[%s13383_s30 + $0x88] sm:$0xff] %v5478_v60  ;;  %v5351_v23 = vadd.f32 %v14697_v6, %v5350_v43  ;;  %v11588_v19 = vpop.f32.mrb[22].mxu0  ;;  %v5565_v36 = vpack.c.bf16 %v5478_v60, %v5477_v45  ;;  %11660 = vmatpush3.bf16.msra.mxu0 %v12826_v44  ;;  %v5460_v43 = vld [vmem:[%s13383_s30 + $0xf8] sm:$0xff] }
 0x55e   : > { %v5419_v27 = vmax.f32 %v5359_v57, 0.0  ;;  %v5362_v38 = vadd.f32 %v11588_v19, %v14697_v6  ;;  %v5353_v61 = vpop.f32.mrb[23].mxu0  ;;  %11693 = vmatprep.subr.bf16.mxu0 %v14756_v51 }
 0x55f   : > { %v5417_v59 = vmax.f32 %v5351_v23, 0.0  ;;  %v5354_v58 = vadd.f32 %v14697_v6, %v5353_v61  ;;  %11629 = vmatprep.mubr.bf16.mxu0 %v5565_v36  ;;  %v14810_v23 = vld [vmem:[#allocation2 + $0x20] sm:$0xff] }
 0x560   : > { %v5483_v49 = vadd.f32 %v5451_v39, %v5419_v27  ;;  %v5420_v62 = vmax.f32 %v5362_v38, 0.0  ;;  %11630 = vmatmul.mubr.bf16.gmra.mrb[48].mxu0 %v5566_v4  ;;  %v6082_v39 = vsel %vm14793_vm10, %v5935_v53, 0  ;;  %v6083_v19 = vsel %vm14797_vm12, %v14810_v23, 0 }
 0x561   : > { %v5481_v42 = vadd.f32 %v5449_v63, %v5417_v59  ;;  %v5418_v32 = vmax.f32 %v5354_v58, 0.0  ;;  %v5458_v63 = vld [vmem:[%s13383_s30 + $0xe8] sm:$0xff]  ;;  %v6134_v59 = vrot.slane %v6082_v39, 4 }
 0x562   : > { %5515 = vst [vmem:[%s13383_s30 + $0xb0] sm:$0xff] %v5483_v49  ;;  %v5484_v33 = vadd.f32 %v5452_v21, %v5420_v62  ;;  %v14817_v21 = vrot.slane %v6083_v19, 4 }
 0x563   : > { %5513 = vst [vmem:[%s13383_s30 + $0xa0] sm:$0xff] %v5481_v42  ;;  %v5482_v0 = vadd.f32 %v5450_v7, %v5418_v32  ;;  %v11591_v40 = vpop.f32.mrb[24].mxu0  ;;  %v12829_v32 = vld [vmem:[#allocation9 + $0x290] sm:$0xff]  }
 0x564   : > { %5516 = vst [vmem:[%s13383_s30 + $0xb8] sm:$0xff] %v5484_v33  ;;  %v5375_v8 = vadd.f32 %v11591_v40, %v14697_v6  ;;  %v5366_v16 = vpop.f32.mrb[25].mxu0  ;;  %v5568_v56 = vpack.c.bf16 %v5484_v33, %v5483_v49  ;;  %v6136_v7 = vsel %vm6133_vm7, %v6134_v59, %v14817_v21  ;;  %v12830_v33 = vld [vmem:[#allocation9 + $0x298] sm:$0xff]   ;;  %v12833_v40 = vld [vmem:[#allocation9 + $0x2b0] sm:$0xff]  }
 0x565   : > { %5514 = vst [vmem:[%s13383_s30 + $0xa8] sm:$0xff] %v5482_v0  ;;  %v5367_v10 = vadd.f32 %v14697_v6, %v5366_v16  ;;  %v11592_v12 = vpop.f32.mrb[26].mxu0  ;;  %v5567_v46 = vpack.c.bf16 %v5482_v0, %v5481_v42  ;;  %v12828_v42 = vld [vmem:[#allocation9 + $0x288] sm:$0xff]   ;;  %v14832_v16 = vld [vmem:[#allocation9 + $0x2c0] sm:$0xff]  }
 0x566   : > { %v5423_v52 = vmax.f32 %v5375_v8, 0.0  ;;  %v5378_v5 = vadd.f32 %v11592_v12, %v14697_v6  ;;  %v5369_v30 = vpop.f32.mrb[27].mxu0  ;;  %v12832_v0 = vld [vmem:[#allocation9 + $0x2a8] sm:$0xff]   ;;  %v12834_v8 = vld [vmem:[#allocation9 + $0x2b8] sm:$0xff]  }
 0x567   : > { %v5421_v13 = vmax.f32 %v5367_v10, 0.0  ;;  %v5370_v41 = vadd.f32 %v14697_v6, %v5369_v30  ;;  %11633 = vmatprep.mubr.bf16.mxu0 %v5567_v46 }
 0x568   : > { %v5487_v50 = vadd.f32 %v5455_v54, %v5423_v52  ;;  %v5424_v55 = vmax.f32 %v5378_v5, 0.0  ;;  %11634 = vmatmul.mubr.bf16.gmra.mrb[52].mxu0 %v5568_v56  ;;  %v14838_v56 = vld [vmem:[%s15475_s2 + $0x1] ss:$0 sm:$0xff] }
 0x569   : > { %v5485_v2 = vadd.f32 %v5453_v25, %v5421_v13  ;;  %v5422_v1 = vmax.f32 %v5370_v41, 0.0 }
 0x56a   : > { %5519 = vst [vmem:[%s13383_s30 + $0xd0] sm:$0xff] %v5487_v50  ;;  %v5488_v35 = vadd.f32 %v5456_v18, %v5424_v55 }
 0x56b   : > { %5517 = vst [vmem:[%s13383_s30 + $0xc0] sm:$0xff] %v5485_v2  ;;  %v5486_v48 = vadd.f32 %v5454_v22, %v5422_v1  ;;  %v11595_v3 = vpop.f32.mrb[28].mxu0 }
 0x56c   : > { %5520 = vst [vmem:[%s13383_s30 + $0xd8] sm:$0xff] %v5488_v35  ;;  %v5391_v28 = vadd.f32 %v11595_v3, %v14697_v6  ;;  %v5382_v31 = vpop.f32.mrb[29].mxu0  ;;  %v5570_v44 = vpack.c.bf16 %v5488_v35, %v5487_v50 }
 0x56d   : > { %5518 = vst [vmem:[%s13383_s30 + $0xc8] sm:$0xff] %v5486_v48  ;;  %v5383_v24 = vadd.f32 %v14697_v6, %v5382_v31  ;;  %v11596_v29 = vpop.f32.mrb[30].mxu0  ;;  %v5569_v45 = vpack.c.bf16 %v5486_v48, %v5485_v2 }
 0x56e   : > { %v5427_v9 = vmax.f32 %v5391_v28, 0.0  ;;  %v5394_v60 = vadd.f32 %v11596_v29, %v14697_v6  ;;  %v5385_v17 = vpop.f32.mrb[31].mxu0 }
 0x56f   : > { %v5425_v57 = vmax.f32 %v5383_v24, 0.0  ;;  %v5386_v4 = vadd.f32 %v14697_v6, %v5385_v17  ;;  %11637 = vmatprep.mubr.bf16.mxu0 %v5569_v45 }
 0x570   : > { %v5491_v36 = vadd.f32 %v5459_v37, %v5427_v9  ;;  %v5428_v27 = vmax.f32 %v5394_v60, 0.0  ;;  %11638 = vmatmul.mubr.bf16.gmra.mrb[56].mxu0 %v5570_v44 }
 0x571   : > { %v5489_v38 = vadd.f32 %v5457_v14, %v5425_v57  ;;  %v5426_v61 = vmax.f32 %v5386_v4, 0.0 }
 0x572   : > { %5523 = vst [vmem:[%s13383_s30 + $0xf0] sm:$0xff] %v5491_v36  ;;  %v5492_v6 = vadd.f32 %v5460_v43, %v5428_v27 }
 0x573   : > { %5521 = vst [vmem:[%s13383_s30 + $0xe0] sm:$0xff] %v5489_v38  ;;  %v5490_v58 = vadd.f32 %v5458_v63, %v5426_v61 }
 0x574   : > { %5524 = vst [vmem:[%s13383_s30 + $0xf8] sm:$0xff] %v5492_v6  ;;  %v5572_v49 = vpack.c.bf16 %v5492_v6, %v5491_v36 }
 0x575   : > { %5522 = vst [vmem:[%s13383_s30 + $0xe8] sm:$0xff] %v5490_v58  ;;  %v5571_v62 = vpack.c.bf16 %v5490_v58, %v5489_v38 }
 0x577   : > { %11641 = vmatprep.mubr.bf16.mxu0 %v5571_v62 }
 0x578   : > { %11642 = vmatmul.mubr.bf16.gmra.mrb[60].mxu0 %v5572_v49 }
 0x579   : > { %11661 = vmatprep.mubr.bf16.mxu0 %v6136_v7 }
 0x580   : > { %11662 = vmatmul.mubr.bf16.vlgmr.msra.gmra.mrb[64].mxu0 %v14817_v21 }
 0x581   : > { %11694 = vmatpush3.bf16.msra.mxu0 %v14756_v51  ;;  %11665 = vmatprep.mubr.bf16.mxu0 %v14817_v21  ;;  %v12831_v51 = vld [vmem:[#allocation9 + $0x2a0] sm:$0xff]  }
 0x582   : > { %11695 = vmatprep.subr.bf16.mxu0 %v12828_v42 }
 0x585   : > { %11696 = vmatpush3.bf16.msra.mxu0 %v12828_v42 }
 0x586   : > { %11697 = vmatprep.subr.bf16.mxu0 %v12829_v32 }
 0x588   : > { %11666 = vmatmul.mubr.bf16.gmra.mrb[68].mxu0 %v14817_v21 }
 0x589   : > { %11669 = vmatprep.mubr.bf16.mxu0 %v14817_v21  ;;  %11698 = vmatpush3.bf16.msra.mxu0 %v12829_v32 }
 0x58a   : > { %11699 = vmatprep.subr.bf16.mxu0 %v12830_v33 }
 0x58d   : > { %11700 = vmatpush3.bf16.msra.mxu0 %v12830_v33 }
 0x58e   : > { %11701 = vmatprep.subr.bf16.mxu0 %v12831_v51 }
 0x590   : > { %11670 = vmatmul.mubr.bf16.gmra.mrb[72].mxu0 %v14817_v21 }
 0x591   : > { %11673 = vmatprep.mubr.bf16.mxu0 %v14817_v21  ;;  %11702 = vmatpush3.bf16.msra.mxu0 %v12831_v51 }
 0x592   : > { %11703 = vmatprep.subr.bf16.mxu0 %v12832_v0 }
 0x595   : > { %11704 = vmatpush3.bf16.msra.mxu0 %v12832_v0 }
 0x596   : > { %11705 = vmatprep.subr.bf16.mxu0 %v12833_v40 }
 0x598   : > { %11674 = vmatmul.mubr.bf16.gmra.mrb[76].mxu0 %v14817_v21 }
 0x599   : > { %11706 = vmatpush3.bf16.msra.mxu0 %v12833_v40 }
 0x59a   : > { %11707 = vmatprep.subr.bf16.mxu0 %v12834_v8 }
 0x59d   : > { %11708 = vmatpush3.bf16.msra.mxu0 %v12834_v8 }
 0x59e   : > { %11741 = vmatprep.subr.bf16.mxu0 %v14832_v16 }
 0x613   : > { %v11615_v54 = vpop.f32.mrb[32].mxu0 }
 0x614   : > { %v5689_v10 = vadd.f32 %v11615_v54, %v14838_v56  ;;  %v5680_v12 = vpop.f32.mrb[33].mxu0 }
 0x615   : > { %v5681_v46 = vadd.f32 %v14838_v56, %v5680_v12  ;;  %v11616_v52 = vpop.f32.mrb[34].mxu0 }
 0x616   : > { %v5692_v25 = vadd.f32 %v11616_v52, %v14838_v56  ;;  %v5683_v5 = vpop.f32.mrb[35].mxu0  ;;  %v5809_v13 = vmax.f32 %v5689_v10, 0.0 }
 0x617   : > { %v5684_v30 = vadd.f32 %v14838_v56, %v5683_v5  ;;  %v5807_v41 = vmax.f32 %v5681_v46, 0.0 }
 0x618   : > { %v5810_v18 = vmax.f32 %v5692_v25, 0.0 }
 0x619   : > { %v5808_v50 = vmax.f32 %v5684_v30, 0.0 }
 0x61a   : > { %v14844_v55 = vpack.c.bf16 %v5810_v18, %v5809_v13 }
 0x61b   : > { %v14846_v22 = vpack.c.bf16 %v5808_v50, %v5807_v41  ;;  %v11619_v47 = vpop.f32.mrb[36].mxu0 }
 0x61c   : > { %5856 = vst [vmem:[#allocation2 + $0x50] sm:$0xff] %v14844_v55  ;;  %v5705_v34 = vadd.f32 %v11619_v47, %v14838_v56  ;;  %v5696_v2 = vpop.f32.mrb[37].mxu0  ;;  %v6092_v1 = vsel %vm14797_vm12, %v14844_v55, 0 }
 0x61d   : > { %5855 = vst [vmem:[#allocation2 + $0x48] sm:$0xff] %v14846_v22  ;;  %v5697_v35 = vadd.f32 %v14838_v56, %v5696_v2  ;;  %v11620_v48 = vpop.f32.mrb[38].mxu0  ;;  %v6091_v3 = vsel %vm14797_vm12, %v14846_v22, 0  ;;  %v6153_v28 = vrot.slane %v6092_v1, 4 }
 0x61e   : > { %v5708_v31 = vadd.f32 %v11620_v48, %v14838_v56  ;;  %v5699_v44 = vpop.f32.mrb[39].mxu0  ;;  %v14859_v53 = vrot.slane %v6091_v3, 4  ;;  %v5813_v24 = vmax.f32 %v5705_v34, 0.0 }
 0x61f   : > { %v5700_v37 = vadd.f32 %v14838_v56, %v5699_v44  ;;  %v5811_v14 = vmax.f32 %v5697_v35, 0.0 }
 0x620   : > { %v5814_v29 = vmax.f32 %v5708_v31, 0.0  ;;  %v6152_v45 = vsel %vm6133_vm7, %v14817_v21, %v14859_v53  ;;  %v14867_v9 = vsel %vm6133_vm7, %v14859_v53, %v6153_v28 }
 0x621   : > { %v5812_v60 = vmax.f32 %v5700_v37, 0.0  ;;  %11677 = vmatprep.mubr.bf16.mxu0 %v6152_v45 }
 0x622   : > { %v14869_v17 = vpack.c.bf16 %v5814_v29, %v5813_v24  ;;  %11678 = vmatmul.mubr.bf16.gmra.mrb[80].mxu0 %v14867_v9 }
 0x623   : > { %v14872_v57 = vpack.c.bf16 %v5812_v60, %v5811_v14  ;;  %v11623_v43 = vpop.f32.mrb[40].mxu0  ;;  %v10432_v60 = vcombine.low %v13591_v11, %v13591_v11 }
 0x624   : > { %5858 = vst [vmem:[#allocation2 + $0x60] sm:$0xff] %v14869_v17  ;;  %v5721_v4 = vadd.f32 %v11623_v43, %v14838_v56  ;;  %v5712_v39 = vpop.f32.mrb[41].mxu0  ;;  %v6094_v19 = vsel %vm14797_vm12, %v14869_v17, 0 }
 0x625   : > { %5857 = vst [vmem:[#allocation2 + $0x58] sm:$0xff] %v14872_v57  ;;  %v5713_v36 = vadd.f32 %v14838_v56, %v5712_v39  ;;  %v11624_v27 = vpop.f32.mrb[42].mxu0  ;;  %v6093_v63 = vsel %vm14797_vm12, %v14872_v57, 0  ;;  %v6157_v38 = vrot.slane %v6094_v19, 4  ;;  %vm14944_vm5 = vcmp.ne.s16.totalorder %v10432_v60, 0 }
 0x626   : > { %v5724_v61 = vadd.f32 %v11624_v27, %v14838_v56  ;;  %v5715_v6 = vpop.f32.mrb[43].mxu0  ;;  %v6155_v59 = vrot.slane %v6093_v63, 4  ;;  %v5817_v58 = vmax.f32 %v5721_v4, 0.0 }
 0x627   : > { %v5716_v21 = vadd.f32 %v14838_v56, %v5715_v6  ;;  %v5815_v42 = vmax.f32 %v5713_v36, 0.0 }
 0x628   : > { %v5818_v49 = vmax.f32 %v5724_v61, 0.0  ;;  %v14887_v62 = vsel %vm6133_vm7, %v6153_v28, %v6155_v59  ;;  %v14890_v7 = vsel %vm6133_vm7, %v6155_v59, %v6157_v38 }
 0x629   : > { %v5816_v32 = vmax.f32 %v5716_v21, 0.0  ;;  %11681 = vmatprep.mubr.bf16.mxu0 %v14887_v62 }
 0x62a   : > { %v14893_v33 = vpack.c.bf16 %v5818_v49, %v5817_v58  ;;  %11682 = vmatmul.mubr.bf16.gmra.mrb[84].mxu0 %v14890_v7 }
 0x62b   : > { %v14896_v51 = vpack.c.bf16 %v5816_v32, %v5815_v42  ;;  %v11627_v0 = vpop.f32.mrb[44].mxu0 }
 0x62c   : > { %5860 = vst [vmem:[#allocation2 + $0x70] sm:$0xff] %v14893_v33  ;;  %v5737_v40 = vadd.f32 %v11627_v0, %v14838_v56  ;;  %v5728_v8 = vpop.f32.mrb[45].mxu0  ;;  %v6096_v54 = vsel %vm14797_vm12, %v14893_v33, 0 }
 0x62d   : > { %5859 = vst [vmem:[#allocation2 + $0x68] sm:$0xff] %v14896_v51  ;;  %v5729_v10 = vadd.f32 %v14838_v56, %v5728_v8  ;;  %v11628_v12 = vpop.f32.mrb[46].mxu0  ;;  %v6095_v46 = vsel %vm14797_vm12, %v14896_v51, 0  ;;  %v6161_v52 = vrot.slane %v6096_v54, 4 }
 0x62e   : > { %v5740_v25 = vadd.f32 %v11628_v12, %v14838_v56  ;;  %v5731_v5 = vpop.f32.mrb[47].mxu0  ;;  %v6159_v30 = vrot.slane %v6095_v46, 4  ;;  %v5821_v18 = vmax.f32 %v5737_v40, 0.0 }
 0x62f   : > { %v5732_v13 = vadd.f32 %v14838_v56, %v5731_v5  ;;  %v5819_v34 = vmax.f32 %v5729_v10, 0.0 }
 0x630   : > { %v5822_v41 = vmax.f32 %v5740_v25, 0.0  ;;  %v14911_v50 = vsel %vm6133_vm7, %v6157_v38, %v6159_v30  ;;  %v14914_v47 = vsel %vm6133_vm7, %v6159_v30, %v6161_v52 }
 0x631   : > { %v5820_v2 = vmax.f32 %v5732_v13, 0.0  ;;  %11685 = vmatprep.mubr.bf16.mxu0 %v14911_v50 }
 0x632   : > { %v14917_v1 = vpack.c.bf16 %v5822_v41, %v5821_v18  ;;  %11686 = vmatmul.mubr.bf16.gmra.mrb[88].mxu0 %v14914_v47 }
 0x633   : > { %v14920_v35 = vpack.c.bf16 %v5820_v2, %v5819_v34  ;;  %v11631_v48 = vpop.f32.mrb[48].mxu0 }
 0x634   : > { %5862 = vst [vmem:[#allocation2 + $0x80] sm:$0xff] %v14917_v1  ;;  %v5753_v3 = vadd.f32 %v11631_v48, %v14838_v56  ;;  %v5744_v28 = vpop.f32.mrb[49].mxu0 }
 0x635   : > { %5861 = vst [vmem:[#allocation2 + $0x78] sm:$0xff] %v14920_v35  ;;  %v5745_v31 = vadd.f32 %v14838_v56, %v5744_v28  ;;  %v11632_v44 = vpop.f32.mrb[50].mxu0  ;;  %v6097_v37 = vsel %vm14797_vm12, %v14920_v35, 0 }
 0x636   : > { %v5756_v24 = vadd.f32 %v11632_v44, %v14838_v56  ;;  %v5747_v29 = vpop.f32.mrb[51].mxu0  ;;  %v14930_v45 = vrot.slane %v6097_v37, 4  ;;  %v5825_v43 = vmax.f32 %v5753_v3, 0.0  ;;  %v12836_v3 = vld [vmem:[#allocation9 + $0x2c8] sm:$0xff]  }
 0x637   : > { %v5748_v14 = vadd.f32 %v14838_v56, %v5747_v29  ;;  %v5823_v19 = vmax.f32 %v5745_v31, 0.0 }
 0x638   : > { %v5826_v4 = vmax.f32 %v5756_v24, 0.0  ;;  %v14937_v39 = vsel %vm6133_vm7, %v6161_v52, %v14930_v45 }
 0x639   : > { %v5824_v36 = vmax.f32 %v5748_v14, 0.0  ;;  %11689 = vmatprep.mubr.bf16.mxu0 %v14937_v39  ;;  %v12837_v14 = vld [vmem:[#allocation9 + $0x2d0] sm:$0xff]  }
 0x63a   : > { %v14940_v27 = vpack.c.bf16 %v5826_v4, %v5825_v43 }
 0x63b   : > { %v14942_v63 = vpack.c.bf16 %v5824_v36, %v5823_v19  ;;  %v11635_v38 = vpop.f32.mrb[52].mxu0  ;;  %v5951_v61 = vld [vmem:[#allocation2 + $0x80] sm:$0xf] }
 0x63c   : > { %5864 = vst [vmem:[#allocation2 + $0x90] sm:$0xff] %v14940_v27  ;;  %v5769_v59 = vadd.f32 %v11635_v38, %v14838_v56  ;;  %v5760_v21 = vpop.f32.mrb[53].mxu0  ;;  %v6098_v58 = vsel %vm14944_vm5, %v5951_v61, 0 }
 0x63d   : > { %5863 = vst [vmem:[#allocation2 + $0x88] sm:$0xff] %v14942_v63  ;;  %v5761_v49 = vadd.f32 %v14838_v56, %v5760_v21  ;;  %v11636_v42 = vpop.f32.mrb[54].mxu0  ;;  %v6165_v32 = vrot.slane %v6098_v58, 4 }
 0x63e   : > { %v5772_v0 = vadd.f32 %v11636_v42, %v14838_v56  ;;  %v5763_v40 = vpop.f32.mrb[55].mxu0  ;;  %v5829_v10 = vmax.f32 %v5769_v59, 0.0  ;;  %v12838_v59 = vld [vmem:[#allocation9 + $0x2d8] sm:$0xff]  }
 0x63f   : > { %v5764_v8 = vadd.f32 %v14838_v56, %v5763_v40  ;;  %v6166_v54 = vsel %vm6133_vm7, %v14930_v45, %v6165_v32  ;;  %v5827_v46 = vmax.f32 %v5761_v49, 0.0  ;;  %v12839_v40 = vld [vmem:[#allocation9 + $0x2e0] sm:$0xff]  }
 0x640   : > { %v5830_v12 = vmax.f32 %v5772_v0, 0.0  ;;  %11690 = vmatmul.mubr.bf16.gmra.mrb[92].mxu0 %v6166_v54  ;;  %v12841_v54 = vld [vmem:[#allocation9 + $0x2f0] sm:$0xff]  }
 0x641   : > { %v5828_v52 = vmax.f32 %v5764_v8, 0.0  ;;  %11709 = vmatprep.mubr.bf16.mxu0 %v14810_v23 }
 0x642   : > { %v14959_v25 = vpack.c.bf16 %v5830_v12, %v5829_v10  ;;  %v12842_v10 = vld [vmem:[#allocation9 + $0x2f8] sm:$0xff]   ;;  %v12843_v12 = vld [vmem:[#allocation9 + $0x300] sm:$0xff]  }
 0x643   : > { %v14961_v5 = vpack.c.bf16 %v5828_v52, %v5827_v46  ;;  %v11639_v30 = vpop.f32.mrb[56].mxu0  ;;  %v10450_v46 = vcombine.low %v14778_v20, %v13591_v11  ;;  %v6761_v52 = vld [vmem:[#allocation2 + $0x8] sm:$0xf0]  ;;  %v12844_v20 = vld [vmem:[#allocation9 + $0x308] sm:$0xff]  }
 0x644   : > { %5866 = vst [vmem:[#allocation2 + $0xa0] sm:$0xff] %v14959_v25  ;;  %v5785_v13 = vadd.f32 %v11639_v30, %v14838_v56  ;;  %v5776_v18 = vpop.f32.mrb[57].mxu0 }
 0x645   : > { %5865 = vst [vmem:[#allocation2 + $0x98] sm:$0xff] %v14961_v5  ;;  %v5777_v41 = vadd.f32 %v14838_v56, %v5776_v18  ;;  %v11640_v34 = vpop.f32.mrb[58].mxu0  ;;  %vm15000_vm9 = vcmp.ne.s16.totalorder %v10450_v46, 0  ;;  %v7312_v46 = vld [vmem:[#allocation2 + $0x40] sm:$0xf0] }
 0x646   : > { %v5788_v2 = vadd.f32 %v11640_v34, %v14838_v56  ;;  %v5779_v48 = vpop.f32.mrb[59].mxu0  ;;  %v5833_v31 = vmax.f32 %v5785_v13, 0.0  ;;  %v6908_v13 = vsel %vm14944_vm5, %v6761_v52, 0  ;;  %v6909_v18 = vsel %vm15000_vm9, %v14810_v23, 0 }
 0x647   : > { %v5780_v28 = vadd.f32 %v14838_v56, %v5779_v48  ;;  %v5831_v37 = vmax.f32 %v5777_v41, 0.0  ;;  %v6958_v41 = vrot.slane %v6908_v13, 4  ;;  %v6959_v34 = vrot.slane %v6909_v18, 4  ;;  %v12846_v48 = vld [vmem:[#allocation9 + $0x318] sm:$0xff]  }
 0x648   : > { %v5834_v44 = vmax.f32 %v5788_v2, 0.0  ;;  %11710 = vmatmul.mubr.bf16.vlgmr.msra.gmra.mrb[64].mxu0 %v14810_v23  ;;  %v12845_v2 = vld [vmem:[#allocation9 + $0x310] sm:$0xff]  }
 0x649   : > { %v5832_v24 = vmax.f32 %v5780_v28, 0.0  ;;  %11742 = vmatpush3.bf16.msra.mxu0 %v14832_v16  ;;  %11713 = vmatprep.mubr.bf16.mxu0 %v14810_v23  ;;  %v6960_v11 = vsel %vm6133_vm7, %v6958_v41, %v6959_v34  ;;  %v6916_v28 = vsel %vm15000_vm9, %v14846_v22, 0  ;;  %v7329_v41 = vsel %vm14793_vm10, %v7312_v46, 0  ;;  %v12860_v46 = vld [vmem:[#allocation9 + $0x388] sm:$0xff]  }
 0x64a   : > { %v14972_v29 = vpack.c.bf16 %v5834_v44, %v5833_v31  ;;  %11743 = vmatprep.subr.bf16.mxu0 %v12836_v3  ;;  %v6917_v31 = vsel %vm15000_vm9, %v14844_v55, 0  ;;  %v12849_v44 = vld [vmem:[#allocation9 + $0x330] sm:$0xff]  }
 0x64b   : > { %v14974_v60 = vpack.c.bf16 %v5832_v24, %v5831_v37  ;;  %v11643_v43 = vpop.f32.mrb[60].mxu0  ;;  %v6973_v37 = vrot.slane %v6916_v28, 4  ;;  %v6975_v24 = vrot.slane %v6917_v31, 4  ;;  %v12855_v28 = vld [vmem:[#allocation9 + $0x360] sm:$0xff]  }
 0x64c   : > { %5868 = vst [vmem:[#allocation2 + $0xb0] sm:$0xff] %v14972_v29  ;;  %v5801_v4 = vadd.f32 %v11643_v43, %v14838_v56  ;;  %v5792_v19 = vpop.f32.mrb[61].mxu0 }
 0x64d   : > { %5867 = vst [vmem:[#allocation2 + $0xa8] sm:$0xff] %v14974_v60  ;;  %v5793_v36 = vadd.f32 %v14838_v56, %v5792_v19  ;;  %v11644_v38 = vpop.f32.mrb[62].mxu0  ;;  %11744 = vmatpush3.bf16.msra.mxu0 %v12836_v3  ;;  %v12848_v3 = vld [vmem:[#allocation9 + $0x328] sm:$0xff]   ;;  %v6974_v43 = vsel %vm6133_vm7, %v6959_v34, %v6973_v37  ;;  %v12851_v19 = vld [vmem:[#allocation9 + $0x340] sm:$0xff]  }
 0x64e   : > { %v5804_v16 = vadd.f32 %v11644_v38, %v14838_v56  ;;  %v5795_v61 = vpop.f32.mrb[63].mxu0  ;;  %11745 = vmatprep.subr.bf16.mxu0 %v12837_v14  ;;  %v5837_v58 = vmax.f32 %v5801_v4, 0.0  ;;  %v6976_v4 = vsel %vm6133_vm7, %v6973_v37, %v6975_v24 }
 0x64f   : > { %v5796_v21 = vadd.f32 %v14838_v56, %v5795_v61  ;;  %v5835_v42 = vmax.f32 %v5793_v36, 0.0  ;;  %v12840_v56 = vld [vmem:[#allocation9 + $0x2e8] sm:$0xff]  }
 0x650   : > { %v5838_v49 = vmax.f32 %v5804_v16, 0.0  ;;  %11714 = vmatmul.mubr.bf16.gmra.mrb[68].mxu0 %v14810_v23 }
 0x651   : > { %v5836_v32 = vmax.f32 %v5796_v21, 0.0  ;;  %11717 = vmatprep.mubr.bf16.mxu0 %v14810_v23  ;;  %11746 = vmatpush3.bf16.msra.mxu0 %v12837_v14  ;;  %v12850_v14 = vld [vmem:[#allocation9 + $0x338] sm:$0xff]   ;;  %v6921_v21 = vsel %vm15000_vm9, %v14893_v33, 0 }
 0x652   : > { %v14984_v0 = vpack.c.bf16 %v5838_v49, %v5837_v58  ;;  %11747 = vmatprep.subr.bf16.mxu0 %v12838_v59  ;;  %v6983_v49 = vrot.slane %v6921_v21, 4 }
 0x653   : > { %v14986_v8 = vpack.c.bf16 %v5836_v32, %v5835_v42 }
 0x654   : > { %5870 = vst [vmem:[#allocation2 + $0xc0] sm:$0xff] %v14984_v0 }
 0x655   : > { %5869 = vst [vmem:[#allocation2 + $0xb8] sm:$0xff] %v14986_v8  ;;  %11748 = vmatpush3.bf16.msra.mxu0 %v12838_v59  ;;  %v6920_v59 = vsel %vm15000_vm9, %v14896_v51, 0  ;;  %v7344_v21 = vsel %vm14797_vm12, %v14986_v8, 0 }
 0x656   : > { %11749 = vmatprep.subr.bf16.mxu0 %v12839_v40  ;;  %v6981_v58 = vrot.slane %v6920_v59, 4  ;;  %v7343_v59 = vsel %vm14797_vm12, %v14972_v29, 0 }
 0x658   : > { %11718 = vmatmul.mubr.bf16.gmra.mrb[72].mxu0 %v14810_v23  ;;  %v6984_v32 = vsel %vm6133_vm7, %v6981_v58, %v6983_v49 }
 0x659   : > { %11721 = vmatprep.mubr.bf16.mxu0 %v14810_v23  ;;  %11750 = vmatpush3.bf16.msra.mxu0 %v12839_v40  ;;  %v6922_v40 = vsel %vm15000_vm9, %v14920_v35, 0 }
 0x65a   : > { %11751 = vmatprep.subr.bf16.mxu0 %v12840_v56 }
 0x65d   : > { %11752 = vmatpush3.bf16.msra.mxu0 %v12840_v56  ;;  %v6923_v56 = vsel %vm15000_vm9, %v14917_v1, 0 }
 0x65e   : > { %11753 = vmatprep.subr.bf16.mxu0 %v12841_v54 }
 0x660   : > { %11722 = vmatmul.mubr.bf16.gmra.mrb[76].mxu0 %v14810_v23  ;;  %v12847_v23 = vld [vmem:[#allocation9 + $0x320] sm:$0xff]  }
 0x661   : > { %11725 = vmatprep.mubr.bf16.mxu0 %v14846_v22  ;;  %11754 = vmatpush3.bf16.msra.mxu0 %v12841_v54  ;;  %v6918_v22 = vsel %vm15000_vm9, %v14872_v57, 0  ;;  %v6985_v54 = vrot.slane %v6922_v40, 4 }
 0x662   : > { %11755 = vmatprep.subr.bf16.mxu0 %v12842_v10  ;;  %v6977_v36 = vrot.slane %v6918_v22, 4 }
 0x663   : > { %v6986_v52 = vsel %vm6133_vm7, %v6983_v49, %v6985_v54  ;;  %v7408_v49 = vrot.slane %v7344_v21, 4 }
 0x664   : > { %v6978_v16 = vsel %vm6133_vm7, %v6975_v24, %v6977_v36  ;;  %v7340_v24 = vsel %vm14797_vm12, %v14961_v5, 0 }
 0x665   : > { %11756 = vmatpush3.bf16.msra.mxu0 %v12842_v10  ;;  %v6987_v10 = vrot.slane %v6923_v56, 4 }
 0x666   : > { %11789 = vmatprep.subr.bf16.mxu0 %v12843_v12 }
 0x667   : > { %v6988_v13 = vsel %vm6133_vm7, %v6985_v54, %v6987_v10 }
 0x668   : > { %11726 = vmatmul.mubr.bf16.gmra.mrb[80].mxu0 %v14844_v55  ;;  %v6919_v55 = vsel %vm15000_vm9, %v14869_v17, 0 }
 0x669   : > { %11729 = vmatprep.mubr.bf16.mxu0 %v14872_v57  ;;  %v6979_v38 = vrot.slane %v6919_v55, 4  ;;  %v7341_v55 = vsel %vm14797_vm12, %v14959_v25, 0 }
 0x66b   : > { %v6980_v61 = vsel %vm6133_vm7, %v6977_v36, %v6979_v38  ;;  %v6982_v42 = vsel %vm6133_vm7, %v6979_v38, %v6981_v58  ;;  %v7402_v36 = vrot.slane %v7341_v55, 4  ;;  %v7406_v58 = vrot.slane %v7343_v59, 4  ;;  %v12871_v55 = vld [vmem:[#allocation9 + $0x3e0] sm:$0xff]  }
 0x66d   : > { %v7409_v40 = vsel %vm6133_vm7, %v7406_v58, %v7408_v49 }
 0x670   : > { %11730 = vmatmul.mubr.bf16.gmra.mrb[84].mxu0 %v14869_v17 }
 0x671   : > { %11733 = vmatprep.mubr.bf16.mxu0 %v14896_v51 }
 0x678   : > { %11734 = vmatmul.mubr.bf16.gmra.mrb[88].mxu0 %v14893_v33 }
 0x679   : > { %11737 = vmatprep.mubr.bf16.mxu0 %v14920_v35 }
 0x680   : > { %11738 = vmatmul.mubr.bf16.gmra.mrb[92].mxu0 %v14917_v1 }
 0x681   : > { %11757 = vmatprep.mubr.bf16.mxu0 %v6960_v11  ;;  %v7379_v11 = vrot.slane %v7329_v41, 4  ;;  %v12863_v41 = vld [vmem:[#allocation9 + $0x3a0] sm:$0xff]  }
 0x688   : > { %11758 = vmatmul.mubr.bf16.vlgmr.msra.gmra.mrb[64].mxu0 %v6959_v34 }
 0x689   : > { %11790 = vmatpush3.bf16.msra.mxu0 %v12843_v12  ;;  %11761 = vmatprep.mubr.bf16.mxu0 %v6959_v34  ;;  %v6777_v12 = vld [vmem:[#allocation2 + $0x88] sm:$0xf] }
 0x68a   : > { %11791 = vmatprep.subr.bf16.mxu0 %v12844_v20  ;;  %v6924_v18 = vsel %vm14793_vm10, %v6777_v12, 0  ;;  %v7733_v12 = vld [vmem:[#allocation2 + $0x48] sm:$0xff] }
 0x68d   : > { %11792 = vmatpush3.bf16.msra.mxu0 %v12844_v20 }
 0x68e   : > { %11793 = vmatprep.subr.bf16.mxu0 %v12845_v2 }
 0x690   : > { %11762 = vmatmul.mubr.bf16.gmra.mrb[68].mxu0 %v6959_v34 }
 0x691   : > { %11765 = vmatprep.mubr.bf16.mxu0 %v6959_v34  ;;  %11794 = vmatpush3.bf16.msra.mxu0 %v12845_v2  ;;  %v7381_v2 = vsel %vm6133_vm7, %v7379_v11, %v14859_v53  ;;  %v12856_v53 = vld [vmem:[#allocation9 + $0x368] sm:$0xff]   ;;  %v12866_v11 = vld [vmem:[#allocation9 + $0x3b8] sm:$0xff]  }
 0x692   : > { %11795 = vmatprep.subr.bf16.mxu0 %v12846_v48 }
 0x695   : > { %11796 = vmatpush3.bf16.msra.mxu0 %v12846_v48  ;;  %v12852_v48 = vld [vmem:[#allocation9 + $0x348] sm:$0xff]  }
 0x696   : > { %11797 = vmatprep.subr.bf16.mxu0 %v12847_v23 }
 0x698   : > { %11766 = vmatmul.mubr.bf16.gmra.mrb[72].mxu0 %v6959_v34 }
 0x699   : > { %11769 = vmatprep.mubr.bf16.mxu0 %v6959_v34  ;;  %11798 = vmatpush3.bf16.msra.mxu0 %v12847_v23  ;;  %v6989_v34 = vrot.slane %v6924_v18, 4  ;;  %v12853_v23 = vld [vmem:[#allocation9 + $0x350] sm:$0xff]   ;;  %v12862_v18 = vld [vmem:[#allocation9 + $0x398] sm:$0xff]  }
 0x69a   : > { %11799 = vmatprep.subr.bf16.mxu0 %v12848_v3 }
 0x69b   : > { %v6990_v20 = vsel %vm6133_vm7, %v6987_v10, %v6989_v34  ;;  %v12864_v34 = vld [vmem:[#allocation9 + $0x3a8] sm:$0xff]  }
 0x69d   : > { %11800 = vmatpush3.bf16.msra.mxu0 %v12848_v3  ;;  %v12854_v3 = vld [vmem:[#allocation9 + $0x358] sm:$0xff]  }
 0x69e   : > { %11801 = vmatprep.subr.bf16.mxu0 %v12849_v44 }
 0x6a0   : > { %11770 = vmatmul.mubr.bf16.gmra.mrb[76].mxu0 %v6974_v43 }
 0x6a1   : > { %11773 = vmatprep.mubr.bf16.mxu0 %v6976_v4  ;;  %11802 = vmatpush3.bf16.msra.mxu0 %v12849_v44  ;;  %v12858_v44 = vld [vmem:[#allocation9 + $0x378] sm:$0xff]   ;;  %v7400_v4 = vrot.slane %v7340_v24, 4  ;;  %v8077_v24 = vld [vmem:[#allocation2 + $0x80] sm:$0xff] }
 0x6a2   : > { %11803 = vmatprep.subr.bf16.mxu0 %v12850_v14 }
 0x6a5   : > { %11804 = vmatpush3.bf16.msra.mxu0 %v12850_v14  ;;  %v12859_v14 = vld [vmem:[#allocation9 + $0x380] sm:$0xff]  }
 0x6a6   : > { %11837 = vmatprep.subr.bf16.mxu0 %v12851_v19 }
 0x6a8   : > { %11774 = vmatmul.mubr.bf16.gmra.mrb[80].mxu0 %v6978_v16  ;;  %v7403_v16 = vsel %vm6133_vm7, %v7400_v4, %v7402_v36 }
 0x6a9   : > { %11777 = vmatprep.mubr.bf16.mxu0 %v6980_v61 }
 0x6b0   : > { %11778 = vmatmul.mubr.bf16.gmra.mrb[84].mxu0 %v6982_v42  ;;  %v7328_v42 = vld [vmem:[#allocation2 + $0xc0] sm:$0xf] }
 0x6b1   : > { %11781 = vmatprep.mubr.bf16.mxu0 %v6984_v32  ;;  %v7345_v56 = vsel %vm14944_vm5, %v7328_v42, 0  ;;  %v12873_v42 = vld [vmem:[#allocation9 + $0x3f0] sm:$0xff]  }
 0x6b2   : > { %v7410_v54 = vrot.slane %v7345_v56, 4  ;;  %v15143_v56 = vld [vmem:[#allocation2 + $0xa0] sm:$0xff] }
 0x6b4   : > { %v7411_v10 = vsel %vm6133_vm7, %v7408_v49, %v7410_v54  ;;  %v12874_v54 = vld [vmem:[#allocation9 + $0x3f8] sm:$0xff]  }
 0x6b8   : > { %11782 = vmatmul.mubr.bf16.gmra.mrb[88].mxu0 %v6986_v52  ;;  %v7734_v52 = vld [vmem:[#allocation2 + $0x50] sm:$0xff] }
 0x6b9   : > { %11785 = vmatprep.mubr.bf16.mxu0 %v6988_v13  ;;  %v12861_v13 = vld [vmem:[#allocation9 + $0x390] sm:$0xff]  }
 0x6c0   : > { %11786 = vmatmul.mubr.bf16.gmra.mrb[92].mxu0 %v6990_v20  ;;  %v8073_v20 = vld [vmem:[#allocation2 + $0x60] sm:$0xff] }
 0x6c1   : > { %11805 = vmatprep.mubr.bf16.mxu0 %v7381_v2 }
 0x6c8   : > { %11806 = vmatmul.mubr.bf16.vlgmr.msra.gmra.mrb[64].mxu0 %v14867_v9  ;;  %v7337_v9 = vsel %vm14797_vm12, %v14917_v1, 0 }
 0x6c9   : > { %11838 = vmatpush3.bf16.msra.mxu0 %v12851_v19  ;;  %11809 = vmatprep.mubr.bf16.mxu0 %v14887_v62  ;;  %v7338_v62 = vsel %vm14797_vm12, %v14942_v63, 0  ;;  %v7342_v19 = vsel %vm14797_vm12, %v14974_v60, 0 }
 0x6ca   : > { %11839 = vmatprep.subr.bf16.mxu0 %v12852_v48  ;;  %v7396_v31 = vrot.slane %v7338_v62, 4  ;;  %v7404_v38 = vrot.slane %v7342_v19, 4 }
 0x6cc   : > { %v7405_v61 = vsel %vm6133_vm7, %v7402_v36, %v7404_v38  ;;  %v7407_v32 = vsel %vm6133_vm7, %v7404_v38, %v7406_v58  ;;  %v15129_v38 = vld [vmem:[#allocation2 + $0x88] sm:$0xff] }
 0x6cd   : > { %11840 = vmatpush3.bf16.msra.mxu0 %v12852_v48  ;;  %v8090_v48 = vsel %vm15000_vm9, %v8073_v20, 0  ;;  %v8095_v58 = vsel %vm15000_vm9, %v15129_v38, 0 }
 0x6ce   : > { %11841 = vmatprep.subr.bf16.mxu0 %v12853_v23 }
 0x6d0   : > { %11810 = vmatmul.mubr.bf16.gmra.mrb[68].mxu0 %v14890_v7  ;;  %v12857_v7 = vld [vmem:[#allocation9 + $0x370] sm:$0xff]  }
 0x6d1   : > { %11813 = vmatprep.mubr.bf16.mxu0 %v14911_v50  ;;  %11842 = vmatpush3.bf16.msra.mxu0 %v12853_v23  ;;  %v7394_v50 = vrot.slane %v7337_v9, 4  ;;  %v8075_v9 = vld [vmem:[#allocation2 + $0x70] sm:$0xff] }
 0x6d2   : > { %11843 = vmatprep.subr.bf16.mxu0 %v12854_v3 }
 0x6d3   : > { %v7397_v37 = vsel %vm6133_vm7, %v7394_v50, %v7396_v31 }
 0x6d5   : > { %11844 = vmatpush3.bf16.msra.mxu0 %v12854_v3  ;;  %v8142_v3 = vrot.slane %v8090_v48, 4  ;;  %v8491_v48 = vld [vmem:[#allocation2 + $0x80] sm:$0xf0] }
 0x6d6   : > { %11845 = vmatprep.subr.bf16.mxu0 %v12855_v28 }
 0x6d8   : > { %11814 = vmatmul.mubr.bf16.gmra.mrb[72].mxu0 %v14914_v47  ;;  %v7395_v47 = vsel %vm6133_vm7, %v14930_v45, %v7394_v50 }
 0x6d9   : > { %11817 = vmatprep.mubr.bf16.mxu0 %v14937_v39  ;;  %11846 = vmatpush3.bf16.msra.mxu0 %v12855_v28  ;;  %v7339_v39 = vsel %vm14797_vm12, %v14940_v27, 0  ;;  %v8074_v28 = vld [vmem:[#allocation2 + $0x68] sm:$0xff] }
 0x6da   : > { %11847 = vmatprep.subr.bf16.mxu0 %v12856_v53  ;;  %v7398_v43 = vrot.slane %v7339_v39, 4  ;;  %v8091_v50 = vsel %vm15000_vm9, %v8074_v28, 0  ;;  %v8076_v39 = vld [vmem:[#allocation2 + $0x78] sm:$0xff] }
 0x6dc   : > { %v7399_v45 = vsel %vm6133_vm7, %v7396_v31, %v7398_v43  ;;  %v7401_v22 = vsel %vm6133_vm7, %v7398_v43, %v7400_v4  ;;  %v8092_v31 = vsel %vm15000_vm9, %v8075_v9, 0 }
 0x6dd   : > { %11848 = vmatpush3.bf16.msra.mxu0 %v12856_v53  ;;  %v12868_v53 = vld [vmem:[#allocation9 + $0x3c8] sm:$0xff]  }
 0x6de   : > { %11849 = vmatprep.subr.bf16.mxu0 %v12857_v7 }
 0x6e0   : > { %11818 = vmatmul.mubr.bf16.gmra.mrb[76].mxu0 %v7395_v47  ;;  %v8144_v47 = vrot.slane %v8091_v50, 4 }
 0x6e1   : > { %11821 = vmatprep.mubr.bf16.mxu0 %v7397_v37  ;;  %11850 = vmatpush3.bf16.msra.mxu0 %v12857_v7  ;;  %v8146_v37 = vrot.slane %v8092_v31, 4 }
 0x6e2   : > { %11851 = vmatprep.subr.bf16.mxu0 %v12858_v44  ;;  %v8145_v43 = vsel %vm6133_vm7, %v8142_v3, %v8144_v47 }
 0x6e3   : > { %v8147_v4 = vsel %vm6133_vm7, %v8144_v47, %v8146_v37  ;;  %v12876_v47 = vld [vmem:[#allocation9 + $0x408] sm:$0xff]  }
 0x6e5   : > { %11852 = vmatpush3.bf16.msra.mxu0 %v12858_v44  ;;  %v12869_v44 = vld [vmem:[#allocation9 + $0x3d0] sm:$0xff]  }
 0x6e6   : > { %11885 = vmatprep.subr.bf16.mxu0 %v12859_v14 }
 0x6e8   : > { %11822 = vmatmul.mubr.bf16.gmra.mrb[80].mxu0 %v7399_v45  ;;  %v8093_v45 = vsel %vm15000_vm9, %v8076_v39, 0 }
 0x6e9   : > { %11825 = vmatprep.mubr.bf16.mxu0 %v7401_v22  ;;  %v8094_v22 = vsel %vm15000_vm9, %v8077_v24, 0  ;;  %v8148_v19 = vrot.slane %v8093_v45, 4 }
 0x6ea   : > { %v8150_v36 = vrot.slane %v8094_v22, 4 }
 0x6eb   : > { %v8149_v59 = vsel %vm6133_vm7, %v8146_v37, %v8148_v19  ;;  %v15194_v37 = vld [vmem:[#allocation2 + $0xa8] sm:$0xff] }
 0x6ec   : > { %v8151_v21 = vsel %vm6133_vm7, %v8148_v19, %v8150_v36  ;;  %v15206_v19 = vld [vmem:[#allocation2 + $0xb8] sm:$0xff] }
 0x6f0   : > { %11826 = vmatmul.mubr.bf16.gmra.mrb[84].mxu0 %v7403_v16  ;;  %v15131_v16 = vld [vmem:[#allocation2 + $0x90] sm:$0xff] }
 0x6f1   : > { %11829 = vmatprep.mubr.bf16.mxu0 %v7405_v61  ;;  %v12872_v61 = vld [vmem:[#allocation9 + $0x3e8] sm:$0xff]   ;;  %v8096_v49 = vsel %vm15000_vm9, %v15131_v16, 0 }
 0x6f8   : > { %11830 = vmatmul.mubr.bf16.gmra.mrb[88].mxu0 %v7407_v32  ;;  %v8152_v32 = vrot.slane %v8095_v58, 4  ;;  %v8515_v58 = vsel %vm14797_vm12, %v15206_v19, 0 }
 0x6f9   : > { %11833 = vmatprep.mubr.bf16.mxu0 %v7409_v40  ;;  %v15141_v40 = vrot.slane %v8096_v49, 4  ;;  %v12879_v49 = vld [vmem:[#allocation9 + $0x420] sm:$0xff]  }
 0x700   : > { %11834 = vmatmul.mubr.bf16.gmra.mrb[92].mxu0 %v7411_v10  ;;  %v8153_v10 = vsel %vm6133_vm7, %v8150_v36, %v8152_v32  ;;  %v12878_v36 = vld [vmem:[#allocation9 + $0x418] sm:$0xff]  }
 0x701   : > { %11853 = vmatprep.mubr.bf16.mxu0 %v7733_v12  ;;  %v8155_v12 = vsel %vm6133_vm7, %v8152_v32, %v15141_v40  ;;  %v8571_v32 = vrot.slane %v8515_v58, 4  ;;  %v12898_v58 = vld [vmem:[#allocation10 + $0x78] sm:$0xff]  }
 0x708   : > { %11854 = vmatmul.mubr.bf16.vlgmr.msra.gmra.mrb[64].mxu0 %v7734_v52 }
 0x709   : > { %11886 = vmatpush3.bf16.msra.mxu0 %v12859_v14  ;;  %11857 = vmatprep.mubr.bf16.mxu0 %v14872_v57  ;;  %v12865_v57 = vld [vmem:[#allocation9 + $0x3b0] sm:$0xff]   ;;  %v12870_v14 = vld [vmem:[#allocation9 + $0x3d8] sm:$0xff]  }
 0x70a   : > { %11887 = vmatprep.subr.bf16.mxu0 %v12860_v46 }
 0x70d   : > { %11888 = vmatpush3.bf16.msra.mxu0 %v12860_v46  ;;  %v8097_v46 = vsel %vm15000_vm9, %v14961_v5, 0 }
 0x70e   : > { %11889 = vmatprep.subr.bf16.mxu0 %v12861_v13 }
 0x710   : > { %11858 = vmatmul.mubr.bf16.gmra.mrb[68].mxu0 %v14869_v17  ;;  %v12867_v17 = vld [vmem:[#allocation9 + $0x3c0] sm:$0xff]  }
 0x711   : > { %11861 = vmatprep.mubr.bf16.mxu0 %v14896_v51  ;;  %11890 = vmatpush3.bf16.msra.mxu0 %v12861_v13  ;;  %v12875_v13 = vld [vmem:[#allocation9 + $0x400] sm:$0xff]  }
 0x712   : > { %11891 = vmatprep.subr.bf16.mxu0 %v12862_v18 }
 0x715   : > { %11892 = vmatpush3.bf16.msra.mxu0 %v12862_v18  ;;  %v8156_v18 = vrot.slane %v8097_v46, 4 }
 0x716   : > { %11893 = vmatprep.subr.bf16.mxu0 %v12863_v41 }
 0x718   : > { %11862 = vmatmul.mubr.bf16.gmra.mrb[72].mxu0 %v14893_v33  ;;  %v8070_v33 = vld [vmem:[#allocation2 + $0x48] sm:$0xf0] }
 0x719   : > { %11865 = vmatprep.mubr.bf16.mxu0 %v14920_v35  ;;  %11894 = vmatpush3.bf16.msra.mxu0 %v12863_v41  ;;  %v8087_v51 = vsel %vm14944_vm5, %v8070_v33, 0 }
 0x71a   : > { %11895 = vmatprep.subr.bf16.mxu0 %v12864_v34  ;;  %v8137_v35 = vrot.slane %v8087_v51, 4 }
 0x71d   : > { %11896 = vmatpush3.bf16.msra.mxu0 %v12864_v34  ;;  %v8157_v34 = vsel %vm6133_vm7, %v15141_v40, %v8156_v18 }
 0x71e   : > { %11897 = vmatprep.subr.bf16.mxu0 %v12865_v57 }
 0x720   : > { %11866 = vmatmul.mubr.bf16.gmra.mrb[76].mxu0 %v14917_v1  ;;  %v8088_v1 = vsel %vm15000_vm9, %v7734_v52, 0  ;;  %v8098_v52 = vsel %vm15000_vm9, %v15143_v56, 0 }
 0x721   : > { %11869 = vmatprep.mubr.bf16.mxu0 %v14942_v63  ;;  %11898 = vmatpush3.bf16.msra.mxu0 %v12865_v57  ;;  %v8138_v63 = vrot.slane %v8088_v1, 4  ;;  %v15154_v41 = vrot.slane %v8098_v52, 4  ;;  %v8099_v57 = vsel %vm15000_vm9, %v14974_v60, 0 }
 0x722   : > { %11899 = vmatprep.subr.bf16.mxu0 %v12866_v11 }
 0x725   : > { %11900 = vmatpush3.bf16.msra.mxu0 %v12866_v11  ;;  %v8100_v11 = vsel %vm15000_vm9, %v14972_v29, 0 }
 0x726   : > { %11933 = vmatprep.subr.bf16.mxu0 %v12867_v17  ;;  %v8162_v33 = vrot.slane %v8100_v11, 4  ;;  %v12882_v11 = vld [vmem:[#allocation9 + $0x438] sm:$0xff]  }
 0x728   : > { %11870 = vmatmul.mubr.bf16.gmra.mrb[80].mxu0 %v14940_v27  ;;  %v8072_v27 = vld [vmem:[#allocation2 + $0x58] sm:$0xff] }
 0x729   : > { %11873 = vmatprep.mubr.bf16.mxu0 %v14961_v5  ;;  %v8089_v2 = vsel %vm15000_vm9, %v8072_v27, 0  ;;  %v8159_v5 = vsel %vm6133_vm7, %v8156_v18, %v15154_v41 }
 0x72a   : > { %v8140_v23 = vrot.slane %v8089_v2, 4 }
 0x72c   : > { %v8141_v62 = vsel %vm6133_vm7, %v8138_v63, %v8140_v23  ;;  %v8143_v7 = vsel %vm6133_vm7, %v8140_v23, %v8142_v3 }
 0x730   : > { %11874 = vmatmul.mubr.bf16.gmra.mrb[84].mxu0 %v14959_v25  ;;  %v8139_v25 = vsel %vm6133_vm7, %v8137_v35, %v8138_v63  ;;  %v8101_v35 = vsel %vm15000_vm9, %v14986_v8, 0 }
 0x731   : > { %11877 = vmatprep.mubr.bf16.mxu0 %v14974_v60  ;;  %v8102_v60 = vsel %vm15000_vm9, %v14984_v0, 0  ;;  %v8164_v63 = vrot.slane %v8101_v35, 4 }
 0x732   : > { %v8166_v27 = vrot.slane %v8102_v60, 4 }
 0x733   : > { %v8165_v20 = vsel %vm6133_vm7, %v8162_v33, %v8164_v63 }
 0x738   : > { %11878 = vmatmul.mubr.bf16.gmra.mrb[88].mxu0 %v14972_v29  ;;  %v8086_v29 = vld [vmem:[#allocation2 + $0xc8] sm:$0xf] }
 0x739   : > { %11881 = vmatprep.mubr.bf16.mxu0 %v14986_v8  ;;  %v8103_v2 = vsel %vm14793_vm10, %v8086_v29, 0  ;;  %v8509_v8 = vsel %vm14797_vm12, %v15129_v38, 0  ;;  %v12893_v29 = vld [vmem:[#allocation10 + $0x50] sm:$0xff]  }
 0x73a   : > { %v8168_v23 = vrot.slane %v8103_v2, 4  ;;  %v8559_v3 = vrot.slane %v8509_v8, 4  ;;  %v12885_v2 = vld [vmem:[#allocation9 + $0x450] sm:$0xff]   ;;  %v12896_v8 = vld [vmem:[#allocation10 + $0x68] sm:$0xff]  }
 0x73c   : > { %v8169_v9 = vsel %vm6133_vm7, %v8166_v27, %v8168_v23  ;;  %v12897_v23 = vld [vmem:[#allocation10 + $0x70] sm:$0xff]  }
 0x740   : > { %11882 = vmatmul.mubr.bf16.gmra.mrb[92].mxu0 %v14984_v0  ;;  %v8508_v0 = vsel %vm14793_vm10, %v8491_v48, 0  ;;  %v12895_v48 = vld [vmem:[#allocation10 + $0x60] sm:$0xff]  }
 0x741   : > { %11901 = vmatprep.mubr.bf16.mxu0 %v8139_v25  ;;  %v8167_v25 = vsel %vm6133_vm7, %v8164_v63, %v8166_v27  ;;  %v8558_v28 = vrot.slane %v8508_v0, 4  ;;  %v12891_v63 = vld [vmem:[#allocation10 + $0x40] sm:$0xff]   ;;  %v12892_v27 = vld [vmem:[#allocation10 + $0x48] sm:$0xff]  }
 0x742   : > { %12077 = vmatprep.subr.bf16.mxu1 %v12891_v63  ;;  %v12888_v0 = vld [vmem:[#allocation9 + $0x468] sm:$0xff]  }
 0x743   : > { %12078 = vmatpush3.bf16.msra.mxu1 %v12891_v63 }
 0x744   : > { %12079 = vmatprep.subr.bf16.mxu1 %v12892_v27 }
 0x747   : > { %12080 = vmatpush3.bf16.msra.mxu1 %v12892_v27 }
 0x748   : > { %11902 = vmatmul.mubr.bf16.vlgmr.msra.gmra.mrb[64].mxu0 %v8141_v62  ;;  %v8560_v62 = vsel %vm6133_vm7, %v8558_v28, %v8559_v3  ;;  %12081 = vmatprep.subr.bf16.mxu1 %v12893_v29  ;;  %v9249_v28 = vld [vmem:[#allocation2 + $0x88] sm:$0xf0] }
 0x749   : > { %11934 = vmatpush3.bf16.msra.mxu0 %v12867_v17  ;;  %11905 = vmatprep.mubr.bf16.mxu0 %v8143_v7  ;;  %v8160_v17 = vrot.slane %v8099_v57, 4  ;;  %v8510_v7 = vsel %vm14797_vm12, %v15131_v16, 0 }
 0x74a   : > { %11935 = vmatprep.subr.bf16.mxu0 %v12868_v53  ;;  %v8561_v31 = vrot.slane %v8510_v7, 4 }
 0x74b   : > { %v8161_v51 = vsel %vm6133_vm7, %v15154_v41, %v8160_v17  ;;  %v8163_v1 = vsel %vm6133_vm7, %v8160_v17, %v8162_v33  ;;  %12082 = vmatpush3.bf16.msra.mxu1 %v12893_v29 }
 0x74c   : > { %v8562_v39 = vsel %vm6133_vm7, %v8559_v3, %v8561_v31  ;;  %v12890_v3 = vld [vmem:[#allocation9 + $0x478] sm:$0xff]  }
 0x74d   : > { %11936 = vmatpush3.bf16.msra.mxu0 %v12868_v53  ;;  %v15184_v53 = vld [vmem:[#allocation2 + $0x98] sm:$0xff] }
 0x74e   : > { %11937 = vmatprep.subr.bf16.mxu0 %v12869_v44  ;;  %v8511_v50 = vsel %vm14797_vm12, %v15184_v53, 0 }
 0x750   : > { %11906 = vmatmul.mubr.bf16.gmra.mrb[68].mxu0 %v8145_v43  ;;  %v8513_v43 = vsel %vm14797_vm12, %v15194_v37, 0 }
 0x751   : > { %11909 = vmatprep.mubr.bf16.mxu0 %v8147_v4  ;;  %11938 = vmatpush3.bf16.msra.mxu0 %v12869_v44  ;;  %v8563_v44 = vrot.slane %v8511_v50, 4  ;;  %v12877_v4 = vld [vmem:[#allocation9 + $0x410] sm:$0xff]   ;;  %v8567_v22 = vrot.slane %v8513_v43, 4  ;;  %v9268_v50 = vsel %vm15000_vm9, %v15184_v53, 0  ;;  %v9272_v43 = vsel %vm15000_vm9, %v15206_v19, 0 }
 0x752   : > { %11939 = vmatprep.subr.bf16.mxu0 %v12870_v14 }
 0x753   : > { %v8564_v24 = vsel %vm6133_vm7, %v8561_v31, %v8563_v44  ;;  %v9319_v31 = vrot.slane %v9268_v50, 4 }
 0x755   : > { %11940 = vmatpush3.bf16.msra.mxu0 %v12870_v14  ;;  %v8512_v14 = vsel %vm14797_vm12, %v15143_v56, 0  ;;  %v9322_v6 = vsel %vm6133_vm7, %v9319_v31, %v15154_v41 }
 0x756   : > { %11941 = vmatprep.subr.bf16.mxu0 %v12871_v55  ;;  %v8565_v45 = vrot.slane %v8512_v14, 4 }
 0x758   : > { %11910 = vmatmul.mubr.bf16.gmra.mrb[72].mxu0 %v8149_v59  ;;  %v8568_v59 = vsel %vm6133_vm7, %v8565_v45, %v8567_v22 }
 0x759   : > { %11913 = vmatprep.mubr.bf16.mxu0 %v8151_v21  ;;  %11942 = vmatpush3.bf16.msra.mxu0 %v12871_v55  ;;  %v15204_v55 = vld [vmem:[#allocation2 + $0xb0] sm:$0xff] }
 0x75a   : > { %11943 = vmatprep.subr.bf16.mxu0 %v12872_v61  ;;  %v8514_v21 = vsel %vm14797_vm12, %v15204_v55, 0 }
 0x75d   : > { %11944 = vmatpush3.bf16.msra.mxu0 %v12872_v61  ;;  %v8566_v61 = vsel %vm6133_vm7, %v8563_v44, %v8565_v45  ;;  %v9320_v44 = vsel %vm6133_vm7, %v15141_v40, %v9319_v31 }
 0x75e   : > { %11945 = vmatprep.subr.bf16.mxu0 %v12873_v42 }
 0x760   : > { %11914 = vmatmul.mubr.bf16.gmra.mrb[76].mxu0 %v8153_v10  ;;  %v12880_v10 = vld [vmem:[#allocation9 + $0x428] sm:$0xff]  }
 0x761   : > { %11917 = vmatprep.mubr.bf16.mxu0 %v8155_v12  ;;  %11946 = vmatpush3.bf16.msra.mxu0 %v12873_v42  ;;  %v8569_v42 = vrot.slane %v8514_v21, 4 }
 0x762   : > { %11947 = vmatprep.subr.bf16.mxu0 %v12874_v54 }
 0x763   : > { %v8570_v12 = vsel %vm6133_vm7, %v8567_v22, %v8569_v42  ;;  %v8572_v46 = vsel %vm6133_vm7, %v8569_v42, %v8571_v32 }
 0x765   : > { %11948 = vmatpush3.bf16.msra.mxu0 %v12874_v54  ;;  %v15216_v54 = vld [vmem:[#allocation2 + $0xc0] sm:$0xff] }
 0x766   : > { %11981 = vmatprep.subr.bf16.mxu0 %v12875_v13  ;;  %v8516_v52 = vsel %vm14797_vm12, %v15216_v54, 0 }
 0x768   : > { %11918 = vmatmul.mubr.bf16.gmra.mrb[80].mxu0 %v8157_v34  ;;  %v12881_v34 = vld [vmem:[#allocation9 + $0x430] sm:$0xff]  }
 0x769   : > { %11921 = vmatprep.mubr.bf16.mxu0 %v8159_v5  ;;  %v8573_v5 = vrot.slane %v8516_v52, 4 }
 0x76b   : > { %v8574_v17 = vsel %vm6133_vm7, %v8571_v32, %v8573_v5 }
 0x770   : > { %11922 = vmatmul.mubr.bf16.gmra.mrb[84].mxu0 %v8161_v51  ;;  %v12883_v51 = vld [vmem:[#allocation9 + $0x440] sm:$0xff]  }
 0x771   : > { %11925 = vmatprep.mubr.bf16.mxu0 %v8163_v1  ;;  %v8524_v1 = vsel %vm14944_vm5, %v8507_v26, 0 }
 0x772   : > { %v8589_v35 = vrot.slane %v8524_v1, 4 }
 0x778   : > { %11926 = vmatmul.mubr.bf16.gmra.mrb[88].mxu0 %v8165_v20  ;;  %v12884_v20 = vld [vmem:[#allocation9 + $0x448] sm:$0xff]  }
 0x779   : > { %11929 = vmatprep.mubr.bf16.mxu0 %v8167_v25  ;;  %v12894_v25 = vld [vmem:[#allocation10 + $0x58] sm:$0xff]  }
 0x77a   : > { %12083 = vmatprep.subr.bf16.mxu1 %v12894_v25 }
 0x77b   : > { %12084 = vmatpush3.bf16.msra.mxu1 %v12894_v25 }
 0x77c   : > { %12085 = vmatprep.subr.bf16.mxu1 %v12895_v48 }
 0x77f   : > { %12086 = vmatpush3.bf16.msra.mxu1 %v12895_v48 }
 0x780   : > { %11930 = vmatmul.mubr.bf16.gmra.mrb[92].mxu0 %v8169_v9  ;;  %12087 = vmatprep.subr.bf16.mxu1 %v12896_v8  ;;  %v9266_v9 = vsel %vm14944_vm5, %v9249_v28, 0 }
 0x781   : > { %11949 = vmatprep.mubr.bf16.mxu0 %v8560_v62  ;;  %v9316_v62 = vrot.slane %v9266_v9, 4 }
 0x783   : > { %12088 = vmatpush3.bf16.msra.mxu1 %v12896_v8  ;;  %v9318_v7 = vsel %vm6133_vm7, %v9316_v62, %v15141_v40 }
 0x784   : > { %12089 = vmatprep.subr.bf16.mxu1 %v12897_v23 }
 0x787   : > { %12090 = vmatpush3.bf16.msra.mxu1 %v12897_v23 }
 0x788   : > { %11950 = vmatmul.mubr.bf16.vlgmr.msra.gmra.mrb[64].mxu0 %v8562_v39  ;;  %v9271_v39 = vsel %vm15000_vm9, %v15204_v55, 0  ;;  %12091 = vmatprep.subr.bf16.mxu1 %v12898_v58 }
 0x789   : > { %11982 = vmatpush3.bf16.msra.mxu0 %v12875_v13  ;;  %11953 = vmatprep.mubr.bf16.mxu0 %v8564_v24  ;;  %v15223_v13 = vld [vmem:[#allocation2 + $0x20] sm:$0xff] }
 0x78a   : > { %11983 = vmatprep.subr.bf16.mxu0 %v12876_v47  ;;  %v8517_v18 = vsel %vm14797_vm12, %v15223_v13, 0 }
 0x78b   : > { %v8575_v57 = vrot.slane %v8517_v18, 4  ;;  %12092 = vmatpush3.bf16.msra.mxu1 %v12898_v58 }
 0x78d   : > { %11984 = vmatpush3.bf16.msra.mxu0 %v12876_v47  ;;  %v8576_v33 = vsel %vm6133_vm7, %v8573_v5, %v8575_v57  ;;  %v8590_v60 = vsel %vm6133_vm7, %v8575_v57, %v8589_v35  ;;  %v9270_v47 = vsel %vm15000_vm9, %v15194_v37, 0 }
 0x78e   : > { %11985 = vmatprep.subr.bf16.mxu0 %v12877_v4  ;;  %v9323_v24 = vrot.slane %v9270_v47, 4 }
 0x790   : > { %11954 = vmatmul.mubr.bf16.gmra.mrb[68].mxu0 %v8566_v61  ;;  %v9324_v14 = vsel %vm6133_vm7, %v15154_v41, %v9323_v24  ;;  %v9274_v41 = vsel %vm15000_vm9, %v15223_v13, 0  ;;  %v9265_v61 = vld [vmem:[#allocation2 + $0x108] sm:$0xf] }
 0x791   : > { %11957 = vmatprep.mubr.bf16.mxu0 %v8568_v59  ;;  %11986 = vmatpush3.bf16.msra.mxu0 %v12877_v4  ;;  %v9327_v4 = vrot.slane %v9272_v43, 4  ;;  %v9282_v59 = vsel %vm14793_vm10, %v9265_v61, 0 }
 0x792   : > { %11987 = vmatprep.subr.bf16.mxu0 %v12878_v36  ;;  %v9347_v21 = vrot.slane %v9282_v59, 4 }
 0x795   : > { %11988 = vmatpush3.bf16.msra.mxu0 %v12878_v36  ;;  %v9331_v36 = vrot.slane %v9274_v41, 4 }
 0x796   : > { %11989 = vmatprep.subr.bf16.mxu0 %v12879_v49 }
 0x797   : > { %v9348_v30 = vsel %vm6133_vm7, %v9331_v36, %v9347_v21 }
 0x798   : > { %11958 = vmatmul.mubr.bf16.gmra.mrb[72].mxu0 %v8570_v12 }
 0x799   : > { %11961 = vmatprep.mubr.bf16.mxu0 %v8572_v46  ;;  %11990 = vmatpush3.bf16.msra.mxu0 %v12879_v49  ;;  %v15287_v49 = vld [vmem:[%s15477_s4 + $0x1] ss:$0 sm:$0xff] }
 0x79a   : > { %11991 = vmatprep.subr.bf16.mxu0 %v12880_v10 }
 0x79d   : > { %11992 = vmatpush3.bf16.msra.mxu0 %v12880_v10 }
 0x79e   : > { %11993 = vmatprep.subr.bf16.mxu0 %v12881_v34 }
 0x7a0   : > { %11962 = vmatmul.mubr.bf16.gmra.mrb[76].mxu0 %v8574_v17 }
 0x7a1   : > { %11965 = vmatprep.mubr.bf16.mxu0 %v8576_v33  ;;  %11994 = vmatpush3.bf16.msra.mxu0 %v12881_v34 }
 0x7a2   : > { %11995 = vmatprep.subr.bf16.mxu0 %v12882_v11 }
 0x7a5   : > { %11996 = vmatpush3.bf16.msra.mxu0 %v12882_v11 }
 0x7a6   : > { %12029 = vmatprep.subr.bf16.mxu0 %v12883_v51 }
 0x7a8   : > { %11966 = vmatmul.mubr.bf16.gmra.mrb[80].mxu0 %v8575_v57 }
 0x7a9   : > { %11969 = vmatprep.mubr.bf16.mxu0 %v8575_v57 }
 0x7b0   : > { %11970 = vmatmul.mubr.bf16.gmra.mrb[84].mxu0 %v8575_v57 }
 0x7b1   : > { %11973 = vmatprep.mubr.bf16.mxu0 %v8575_v57 }
 0x7b8   : > { %11974 = vmatmul.mubr.bf16.gmra.mrb[88].mxu0 %v8575_v57 }
 0x7b9   : > { %11977 = vmatprep.mubr.bf16.mxu0 %v8575_v57 }
 0x7c0   : > { %11978 = vmatmul.mubr.bf16.gmra.mrb[92].mxu0 %v8590_v60 }
 0x7c1   : > { %11997 = vmatprep.mubr.bf16.mxu0 %v15129_v38  ;;  %v12886_v38 = vld [vmem:[#allocation9 + $0x458] sm:$0xff]  }
 0x7c8   : > { %11998 = vmatmul.mubr.bf16.vlgmr.msra.gmra.mrb[64].mxu0 %v15131_v16  ;;  %v12887_v16 = vld [vmem:[#allocation9 + $0x460] sm:$0xff]  }
 0x7c9   : > { %12030 = vmatpush3.bf16.msra.mxu0 %v12883_v51  ;;  %12001 = vmatprep.mubr.bf16.mxu0 %v15184_v53  ;;  %v9325_v53 = vrot.slane %v9271_v39, 4 }
 0x7ca   : > { %12031 = vmatprep.subr.bf16.mxu0 %v12884_v20 }
 0x7cb   : > { %v9326_v40 = vsel %vm6133_vm7, %v9323_v24, %v9325_v53  ;;  %v9328_v22 = vsel %vm6133_vm7, %v9325_v53, %v9327_v4 }
 0x7cd   : > { %12032 = vmatpush3.bf16.msra.mxu0 %v12884_v20 }
 0x7ce   : > { %12033 = vmatprep.subr.bf16.mxu0 %v12885_v2 }
 0x7d0   : > { %12002 = vmatmul.mubr.bf16.gmra.mrb[68].mxu0 %v15143_v56  ;;  %v12889_v56 = vld [vmem:[#allocation9 + $0x470] sm:$0xff]  }
 0x7d1   : > { %12005 = vmatprep.mubr.bf16.mxu0 %v15194_v37  ;;  %12034 = vmatpush3.bf16.msra.mxu0 %v12885_v2  ;;  %v9273_v37 = vsel %vm15000_vm9, %v15216_v54, 0 }
 0x7d2   : > { %12035 = vmatprep.subr.bf16.mxu0 %v12886_v38  ;;  %v9329_v45 = vrot.slane %v9273_v37, 4 }
 0x7d5   : > { %12036 = vmatpush3.bf16.msra.mxu0 %v12886_v38 }
 0x7d6   : > { %12037 = vmatprep.subr.bf16.mxu0 %v12887_v16 }
 0x7d8   : > { %12006 = vmatmul.mubr.bf16.gmra.mrb[72].mxu0 %v15204_v55  ;;  %v9330_v55 = vsel %vm6133_vm7, %v9327_v4, %v9329_v45 }
 0x7d9   : > { %12009 = vmatprep.mubr.bf16.mxu0 %v15206_v19  ;;  %12038 = vmatpush3.bf16.msra.mxu0 %v12887_v16  ;;  %v9332_v19 = vsel %vm6133_vm7, %v9329_v45, %v9331_v36 }
 0x7da   : > { %12039 = vmatprep.subr.bf16.mxu0 %v12888_v0 }
 0x7dd   : > { %12040 = vmatpush3.bf16.msra.mxu0 %v12888_v0 }
 0x7de   : > { %12041 = vmatprep.subr.bf16.mxu0 %v12889_v56 }
 0x7e0   : > { %12010 = vmatmul.mubr.bf16.gmra.mrb[76].mxu0 %v15216_v54 }
 0x7e1   : > { %12013 = vmatprep.mubr.bf16.mxu0 %v15223_v13  ;;  %12042 = vmatpush3.bf16.msra.mxu0 %v12889_v56 }
 0x7e2   : > { %12043 = vmatprep.subr.bf16.mxu0 %v12890_v3 }
 0x7e5   : > { %12044 = vmatpush3.bf16.msra.mxu0 %v12890_v3 }
 0x7e8   : > { %12014 = vmatmul.mubr.bf16.gmra.mrb[80].mxu0 %v15223_v13 }
 0x7e9   : > { %12017 = vmatprep.mubr.bf16.mxu0 %v15223_v13 }
 0x7f0   : > { %12018 = vmatmul.mubr.bf16.gmra.mrb[84].mxu0 %v15223_v13 }
 0x7f1   : > { %12021 = vmatprep.mubr.bf16.mxu0 %v15223_v13 }
 0x7f8   : > { %12022 = vmatmul.mubr.bf16.gmra.mrb[88].mxu0 %v15223_v13 }
 0x7f9   : > { %12025 = vmatprep.mubr.bf16.mxu0 %v15223_v13 }
 0x800   : > { %12026 = vmatmul.mubr.bf16.gmra.mrb[92].mxu0 %v15223_v13 }
 0x801   : > { %12045 = vmatprep.mubr.bf16.mxu0 %v9318_v7 }
 0x808   : > { %12046 = vmatmul.mubr.bf16.vlgmr.msra.gmra.mrb[64].mxu0 %v9320_v44 }
 0x809   : > { %12049 = vmatprep.mubr.bf16.mxu0 %v9322_v6 }
 0x810   : > { %12050 = vmatmul.mubr.bf16.gmra.mrb[68].mxu0 %v9324_v14 }
 0x811   : > { %12053 = vmatprep.mubr.bf16.mxu0 %v9326_v40 }
 0x818   : > { %12054 = vmatmul.mubr.bf16.gmra.mrb[72].mxu0 %v9328_v22 }
 0x819   : > { %12057 = vmatprep.mubr.bf16.mxu0 %v9330_v55 }
 0x820   : > { %12058 = vmatmul.mubr.bf16.gmra.mrb[76].mxu0 %v9332_v19 }
 0x821   : > { %12061 = vmatprep.mubr.bf16.mxu0 %v9331_v36 }
 0x828   : > { %12062 = vmatmul.mubr.bf16.gmra.mrb[80].mxu0 %v9331_v36 }
 0x829   : > { %12065 = vmatprep.mubr.bf16.mxu0 %v9331_v36 }
 0x830   : > { %12066 = vmatmul.mubr.bf16.gmra.mrb[84].mxu0 %v9331_v36 }
 0x831   : > { %12069 = vmatprep.mubr.bf16.mxu0 %v9331_v36 }
 0x838   : > { %12070 = vmatmul.mubr.bf16.gmra.mrb[88].mxu0 %v9331_v36 }
 0x839   : > { %12073 = vmatprep.mubr.bf16.mxu0 %v9331_v36 }
 0x840   : > { %12074 = vmatmul.mubr.bf16.gmra.mrb[92].mxu0 %v9348_v30 }
 0x8db   : > { %v12047_v42 = vpop.f32.mrb[64].mxu0 }
 0x8dc   : > { %v9712_v32 = vadd.f32 %v12047_v42, %v15287_v49  ;;  %v9447_v54 = vpop.f32.mrb[65].mxu0 }
 0x8dd   : > { %v9710_v15 = vadd.f32 %v15287_v49, %v9447_v54  ;;  %v12048_v10 = vpop.f32.mrb[66].mxu0 }
 0x8de   : > { %v9713_v12 = vadd.f32 %v12048_v10, %v15287_v49  ;;  %v9450_v46 = vpop.f32.mrb[67].mxu0  ;;  %v9744_v13 = vmax.f32 %v9712_v32, 0.0 }
 0x8df   : > { %v9711_v52 = vadd.f32 %v15287_v49, %v9450_v46  ;;  %v9742_v34 = vmax.f32 %v9710_v15, 0.0 }
 0x8e0   : > { %v9745_v18 = vmax.f32 %v9713_v12, 0.0 }
 0x8e1   : > { %v9743_v5 = vmax.f32 %v9711_v52, 0.0 }
 0x8e2   : > { %v9775_v57 = vpack.c.bf16 %v9745_v18, %v9744_v13 }
 0x8e3   : > { %v9774_v11 = vpack.c.bf16 %v9743_v5, %v9742_v34  ;;  %v12051_v17 = vpop.f32.mrb[68].mxu0 }
 0x8e4   : > { %v9716_v33 = vadd.f32 %v12051_v17, %v15287_v49  ;;  %v9463_v51 = vpop.f32.mrb[69].mxu0 }
 0x8e5   : > { %v9714_v26 = vadd.f32 %v15287_v49, %v9463_v51  ;;  %v12052_v1 = vpop.f32.mrb[70].mxu0  ;;  %12093 = vmatprep.mubr.bf16.mxu1 %v9774_v11 }
 0x8e6   : > { %v9717_v35 = vadd.f32 %v12052_v1, %v15287_v49  ;;  %v9466_v60 = vpop.f32.mrb[71].mxu0  ;;  %12094 = vmatmul.mubr.bf16.vlgmr.msra.gmra.mrb[64].mxu1 %v9775_v57  ;;  %v9748_v27 = vmax.f32 %v9716_v33, 0.0 }
 0x8e7   : > { %v9715_v63 = vadd.f32 %v15287_v49, %v9466_v60  ;;  %v9746_v20 = vmax.f32 %v9714_v26, 0.0 }
 0x8e8   : > { %v9749_v29 = vmax.f32 %v9717_v35, 0.0 }
 0x8e9   : > { %v9747_v25 = vmax.f32 %v9715_v63, 0.0 }
 0x8ea   : > { %v9777_v2 = vpack.c.bf16 %v9749_v29, %v9748_v27 }
 0x8eb   : > { %v9776_v48 = vpack.c.bf16 %v9747_v25, %v9746_v20  ;;  %v12055_v38 = vpop.f32.mrb[72].mxu0 }
 0x8ec   : > { %v9720_v8 = vadd.f32 %v12055_v38, %v15287_v49  ;;  %v9479_v16 = vpop.f32.mrb[73].mxu0 }
 0x8ed   : > { %v9718_v23 = vadd.f32 %v15287_v49, %v9479_v16  ;;  %v12056_v0 = vpop.f32.mrb[74].mxu0  ;;  %12097 = vmatprep.mubr.bf16.mxu1 %v9776_v48 }
 0x8ee   : > { %v9721_v56 = vadd.f32 %v12056_v0, %v15287_v49  ;;  %v9482_v3 = vpop.f32.mrb[75].mxu0  ;;  %12098 = vmatmul.mubr.bf16.gmra.mrb[68].mxu1 %v9777_v2  ;;  %v9752_v9 = vmax.f32 %v9720_v8, 0.0 }
 0x8ef   : > { %v9719_v28 = vadd.f32 %v15287_v49, %v9482_v3  ;;  %v9750_v7 = vmax.f32 %v9718_v23, 0.0 }
 0x8f0   : > { %v9753_v62 = vmax.f32 %v9721_v56, 0.0 }
 0x8f1   : > { %v9751_v50 = vmax.f32 %v9719_v28, 0.0 }
 0x8f2   : > { %v9779_v31 = vpack.c.bf16 %v9753_v62, %v9752_v9 }
 0x8f3   : > { %v9778_v44 = vpack.c.bf16 %v9751_v50, %v9750_v7  ;;  %v12059_v6 = vpop.f32.mrb[76].mxu0 }
 0x8f4   : > { %v9724_v47 = vadd.f32 %v12059_v6, %v15287_v49  ;;  %v9495_v39 = vpop.f32.mrb[77].mxu0 }
 0x8f5   : > { %v9722_v24 = vadd.f32 %v15287_v49, %v9495_v39  ;;  %v12060_v53 = vpop.f32.mrb[78].mxu0  ;;  %12101 = vmatprep.mubr.bf16.mxu1 %v9778_v44 }
 0x8f6   : > { %v9725_v14 = vadd.f32 %v12060_v53, %v15287_v49  ;;  %v9498_v40 = vpop.f32.mrb[79].mxu0  ;;  %12102 = vmatmul.mubr.bf16.gmra.mrb[72].mxu1 %v9779_v31  ;;  %v9756_v37 = vmax.f32 %v9724_v47, 0.0 }
 0x8f7   : > { %v9723_v43 = vadd.f32 %v15287_v49, %v9498_v40  ;;  %v9754_v45 = vmax.f32 %v9722_v24, 0.0 }
 0x8f8   : > { %v9757_v4 = vmax.f32 %v9725_v14, 0.0 }
 0x8f9   : > { %v9755_v22 = vmax.f32 %v9723_v43, 0.0  ;;  %v15324_v43 = vld [vmem:[%s15479_s6 + $0x1] ss:$0 sm:$0xff] }
 0x8fa   : > { %v9781_v55 = vpack.c.bf16 %v9757_v4, %v9756_v37 }
 0x8fb   : > { %v9780_v41 = vpack.c.bf16 %v9755_v22, %v9754_v45  ;;  %v12063_v36 = vpop.f32.mrb[80].mxu0 }
 0x8fc   : > { %v9728_v19 = vadd.f32 %v12063_v36, %v15287_v49  ;;  %v9511_v61 = vpop.f32.mrb[81].mxu0 }
 0x8fd   : > { %v9726_v59 = vadd.f32 %v15287_v49, %v9511_v61  ;;  %v12064_v21 = vpop.f32.mrb[82].mxu0  ;;  %12105 = vmatprep.mubr.bf16.mxu1 %v9780_v41 }
 0x8fe   : > { %v9729_v30 = vadd.f32 %v12064_v21, %v15287_v49  ;;  %v9514_v58 = vpop.f32.mrb[83].mxu0  ;;  %12106 = vmatmul.mubr.bf16.gmra.mrb[76].mxu1 %v9781_v55  ;;  %v9760_v32 = vmax.f32 %v9728_v19, 0.0  ;;  %v10058_v19 = vld [vmem:[%s13383_s30 + $0x10] sm:$0xff] }
 0x8ff   : > { %v9727_v42 = vadd.f32 %v15287_v49, %v9514_v58  ;;  %v9758_v15 = vmax.f32 %v9726_v59, 0.0 }
 0x900   : > { %v9761_v54 = vmax.f32 %v9729_v30, 0.0  ;;  %v10056_v30 = vld [vmem:[%s13383_s30] sm:$0xff] }
 0x901   : > { %v9759_v10 = vmax.f32 %v9727_v42, 0.0 }
 0x902   : > { %v9783_v12 = vpack.c.bf16 %v9761_v54, %v9760_v32  ;;  %v10059_v32 = vld [vmem:[%s13383_s30 + $0x18] sm:$0xff] }
 0x903   : > { %v9782_v46 = vpack.c.bf16 %v9759_v10, %v9758_v15  ;;  %v12067_v52 = vpop.f32.mrb[84].mxu0  ;;  %v10057_v10 = vld [vmem:[%s13383_s30 + $0x8] sm:$0xff] }
 0x904   : > { %v9732_v13 = vadd.f32 %v12067_v52, %v15287_v49  ;;  %v9527_v18 = vpop.f32.mrb[85].mxu0 }
 0x905   : > { %v9730_v34 = vadd.f32 %v15287_v49, %v9527_v18  ;;  %v12068_v5 = vpop.f32.mrb[86].mxu0  ;;  %12109 = vmatprep.mubr.bf16.mxu1 %v9782_v46 }
 0x906   : > { %v9733_v57 = vadd.f32 %v12068_v5, %v15287_v49  ;;  %v9530_v11 = vpop.f32.mrb[87].mxu0  ;;  %12110 = vmatmul.mubr.bf16.gmra.mrb[80].mxu1 %v9783_v12  ;;  %v9764_v33 = vmax.f32 %v9732_v13, 0.0 }
 0x907   : > { %v9731_v17 = vadd.f32 %v15287_v49, %v9530_v11  ;;  %v9762_v26 = vmax.f32 %v9730_v34, 0.0 }
 0x908   : > { %v9765_v51 = vmax.f32 %v9733_v57, 0.0 }
 0x909   : > { %v9763_v1 = vmax.f32 %v9731_v17, 0.0  ;;  %v10062_v17 = vld [vmem:[%s13383_s30 + $0x30] sm:$0xff] }
 0x90a   : > { %v9785_v35 = vpack.c.bf16 %v9765_v51, %v9764_v33 }
 0x90b   : > { %v9784_v60 = vpack.c.bf16 %v9763_v1, %v9762_v26  ;;  %v12071_v63 = vpop.f32.mrb[88].mxu0  ;;  %v10060_v1 = vld [vmem:[%s13383_s30 + $0x20] sm:$0xff] }
 0x90c   : > { %v9736_v27 = vadd.f32 %v12071_v63, %v15287_v49  ;;  %v9543_v29 = vpop.f32.mrb[89].mxu0  ;;  %v10063_v63 = vld [vmem:[%s13383_s30 + $0x38] sm:$0xff] }
 0x90d   : > { %v9734_v20 = vadd.f32 %v15287_v49, %v9543_v29  ;;  %v12072_v25 = vpop.f32.mrb[90].mxu0  ;;  %12113 = vmatprep.mubr.bf16.mxu1 %v9784_v60 }
 0x90e   : > { %v9737_v2 = vadd.f32 %v12072_v25, %v15287_v49  ;;  %v9546_v48 = vpop.f32.mrb[91].mxu0  ;;  %12114 = vmatmul.mubr.bf16.gmra.mrb[84].mxu1 %v9785_v35  ;;  %v9768_v8 = vmax.f32 %v9736_v27, 0.0 }
 0x90f   : > { %v9735_v38 = vadd.f32 %v15287_v49, %v9546_v48  ;;  %v9766_v23 = vmax.f32 %v9734_v20, 0.0  ;;  %v10061_v20 = vld [vmem:[%s13383_s30 + $0x28] sm:$0xff] }
 0x910   : > { %v9769_v16 = vmax.f32 %v9737_v2, 0.0 }
 0x911   : > { %v9767_v0 = vmax.f32 %v9735_v38, 0.0 }
 0x912   : > { %v9787_v56 = vpack.c.bf16 %v9769_v16, %v9768_v8 }
 0x913   : > { %v9786_v3 = vpack.c.bf16 %v9767_v0, %v9766_v23  ;;  %v12075_v28 = vpop.f32.mrb[92].mxu0 }
 0x914   : > { %v9740_v9 = vadd.f32 %v12075_v28, %v15287_v49  ;;  %v9559_v62 = vpop.f32.mrb[93].mxu0 }
 0x915   : > { %v9738_v7 = vadd.f32 %v15287_v49, %v9559_v62  ;;  %v12076_v50 = vpop.f32.mrb[94].mxu0  ;;  %12117 = vmatprep.mubr.bf16.mxu1 %v9786_v3  ;;  %v10066_v3 = vld [vmem:[%s13383_s30 + $0x50] sm:$0xff] }
 0x916   : > { %v9741_v31 = vadd.f32 %v12076_v50, %v15287_v49  ;;  %v9562_v44 = vpop.f32.mrb[95].mxu0  ;;  %12118 = vmatmul.mubr.bf16.gmra.mrb[88].mxu1 %v9787_v56  ;;  %v9772_v47 = vmax.f32 %v9740_v9, 0.0 }
 0x917   : > { %v9739_v6 = vadd.f32 %v15287_v49, %v9562_v44  ;;  %v9770_v24 = vmax.f32 %v9738_v7, 0.0  ;;  %v10064_v7 = vld [vmem:[%s13383_s30 + $0x40] sm:$0xff]  ;;  %v10067_v44 = vld [vmem:[%s13383_s30 + $0x58] sm:$0xff] }
 0x918   : > { %v9773_v39 = vmax.f32 %v9741_v31, 0.0 }
 0x919   : > { %v9771_v53 = vmax.f32 %v9739_v6, 0.0 }
 0x91a   : > { %v9789_v14 = vpack.c.bf16 %v9773_v39, %v9772_v47  ;;  %v10065_v39 = vld [vmem:[%s13383_s30 + $0x48] sm:$0xff] }
 0x91b   : > { %v9788_v40 = vpack.c.bf16 %v9771_v53, %v9770_v24 }
 0x91d   : > { %12121 = vmatprep.mubr.bf16.mxu1 %v9788_v40 }
 0x91e   : > { %12122 = vmatmul.mubr.bf16.gmra.mrb[92].mxu1 %v9789_v14 }
 0x9b9   : > { %v12095_v37 = vpop.f32.mrb[64].mxu1 }
 0x9ba   : > { %v9906_v4 = vadd.f32 %v12095_v37, %v15324_v43  ;;  %v9897_v49 = vpop.f32.mrb[65].mxu1 }
 0x9bb   : > { %v9898_v45 = vadd.f32 %v15324_v43, %v9897_v49  ;;  %v12096_v22 = vpop.f32.mrb[66].mxu1 }
 0x9bc   : > { %v10026_v55 = vmax.f32 %v9906_v4, 0.0  ;;  %v9909_v41 = vadd.f32 %v12096_v22, %v15324_v43  ;;  %v9900_v36 = vpop.f32.mrb[67].mxu1 }
 0x9bd   : > { %v10024_v61 = vmax.f32 %v9898_v45, 0.0  ;;  %v9901_v59 = vadd.f32 %v15324_v43, %v9900_v36 }
 0x9be   : > { %v10090_v21 = vadd.f32 %v10058_v19, %v10026_v55  ;;  %v10027_v58 = vmax.f32 %v9909_v41, 0.0  ;;  %v10070_v55 = vld [vmem:[%s13383_s30 + $0x70] sm:$0xff] }
 0x9bf   : > { %v10088_v42 = vadd.f32 %v10056_v30, %v10024_v61  ;;  %v10025_v54 = vmax.f32 %v9901_v59, 0.0  ;;  %v10068_v61 = vld [vmem:[%s13383_s30 + $0x60] sm:$0xff]  ;;  %v10071_v30 = vld [vmem:[%s13383_s30 + $0x78] sm:$0xff] }
 0x9c0   : > { %10122 = vst [vmem:[%s13383_s30 + $0x10] sm:$0xff] %v10090_v21  ;;  %v10091_v15 = vadd.f32 %v10059_v32, %v10027_v58  ;;  %v10069_v32 = vld [vmem:[%s13383_s30 + $0x68] sm:$0xff] }
 0x9c1   : > { %10120 = vst [vmem:[%s13383_s30] sm:$0xff] %v10088_v42  ;;  %v10089_v12 = vadd.f32 %v10057_v10, %v10025_v54  ;;  %v12099_v46 = vpop.f32.mrb[68].mxu1 }
 0x9c2   : > { %10123 = vst [vmem:[%s13383_s30 + $0x18] sm:$0xff] %v10091_v15  ;;  %v9922_v52 = vadd.f32 %v12099_v46, %v15324_v43  ;;  %v9913_v13 = vpop.f32.mrb[69].mxu1 }
 0x9c3   : > { %10121 = vst [vmem:[%s13383_s30 + $0x8] sm:$0xff] %v10089_v12  ;;  %v9914_v18 = vadd.f32 %v15324_v43, %v9913_v13  ;;  %v12100_v34 = vpop.f32.mrb[70].mxu1 }
 0x9c4   : > { %v10030_v5 = vmax.f32 %v9922_v52, 0.0  ;;  %v9925_v57 = vadd.f32 %v12100_v34, %v15324_v43  ;;  %v9916_v11 = vpop.f32.mrb[71].mxu1 }
 0x9c5   : > { %v10028_v33 = vmax.f32 %v9914_v18, 0.0  ;;  %v9917_v51 = vadd.f32 %v15324_v43, %v9916_v11 }
 0x9c6   : > { %v10094_v26 = vadd.f32 %v10062_v17, %v10030_v5  ;;  %v10031_v35 = vmax.f32 %v9925_v57, 0.0  ;;  %v10074_v5 = vld [vmem:[%s13383_s30 + $0x90] sm:$0xff] }
 0x9c7   : > { %v10092_v60 = vadd.f32 %v10060_v1, %v10028_v33  ;;  %v10029_v27 = vmax.f32 %v9917_v51, 0.0  ;;  %v10072_v33 = vld [vmem:[%s13383_s30 + $0x80] sm:$0xff]  ;;  %v10075_v1 = vld [vmem:[%s13383_s30 + $0x98] sm:$0xff] }
 0x9c8   : > { %10126 = vst [vmem:[%s13383_s30 + $0x30] sm:$0xff] %v10094_v26  ;;  %v10095_v29 = vadd.f32 %v10063_v63, %v10031_v35  ;;  %v10073_v63 = vld [vmem:[%s13383_s30 + $0x88] sm:$0xff] }
 0x9c9   : > { %10124 = vst [vmem:[%s13383_s30 + $0x20] sm:$0xff] %v10092_v60  ;;  %v10093_v25 = vadd.f32 %v10061_v20, %v10029_v27  ;;  %v12103_v2 = vpop.f32.mrb[72].mxu1 }
 0x9ca   : > { %10127 = vst [vmem:[%s13383_s30 + $0x38] sm:$0xff] %v10095_v29  ;;  %v9938_v48 = vadd.f32 %v12103_v2, %v15324_v43  ;;  %v9929_v38 = vpop.f32.mrb[73].mxu1 }
 0x9cb   : > { %10125 = vst [vmem:[%s13383_s30 + $0x28] sm:$0xff] %v10093_v25  ;;  %v9930_v8 = vadd.f32 %v15324_v43, %v9929_v38  ;;  %v12104_v16 = vpop.f32.mrb[74].mxu1 }
 0x9cc   : > { %v10034_v23 = vmax.f32 %v9938_v48, 0.0  ;;  %v9941_v0 = vadd.f32 %v12104_v16, %v15324_v43  ;;  %v9932_v56 = vpop.f32.mrb[75].mxu1 }
 0x9cd   : > { %v10032_v28 = vmax.f32 %v9930_v8, 0.0  ;;  %v9933_v9 = vadd.f32 %v15324_v43, %v9932_v56 }
 0x9ce   : > { %v10098_v62 = vadd.f32 %v10066_v3, %v10034_v23  ;;  %v10035_v50 = vmax.f32 %v9941_v0, 0.0  ;;  %v10078_v23 = vld [vmem:[%s13383_s30 + $0xb0] sm:$0xff] }
 0x9cf   : > { %v10096_v31 = vadd.f32 %v10064_v7, %v10032_v28  ;;  %v10033_v6 = vmax.f32 %v9933_v9, 0.0  ;;  %v10076_v28 = vld [vmem:[%s13383_s30 + $0xa0] sm:$0xff]  ;;  %v10079_v7 = vld [vmem:[%s13383_s30 + $0xb8] sm:$0xff] }
 0x9d0   : > { %10130 = vst [vmem:[%s13383_s30 + $0x50] sm:$0xff] %v10098_v62  ;;  %v10099_v47 = vadd.f32 %v10067_v44, %v10035_v50  ;;  %v10077_v44 = vld [vmem:[%s13383_s30 + $0xa8] sm:$0xff] }
 0x9d1   : > { %10128 = vst [vmem:[%s13383_s30 + $0x40] sm:$0xff] %v10096_v31  ;;  %v10097_v24 = vadd.f32 %v10065_v39, %v10033_v6  ;;  %v12107_v53 = vpop.f32.mrb[76].mxu1 }
 0x9d2   : > { %10131 = vst [vmem:[%s13383_s30 + $0x58] sm:$0xff] %v10099_v47  ;;  %v9954_v14 = vadd.f32 %v12107_v53, %v15324_v43  ;;  %v9945_v40 = vpop.f32.mrb[77].mxu1 }
 0x9d3   : > { %10129 = vst [vmem:[%s13383_s30 + $0x48] sm:$0xff] %v10097_v24  ;;  %v9946_v37 = vadd.f32 %v15324_v43, %v9945_v40  ;;  %v12108_v4 = vpop.f32.mrb[78].mxu1 }
 0x9d4   : > { %v10038_v49 = vmax.f32 %v9954_v14, 0.0  ;;  %v9957_v45 = vadd.f32 %v12108_v4, %v15324_v43  ;;  %v9948_v22 = vpop.f32.mrb[79].mxu1 }
 0x9d5   : > { %v10036_v41 = vmax.f32 %v9946_v37, 0.0  ;;  %v9949_v36 = vadd.f32 %v15324_v43, %v9948_v22 }
 0x9d6   : > { %v10102_v19 = vadd.f32 %v10070_v55, %v10038_v49  ;;  %v10039_v59 = vmax.f32 %v9957_v45, 0.0  ;;  %v10082_v49 = vld [vmem:[%s13383_s30 + $0xd0] sm:$0xff] }
 0x9d7   : > { %v10100_v21 = vadd.f32 %v10068_v61, %v10036_v41  ;;  %v10037_v58 = vmax.f32 %v9949_v36, 0.0  ;;  %v10080_v41 = vld [vmem:[%s13383_s30 + $0xc0] sm:$0xff]  ;;  %v10083_v61 = vld [vmem:[%s13383_s30 + $0xd8] sm:$0xff] }
 0x9d8   : > { %10134 = vst [vmem:[%s13383_s30 + $0x70] sm:$0xff] %v10102_v19  ;;  %v10103_v42 = vadd.f32 %v10071_v30, %v10039_v59  ;;  %v10081_v30 = vld [vmem:[%s13383_s30 + $0xc8] sm:$0xff] }
 0x9d9   : > { %10132 = vst [vmem:[%s13383_s30 + $0x60] sm:$0xff] %v10100_v21  ;;  %v10101_v54 = vadd.f32 %v10069_v32, %v10037_v58  ;;  %v12111_v15 = vpop.f32.mrb[80].mxu1 }
 0x9da   : > { %10135 = vst [vmem:[%s13383_s30 + $0x78] sm:$0xff] %v10103_v42  ;;  %v9970_v10 = vadd.f32 %v12111_v15, %v15324_v43  ;;  %v9961_v12 = vpop.f32.mrb[81].mxu1 }
 0x9db   : > { %10133 = vst [vmem:[%s13383_s30 + $0x68] sm:$0xff] %v10101_v54  ;;  %v9962_v46 = vadd.f32 %v15324_v43, %v9961_v12  ;;  %v12112_v52 = vpop.f32.mrb[82].mxu1 }
 0x9dc   : > { %v10042_v13 = vmax.f32 %v9970_v10, 0.0  ;;  %v9973_v18 = vadd.f32 %v12112_v52, %v15324_v43  ;;  %v9964_v34 = vpop.f32.mrb[83].mxu1 }
 0x9dd   : > { %v10040_v57 = vmax.f32 %v9962_v46, 0.0  ;;  %v9965_v11 = vadd.f32 %v15324_v43, %v9964_v34 }
 0x9de   : > { %v10106_v17 = vadd.f32 %v10074_v5, %v10042_v13  ;;  %v10043_v51 = vmax.f32 %v9973_v18, 0.0  ;;  %v10086_v13 = vld [vmem:[%s13383_s30 + $0xf0] sm:$0xff] }
 0x9df   : > { %v10104_v26 = vadd.f32 %v10072_v33, %v10040_v57  ;;  %v10041_v35 = vmax.f32 %v9965_v11, 0.0  ;;  %v10084_v57 = vld [vmem:[%s13383_s30 + $0xe0] sm:$0xff]  ;;  %v10087_v33 = vld [vmem:[%s13383_s30 + $0xf8] sm:$0xff] }
 0x9e0   : > { %10138 = vst [vmem:[%s13383_s30 + $0x90] sm:$0xff] %v10106_v17  ;;  %v10107_v60 = vadd.f32 %v10075_v1, %v10043_v51  ;;  %v10085_v1 = vld [vmem:[%s13383_s30 + $0xe8] sm:$0xff] }
 0x9e1   : > { %10136 = vst [vmem:[%s13383_s30 + $0x80] sm:$0xff] %v10104_v26  ;;  %v10105_v27 = vadd.f32 %v10073_v63, %v10041_v35  ;;  %v12115_v29 = vpop.f32.mrb[84].mxu1 }
 0x9e2   : > { %10139 = vst [vmem:[%s13383_s30 + $0x98] sm:$0xff] %v10107_v60  ;;  %v9986_v20 = vadd.f32 %v12115_v29, %v15324_v43  ;;  %v9977_v25 = vpop.f32.mrb[85].mxu1 }
 0x9e3   : > { %10137 = vst [vmem:[%s13383_s30 + $0x88] sm:$0xff] %v10105_v27  ;;  %v9978_v2 = vadd.f32 %v15324_v43, %v9977_v25  ;;  %v12116_v48 = vpop.f32.mrb[86].mxu1 }
 0x9e4   : > { %v10046_v38 = vmax.f32 %v9986_v20, 0.0  ;;  %v9989_v8 = vadd.f32 %v12116_v48, %v15324_v43  ;;  %v9980_v16 = vpop.f32.mrb[87].mxu1 }
 0x9e5   : > { %v10044_v0 = vmax.f32 %v9978_v2, 0.0  ;;  %v9981_v56 = vadd.f32 %v15324_v43, %v9980_v16 }
 0x9e6   : > { %v10110_v3 = vadd.f32 %v10078_v23, %v10046_v38  ;;  %v10047_v9 = vmax.f32 %v9989_v8, 0.0 }
 0x9e7   : > { %v10108_v62 = vadd.f32 %v10076_v28, %v10044_v0  ;;  %v10045_v50 = vmax.f32 %v9981_v56, 0.0 }
 0x9e8   : > { %10142 = vst [vmem:[%s13383_s30 + $0xb0] sm:$0xff] %v10110_v3  ;;  %v10111_v31 = vadd.f32 %v10079_v7, %v10047_v9 }
 0x9e9   : > { %10140 = vst [vmem:[%s13383_s30 + $0xa0] sm:$0xff] %v10108_v62  ;;  %v10109_v6 = vadd.f32 %v10077_v44, %v10045_v50  ;;  %v12119_v47 = vpop.f32.mrb[88].mxu1 }
 0x9ea   : > { %10143 = vst [vmem:[%s13383_s30 + $0xb8] sm:$0xff] %v10111_v31  ;;  %v10002_v39 = vadd.f32 %v12119_v47, %v15324_v43  ;;  %v9993_v24 = vpop.f32.mrb[89].mxu1 }
 0x9eb   : > { %10141 = vst [vmem:[%s13383_s30 + $0xa8] sm:$0xff] %v10109_v6  ;;  %v9994_v53 = vadd.f32 %v15324_v43, %v9993_v24  ;;  %v12120_v14 = vpop.f32.mrb[90].mxu1 }
 0x9ec   : > { %v10050_v40 = vmax.f32 %v10002_v39, 0.0  ;;  %v10005_v37 = vadd.f32 %v12120_v14, %v15324_v43  ;;  %v9996_v4 = vpop.f32.mrb[91].mxu1 }
 0x9ed   : > { %v10048_v45 = vmax.f32 %v9994_v53, 0.0  ;;  %v9997_v22 = vadd.f32 %v15324_v43, %v9996_v4 }
 0x9ee   : > { %v10114_v55 = vadd.f32 %v10082_v49, %v10050_v40  ;;  %v10051_v36 = vmax.f32 %v10005_v37, 0.0 }
 0x9ef   : > { %v10112_v19 = vadd.f32 %v10080_v41, %v10048_v45  ;;  %v10049_v59 = vmax.f32 %v9997_v22, 0.0 }
 0x9f0   : > { %10146 = vst [vmem:[%s13383_s30 + $0xd0] sm:$0xff] %v10114_v55  ;;  %v10115_v21 = vadd.f32 %v10083_v61, %v10051_v36 }
 0x9f1   : > { %10144 = vst [vmem:[%s13383_s30 + $0xc0] sm:$0xff] %v10112_v19  ;;  %v10113_v58 = vadd.f32 %v10081_v30, %v10049_v59  ;;  %v12123_v42 = vpop.f32.mrb[92].mxu1 }
 0x9f2   : > { %10147 = vst [vmem:[%s13383_s30 + $0xd8] sm:$0xff] %v10115_v21  ;;  %v10018_v32 = vadd.f32 %v12123_v42, %v15324_v43  ;;  %v10009_v54 = vpop.f32.mrb[93].mxu1 }
 0x9f3   : > { %10145 = vst [vmem:[%s13383_s30 + $0xc8] sm:$0xff] %v10113_v58  ;;  %v10010_v15 = vadd.f32 %v15324_v43, %v10009_v54  ;;  %v12124_v10 = vpop.f32.mrb[94].mxu1 }
 0x9f4   : > { %v10054_v12 = vmax.f32 %v10018_v32, 0.0  ;;  %v10021_v46 = vadd.f32 %v12124_v10, %v15324_v43  ;;  %v10012_v52 = vpop.f32.mrb[95].mxu1 }
 0x9f5   : > { %v10052_v18 = vmax.f32 %v10010_v15, 0.0  ;;  %v10013_v34 = vadd.f32 %v15324_v43, %v10012_v52 }
 0x9f6   : > { %v10118_v5 = vadd.f32 %v10086_v13, %v10054_v12  ;;  %v10055_v11 = vmax.f32 %v10021_v46, 0.0 }
 0x9f7   : > { %v10116_v17 = vadd.f32 %v10084_v57, %v10052_v18  ;;  %v10053_v51 = vmax.f32 %v10013_v34, 0.0 }
 0x9f8   : > { %10150 = vst [vmem:[%s13383_s30 + $0xf0] sm:$0xff] %v10118_v5  ;;  %v10119_v26 = vadd.f32 %v10087_v33, %v10055_v11 }
 0x9f9   : > { %10148 = vst [vmem:[%s13383_s30 + $0xe0] sm:$0xff] %v10116_v17  ;;  %v10117_v43 = vadd.f32 %v10085_v1, %v10053_v51 }
 0x9fa   : > { %10151 = vst [vmem:[%s13383_s30 + $0xf8] sm:$0xff] %v10119_v26 }
 0x9fb   : > { %10149 = vst [vmem:[%s13383_s30 + $0xe8] sm:$0xff] %v10117_v43 }
 0x9fc   : > { %13041 = shalt.err (!%p13038_p4)
}
 0x9fd   : > { %s13042_s30 = scalar_lea.hbm %s15424_s11, 4096  ;;  %s13046_s16 = scalar_lea.hbm %s15480_s7, 8192 }
 0x9fe   : > { %p13043_p9 = scmp.ne.s32.totalorder %s15424_s11, %s13042_s30  ;;  %p13047_p8 = scmp.lt.u32.totalorder %s15424_s11, %s15480_s7 }
 0x9ff   : > { %p13048_p13 = scmp.lt.u32.totalorder %s13046_s16, %s13042_s30  ;;  %p13050_p10 = scmp.lt.u32.totalorder %s13042_s30, %s15424_s11 }
 0xa00   : > { %p13044_p0 = pnand %p13043_p9, %p13312_p5 }
 0xa01   : > { %p13049_p6 = por %p13048_p13, %p13047_p8 }
 0xa02   : > { %p13045_p11 = pneg %p13044_p0 }
 0xa03   : > { %p13051_p3 = por %p13050_p10, %p13049_p6 }
 0xa05   : > { %p13052_p7 = pnand %p13051_p3, %p13045_p11 }
 0xa07   : > { %13055 = shalt.err (!%p13052_p7)
}
 0xa08   : > { %s13116_s23 = smov 128   ;;  %s13117_s10 = smov 8  }
 0xa09   : > { %12651 = dma.vmem_to_hbm [thread:$0]  (%p13312_p5), %s15426_s9, 4096, %s15424_s11, %s10153_s28, %s13116_s23, %s13116_s23, %s13117_s10  }
 0xa0a PF: > { %s15661_s14 = sld [smem:[#allocation17_spill]]  ;;  %s10181_s15 = sand.u32 1, %s13090_s24  }
 0xa0b   : > { %p15663_p1 = scmp.ge.s32.totalorder %s13102_s27, 2  ;;  %s10182_s29 = scalar_lea.sflag [#allocation6], %s10181_s15 }
 0xa10   : > { %p15662_p12 = scmp.ne.s32.totalorder %s15661_s14, 0 }
 0xa12   : > { %p12668_p2 = pnand %p15663_p1, %p15662_p12 }
 0xa14   : > { %13085 = dma.done.wait (!%p12668_p2), %s10182_s29, 4096  }
 0xa15   : > { %13087 = vsyncadd (!%p12668_p2), %s10182_s29, 4294963200  ;;  %p22_p4 = scmp.ge.s32.totalorder %s13298_s22, 4   ;;  %s15664_s24 = smov %s13094_s25 }
 0xa16   : > { %s15665_s25 = smov %s13098_s26  ;;  %s15666_s26 = smov %s13308_s18 }
 0xa17   : > { %s15667_s27 = smov %s13298_s22  ;;  %24 = sbr.rel (!%p22_p4) target bundleno = 7 (0x7), region = 111 }
 0xa1e   :  { %10187 = vsyncpa [#allocation5], 1 }
 0xa1f   :  { %10189 = vsyncpa [#allocation5 + $0x1], 1 }
 0xa20   :  { %10190 = vsyncpa [#allocation8], 1 }
 0xa21   :  { %10191 = vsyncpa [#allocation11], 1 }
 0xa22   :  { %10192 = vsyncpa [#allocation6], 1 }
 0xa23   :  { %10194 = vsyncpa [#allocation6 + $0x1], 1 }

</bundles_post_ra>
